<compile_context>
chip_gen: v7x
topology: tpu7x:2x2x1
jax: 0.10.0
libtpu: 0.0.40
codegen_flags: <defaults>
</compile_context>

<pallas_src>
import jax
import jax.numpy as jnp
from jax.experimental import pallas as pl
from jax.experimental.pallas import tpu as pltpu


# ---------------------------------------------------------------------------
# Tiling helpers
# ---------------------------------------------------------------------------
def _round_up(x: int, m: int) -> int:
    return (x + m - 1) // m * m


def _tpu_defaults():
    kind = ""
    try:
        kind = jax.devices()[0].device_kind.lower()
    except Exception:
        pass
    if "v5" in kind or "v6" in kind:
        # 128 MiB physical VMEM -> bigger tiles, fewer grid steps.
        return {"tm_cap": 512, "tn_cap": 512, "tk_cap": 1024,
                "vmem": 64 * 1024 * 1024}
    # v7x (64 MiB physical VMEM) or unknown: conservative settings.
    return {"tm_cap": 256, "tn_cap": 512, "tk_cap": 512,
            "vmem": 32 * 1024 * 1024}


_TPU_CFG = _tpu_defaults()


def _choose_tile(dim: int, granule: int, cap: int):
    """Return (padded_dim, tile).

    Tile is a multiple of `granule`, never smaller than max(granule, cap//4)
    for large dims (no degenerate 8-row tiles), and `padded_dim` is a multiple
    of the tile.  Prefers a tile that divides the granule-padded dim exactly
    (zero extra padding); otherwise pads up to a multiple of the biggest tile.
    """
    padded_g = _round_up(dim, granule)
    best = min(cap, padded_g)
    floor = max(granule, min(best, cap // 4))
    t = best
    while t >= floor:
        if padded_g % t == 0:
            return padded_g, t
        t -= granule
    return _round_up(dim, best), best


# ---------------------------------------------------------------------------
# Pallas kernel 1: tiled MXU matmul (bf16 in, f32 accumulate)
# ---------------------------------------------------------------------------
def _matmul_kernel(a_ref, b_ref, o_ref, acc_ref):
    kk = pl.program_id(2)

    @pl.when(kk == 0)
    def _():
        acc_ref[...] = jnp.zeros_like(acc_ref)

    acc_ref[...] += jnp.dot(a_ref[...], b_ref[...],
                            preferred_element_type=jnp.float32)

    @pl.when(kk == pl.num_programs(2) - 1)
    def _():
        o_ref[...] = acc_ref[...].astype(o_ref.dtype)


def matmul_pallas(a, w):
    """(M, K) @ (K, N) on the MXU: bf16 operands, f32 VMEM accumulator."""
    m, k = a.shape
    k2, n = w.shape
    assert k == k2
    cfg = _TPU_CFG
    mp, tm = _choose_tile(m, 8, cfg["tm_cap"])        # sublane granule
    np_, tn = _choose_tile(n, 128, cfg["tn_cap"])     # lane granule
    kp, tk = _choose_tile(k, 128, cfg["tk_cap"])

    # Keep >= 2 grid steps on a parallel axis when possible so both v7x
    # TensorCores get work (harmless on single-TC v5e/v6e).
    if (mp // tm) * (np_ // tn) < 2 and mp >= 16 and mp % 16 == 0:
        tm = mp // 2

    a_p = a.astype(jnp.bfloat16)
    if (mp, kp) != (m, k):
        a_p = jnp.pad(a_p, ((0, mp - m), (0, kp - k)))
    w_p = w.astype(jnp.bfloat16)
    if (kp, np_) != (k, n):
        w_p = jnp.pad(w_p, ((0, kp - k), (0, np_ - n)))

    out = pl.pallas_call(
        _matmul_kernel,
        out_shape=jax.ShapeDtypeStruct((mp, np_), jnp.float32),
        grid_spec=pltpu.PrefetchScalarGridSpec(
            num_scalar_prefetch=0,
            grid=(mp // tm, np_ // tn, kp // tk),
            in_specs=[
                pl.BlockSpec((tm, tk), lambda i, j, kk: (i, kk)),
                pl.BlockSpec((tk, tn), lambda i, j, kk: (kk, j)),
            ],
            out_specs=pl.BlockSpec((tm, tn), lambda i, j, kk: (i, j)),
            scratch_shapes=[pltpu.VMEM((tm, tn), jnp.float32)],
        ),
        compiler_params=pltpu.CompilerParams(
            dimension_semantics=("parallel", "parallel", "arbitrary"),
            vmem_limit_bytes=cfg["vmem"],
        ),
    )(a_p, w_p)
    if (mp, np_) != (m, n):
        out = out[:m, :n]
    return out


# ---------------------------------------------------------------------------
# Pallas kernel 2: fused BatchNorm-apply (+ residual) + ReLU
# ---------------------------------------------------------------------------
def _bn_relu_kernel(y_ref, scale_ref, shift_ref, o_ref):
    o_ref[...] = jnp.maximum(y_ref[...] * scale_ref[...] + shift_ref[...], 0.0)


def _bn_add_relu_kernel(y_ref, scale_ref, shift_ref, r_ref, o_ref):
    o_ref[...] = jnp.maximum(
        y_ref[...] * scale_ref[...] + shift_ref[...] + r_ref[...], 0.0)


def bn_relu_pallas(y, gamma, beta, residual=None, eps=1e-5):
    """Training-mode BatchNorm over rows of (M, C), optional residual, ReLU."""
    # TODO(synk): fuse the per-channel sum / sum-of-squares into the matmul
    # epilogue (small second output accumulated over the M grid) so y is not
    # re-read by XLA just for the statistics.
    mean = jnp.mean(y, axis=0)
    var = jnp.var(y, axis=0)                 # biased, matches PyTorch training
    inv = gamma / jnp.sqrt(var + eps)
    scale = inv.astype(jnp.float32)
    shift = (beta - mean * inv).astype(jnp.float32)

    m, c = y.shape
    r = residual
    # Lane-densify C < 128 by folding rows into the lane dimension (avoids
    # masked partial stores; biggest win on v5e's single vector-store slot).
    fold = 1
    if c < 128 and 128 % c == 0 and m % (128 // c) == 0:
        fold = 128 // c
        y = y.reshape(m // fold, fold * c)
        if r is not None:
            r = r.reshape(m // fold, fold * c)
        scale = jnp.tile(scale, fold)
        shift = jnp.tile(shift, fold)
    mr, cr = y.shape
    scale = scale.reshape(1, cr)
    shift = shift.reshape(1, cr)

    mp, tm = _choose_tile(mr, 8, 512)
    if mp != mr:
        y = jnp.pad(y, ((0, mp - mr), (0, 0)))
        if r is not None:
            r = jnp.pad(r, ((0, mp - mr), (0, 0)))

    row_spec = pl.BlockSpec((tm, cr), lambda i: (i, 0))
    vec_spec = pl.BlockSpec((1, cr), lambda i: (0, 0))
    args = [y, scale, shift]
    in_specs = [row_spec, vec_spec, vec_spec]
    kernel = _bn_relu_kernel
    if r is not None:
        args.append(r)
        in_specs.append(row_spec)
        kernel = _bn_add_relu_kernel

    out = pl.pallas_call(
        kernel,
        out_shape=jax.ShapeDtypeStruct((mp, cr), jnp.float32),
        grid_spec=pltpu.PrefetchScalarGridSpec(
            num_scalar_prefetch=0,
            grid=(mp // tm,),
            in_specs=in_specs,
            out_specs=row_spec,
        ),
        compiler_params=pltpu.CompilerParams(
            dimension_semantics=("parallel",),
            vmem_limit_bytes=_TPU_CFG["vmem"],
        ),
    )(*args)
    if mp != mr:
        out = out[:mr]
    return out.reshape(m, c)


# ---------------------------------------------------------------------------
# Pure-JAX references (mirror the bf16-in / f32-accumulate rounding so the
# check isolates kernel/tiling correctness from the intended precision change)
# ---------------------------------------------------------------------------
def matmul_ref(a, w):
    a32 = a.astype(jnp.bfloat16).astype(jnp.float32)
    w32 = w.astype(jnp.bfloat16).astype(jnp.float32)
    return jnp.dot(a32, w32, preferred_element_type=jnp.float32,
                   precision=jax.lax.Precision.HIGHEST)


def bn_relu_ref(y, gamma, beta, residual=None, eps=1e-5):
    mean = jnp.mean(y, axis=0)
    var = jnp.var(y, axis=0)
    out = (y - mean) * (gamma / jnp.sqrt(var + eps)) + beta
    if residual is not None:
        out = out + residual
    return jnp.maximum(out, 0.0)


# ---------------------------------------------------------------------------
# ResNet building blocks (NHWC), parameterised by matmul_fn / bn_fn
# ---------------------------------------------------------------------------
def conv2d(x, conv_p, stride, padding, matmul_fn):
    """NHWC conv as im2col + (Pallas) matmul; weights are HWIO.

    Conv2d bias is omitted: training-mode BatchNorm's mean subtraction cancels
    a per-channel bias exactly, so adding it here is dead work (perf review).
    """
    n, h, w, cin = x.shape
    kh, kw, _, cout = conv_p["w"].shape
    ho = (h + 2 * padding - kh) // stride + 1
    wo = (w + 2 * padding - kw) // stride + 1
    x_pad = jnp.pad(x, ((0, 0), (padding, padding), (padding, padding), (0, 0)))
    # TODO(synk): fuse the im2col tap gather into the Pallas matmul
    # (memory_space=pl.ANY + per-tap DMA, or tap index on the K grid axis);
    # for now XLA materialises the patch matrix, but in bf16 (half the bytes).
    x_pad = x_pad.astype(jnp.bfloat16)
    taps = []
    for i in range(kh):
        for j in range(kw):
            taps.append(jax.lax.slice(
                x_pad,
                (0, i, j, 0),
                (n, i + (ho - 1) * stride + 1, j + (wo - 1) * stride + 1, cin),
                (1, stride, stride, 1)))
    patches = jnp.concatenate(taps, axis=-1)            # (N, Ho, Wo, kh*kw*Cin)
    a = patches.reshape(n * ho * wo, kh * kw * cin)
    wm = conv_p["w"].reshape(kh * kw * cin, cout)
    y = matmul_fn(a, wm)
    return y.reshape(n, ho, wo, cout)


def maxpool_3x3_s2_p1(x):
    # TODO(synk): strided window max left to lax.reduce_window; it does not map
    # cleanly onto lane-aligned (8,128) Pallas tiles at these tiny sizes.
    return jax.lax.reduce_window(
        x, -jnp.inf, jax.lax.max,
        window_dimensions=(1, 3, 3, 1),
        window_strides=(1, 2, 2, 1),
        padding=((0, 0), (1, 1), (1, 1), (0, 0)))


def _apply_bn(y, bn_p, bn_fn, residual=None):
    n, h, w, c = y.shape
    r2 = residual.reshape(-1, c) if residual is not None else None
    out = bn_fn(y.reshape(-1, c), bn_p["gamma"], bn_p["beta"], r2)
    return out.reshape(n, h, w, c)


def _residual_forward(x, rp, strides, matmul_fn, bn_fn):
    y = conv2d(x, rp["conv1"], stride=strides, padding=1, matmul_fn=matmul_fn)
    y = _apply_bn(y, rp["bn1"], bn_fn)                           # ReLU(BN(conv1))
    y = conv2d(y, rp["conv2"], stride=1, padding=1, matmul_fn=matmul_fn)
    if "conv3" in rp:
        shortcut = conv2d(x, rp["conv3"], stride=strides, padding=0,
                          matmul_fn=matmul_fn)
    else:
        shortcut = x
    return _apply_bn(y, rp["bn2"], bn_fn, residual=shortcut)     # ReLU(BN(.)+x)


def resnet_forward(x_nchw, params, matmul_fn, bn_fn):
    x = jnp.transpose(x_nchw, (0, 2, 3, 1)).astype(jnp.float32)  # NCHW -> NHWC
    # b1: 7x7/2 conv + BN + ReLU + 3x3/2 max-pool
    y = conv2d(x, params["b1"]["conv"], stride=2, padding=3, matmul_fn=matmul_fn)
    y = _apply_bn(y, params["b1"]["bn"], bn_fn)
    y = maxpool_3x3_s2_p1(y)
    # b2..b5: residual stages
    for stage in ("b2", "b3", "b4", "b5"):
        for idx, rp in enumerate(params[stage]):
            strides = 2 if (idx == 0 and stage != "b2") else 1
            y = _residual_forward(y, rp, strides, matmul_fn, bn_fn)
    # AdaptiveMaxPool2d((1,1)) + FlattenLayer
    # TODO(synk): global max-pool reduction left to jnp (spatial is 1x1 here).
    feat = jnp.max(y, axis=(1, 2))                               # (N, 512)
    # TODO(synk): the 512x10 Linear is a single sub-tile; pallas_call launch
    # overhead dominates, so it stays on XLA (perf review).
    return jnp.dot(feat, params["fc"]["w"],
                   preferred_element_type=jnp.float32) + params["fc"]["b"]


# ---------------------------------------------------------------------------
# Deterministic synthetic parameters (no checkpoint)
# ---------------------------------------------------------------------------
def init_params(key):
    keys = iter(jax.random.split(key, 64))

    def conv_init(kh, kw, cin, cout):
        fan_in = kh * kw * cin
        w = jax.random.normal(next(keys), (kh, kw, cin, cout), jnp.float32)
        return {"w": w / jnp.sqrt(float(fan_in))}

    def bn_init(c):
        return {"gamma": jnp.ones((c,), jnp.float32),
                "beta": jnp.zeros((c,), jnp.float32)}

    def residual_init(cin, cout, use_1x1):
        p = {"conv1": conv_init(3, 3, cin, cout), "bn1": bn_init(cout),
             "conv2": conv_init(3, 3, cout, cout), "bn2": bn_init(cout)}
        if use_1x1:
            p["conv3"] = conv_init(1, 1, cin, cout)
        return p

    return {
        "b1": {"conv": conv_init(7, 7, 1, 64), "bn": bn_init(64)},
        "b2": [residual_init(64, 64, False), residual_init(64, 64, False)],
        "b3": [residual_init(64, 128, True), residual_init(128, 128, False)],
        "b4": [residual_init(128, 256, True), residual_init(256, 256, False)],
        "b5": [residual_init(256, 512, True), residual_init(512, 512, False)],
        "fc": {"w": jax.random.normal(next(keys), (512, 10), jnp.float32)
                    / jnp.sqrt(512.0),
               "b": 0.1 * jax.random.normal(next(keys), (10,), jnp.float32)},
    }


if __name__ == "__main__":
    key = jax.random.PRNGKey(0)
    k_params, k_x = jax.random.split(key)
    params = init_params(k_params)

    # Small input consistent with the module: batch=2, 1 channel, 16x16 (NCHW).
    x = jax.random.normal(k_x, (2, 1, 16, 16), dtype=jnp.float32)

    fwd_pallas = jax.jit(
        lambda xx, pp: resnet_forward(xx, pp, matmul_pallas, bn_relu_pallas))
    fwd_ref = jax.jit(
        lambda xx, pp: resnet_forward(xx, pp, matmul_ref, bn_relu_ref))

    logits = jax.block_until_ready(fwd_pallas(x, params))
    ref = jax.block_until_ready(fwd_ref(x, params))

    assert logits.shape == (2, 10)
    assert bool(jnp.all(jnp.isfinite(logits)))
    max_err = float(jnp.max(jnp.abs(logits - ref)))
    assert jnp.allclose(logits, ref, atol=1e-2, rtol=1e-2), (
        "max abs err = %f" % max_err)

    print("KERNEL_OK")
</pallas_src>

<mosaic_0001>
module attributes {stable_mosaic.version = 11 : i64} {
  func.func @_matmul_kernel(%arg0: i32, %arg1: i32, %arg2: i32, %arg3: memref<64x128xbf16, #tpu.memory_space<vmem>>, %arg4: memref<128x128xbf16, #tpu.memory_space<vmem>>, %arg5: memref<64x128xf32, #tpu.memory_space<vmem>>, %arg6: memref<64x128xf32, #tpu.memory_space<vmem>>) attributes {dimension_semantics = [#tpu.dimension_semantics<parallel>, #tpu.dimension_semantics<parallel>, #tpu.dimension_semantics<arbitrary>], iteration_bounds = array<i64: 2, 1, 1>, scalar_prefetch = 0 : i64, scratch_operands = 1 : i64, tpu.core_type = #tpu.core_type<tc>, window_params = [{transform_indices = @transform_0, window_bounds = array<i64: 64, 128>}, {transform_indices = @transform_1, window_bounds = array<i64: 128, 128>}, {transform_indices = @transform_2, window_bounds = array<i64: 64, 128>}]} {
    %c0_i32 = arith.constant 0 : i32
    %0 = arith.cmpi eq, %arg2, %c0_i32 : i32
    %1 = arith.extui %0 : i1 to i32
    %c0_i32_0 = arith.constant 0 : i32
    %2 = arith.cmpi ne, %1, %c0_i32_0 : i32
    scf.if %2 {
      %cst_10 = arith.constant 0.000000e+00 : f32
      %12 = vector.broadcast %cst_10 : f32 to vector<64x128xf32>
      %c0_11 = arith.constant 0 : index
      %c0_12 = arith.constant 0 : index
      %13 = vector.load %arg6[%c0_11, %c0_12] : memref<64x128xf32, #tpu.memory_space<vmem>>, vector<64x128xf32>
      tpu.vector_store %arg6[%c0_11, %c0_12], %12 {strides = array<i32>} : memref<64x128xf32, #tpu.memory_space<vmem>>, vector<64x128xf32>,
    } else {
    }
    %c0 = arith.constant 0 : index
    %c0_1 = arith.constant 0 : index
    %3 = vector.load %arg6[%c0, %c0_1] : memref<64x128xf32, #tpu.memory_space<vmem>>, vector<64x128xf32>
    %c0_2 = arith.constant 0 : index
    %c0_3 = arith.constant 0 : index
    %4 = vector.load %arg3[%c0_2, %c0_3] : memref<64x128xbf16, #tpu.memory_space<vmem>>, vector<64x128xbf16>
    %c0_4 = arith.constant 0 : index
    %c0_5 = arith.constant 0 : index
    %5 = vector.load %arg4[%c0_4, %c0_5] : memref<128x128xbf16, #tpu.memory_space<vmem>>, vector<128x128xbf16>
    %cst = arith.constant dense<0.000000e+00> : vector<64x128xf32>
    %6 = tpu.matmul %4, %5, %cst {dimension_numbers = #tpu.dot_dimension_numbers<[1], [0], [0], [1], [0, 0, 1, 1], [], []>} : vector<64x128xbf16>, vector<128x128xbf16>, vector<64x128xf32> -> vector<64x128xf32>
    %7 = arith.addf %3, %6 : vector<64x128xf32>
    %c0_6 = arith.constant 0 : index
    %c0_7 = arith.constant 0 : index
    %8 = vector.load %arg6[%c0_6, %c0_7] : memref<64x128xf32, #tpu.memory_space<vmem>>, vector<64x128xf32>
    tpu.vector_store %arg6[%c0_6, %c0_7], %7 {strides = array<i32>} : memref<64x128xf32, #tpu.memory_space<vmem>>, vector<64x128xf32>,
    %c0_i32_8 = arith.constant 0 : i32
    %9 = arith.cmpi eq, %arg2, %c0_i32_8 : i32
    %10 = arith.extui %9 : i1 to i32
    %c0_i32_9 = arith.constant 0 : i32
    %11 = arith.cmpi ne, %10, %c0_i32_9 : i32
    scf.if %11 {
      %c0_10 = arith.constant 0 : index
      %c0_11 = arith.constant 0 : index
      %12 = vector.load %arg6[%c0_10, %c0_11] : memref<64x128xf32, #tpu.memory_space<vmem>>, vector<64x128xf32>
      %c0_12 = arith.constant 0 : index
      %c0_13 = arith.constant 0 : index
      %13 = vector.load %arg5[%c0_12, %c0_13] : memref<64x128xf32, #tpu.memory_space<vmem>>, vector<64x128xf32>
      tpu.vector_store %arg5[%c0_12, %c0_13], %12 {strides = array<i32>} : memref<64x128xf32, #tpu.memory_space<vmem>>, vector<64x128xf32>,
    } else {
    }
    return
  }
  func.func @transform_0(%arg0: i32, %arg1: i32, %arg2: i32) -> (i32, i32) {
    %c0_i32 = arith.constant 0 : i32
    return %arg0, %arg2 : i32, i32
  }
  func.func @transform_1(%arg0: i32, %arg1: i32, %arg2: i32) -> (i32, i32) {
    %c0_i32 = arith.constant 0 : i32
    return %arg2, %arg1 : i32, i32
  }
  func.func @transform_2(%arg0: i32, %arg1: i32, %arg2: i32) -> (i32, i32) {
    %c0_i32 = arith.constant 0 : i32
    return %arg0, %arg1 : i32, i32
  }
}

module attributes {stable_mosaic.version = 11 : i64} {
  func.func @_bn_relu_kernel(%arg0: i32, %arg1: memref<64x128xf32, #tpu.memory_space<vmem>>, %arg2: memref<1x128xf32, #tpu.memory_space<vmem>>, %arg3: memref<1x128xf32, #tpu.memory_space<vmem>>, %arg4: memref<64x128xf32, #tpu.memory_space<vmem>>) attributes {dimension_semantics = [#tpu.dimension_semantics<parallel>], iteration_bounds = array<i64: 1>, scalar_prefetch = 0 : i64, scratch_operands = 0 : i64, tpu.core_type = #tpu.core_type<tc>, window_params = [{transform_indices = @transform_0, window_bounds = array<i64: 64, 128>}, {pipeline_mode = #tpu.pipeline_mode<synchronous>, transform_indices = @transform_1, window_bounds = array<i64: 1, 128>}, {pipeline_mode = #tpu.pipeline_mode<synchronous>, transform_indices = @transform_2, window_bounds = array<i64: 1, 128>}, {transform_indices = @transform_3, window_bounds = array<i64: 64, 128>}]} {
    %c0 = arith.constant 0 : index
    %c0_0 = arith.constant 0 : index
    %0 = vector.load %arg1[%c0, %c0_0] : memref<64x128xf32, #tpu.memory_space<vmem>>, vector<64x128xf32>
    %c0_1 = arith.constant 0 : index
    %c0_2 = arith.constant 0 : index
    %1 = vector.load %arg2[%c0_1, %c0_2] : memref<1x128xf32, #tpu.memory_space<vmem>>, vector<1x128xf32>
    %2 = vector.broadcast %1 : vector<1x128xf32> to vector<64x128xf32>
    %3 = arith.mulf %0, %2 : vector<64x128xf32>
    %c0_3 = arith.constant 0 : index
    %c0_4 = arith.constant 0 : index
    %4 = vector.load %arg3[%c0_3, %c0_4] : memref<1x128xf32, #tpu.memory_space<vmem>>, vector<1x128xf32>
    %5 = vector.broadcast %4 : vector<1x128xf32> to vector<64x128xf32>
    %6 = arith.addf %3, %5 : vector<64x128xf32>
    %cst = arith.constant 0.000000e+00 : f32
    %7 = vector.broadcast %cst : f32 to vector<64x128xf32>
    %8 = arith.maximumf %6, %7 : vector<64x128xf32>
    %c0_5 = arith.constant 0 : index
    %c0_6 = arith.constant 0 : index
    %9 = vector.load %arg4[%c0_5, %c0_6] : memref<64x128xf32, #tpu.memory_space<vmem>>, vector<64x128xf32>
    tpu.vector_store %arg4[%c0_5, %c0_6], %8 {strides = array<i32>} : memref<64x128xf32, #tpu.memory_space<vmem>>, vector<64x128xf32>,
    return
  }
  func.func @transform_0(%arg0: i32) -> (i32, i32) {
    %c0_i32 = arith.constant 0 : i32
    %c0_i32_0 = arith.constant 0 : i32
    return %arg0, %c0_i32 : i32, i32
  }
  func.func @transform_1(%arg0: i32) -> (i32, i32) {
    %c0_i32 = arith.constant 0 : i32
    %c0_i32_0 = arith.constant 0 : i32
    %c0_i32_1 = arith.constant 0 : i32
    return %c0_i32, %c0_i32_0 : i32, i32
  }
  func.func @transform_2(%arg0: i32) -> (i32, i32) {
    %c0_i32 = arith.constant 0 : i32
    %c0_i32_0 = arith.constant 0 : i32
    %c0_i32_1 = arith.constant 0 : i32
    return %c0_i32, %c0_i32_0 : i32, i32
  }
  func.func @transform_3(%arg0: i32) -> (i32, i32) {
    %c0_i32 = arith.constant 0 : i32
    %c0_i32_0 = arith.constant 0 : i32
    return %arg0, %c0_i32 : i32, i32
  }
}

module attributes {stable_mosaic.version = 11 : i64} {
  func.func @_matmul_kernel(%arg0: i32, %arg1: i32, %arg2: i32, %arg3: memref<16x128xbf16, #tpu.memory_space<vmem>>, %arg4: memref<128x128xbf16, #tpu.memory_space<vmem>>, %arg5: memref<16x128xf32, #tpu.memory_space<vmem>>, %arg6: memref<16x128xf32, #tpu.memory_space<vmem>>) attributes {dimension_semantics = [#tpu.dimension_semantics<parallel>, #tpu.dimension_semantics<parallel>, #tpu.dimension_semantics<arbitrary>], iteration_bounds = array<i64: 2, 1, 5>, scalar_prefetch = 0 : i64, scratch_operands = 1 : i64, tpu.core_type = #tpu.core_type<tc>, window_params = [{transform_indices = @transform_0, window_bounds = array<i64: 16, 128>}, {transform_indices = @transform_1, window_bounds = array<i64: 128, 128>}, {transform_indices = @transform_2, window_bounds = array<i64: 16, 128>}]} {
    %c0_i32 = arith.constant 0 : i32
    %0 = arith.cmpi eq, %arg2, %c0_i32 : i32
    %1 = arith.extui %0 : i1 to i32
    %c0_i32_0 = arith.constant 0 : i32
    %2 = arith.cmpi ne, %1, %c0_i32_0 : i32
    scf.if %2 {
      %cst_9 = arith.constant 0.000000e+00 : f32
      %12 = vector.broadcast %cst_9 : f32 to vector<16x128xf32>
      %c0_10 = arith.constant 0 : index
      %c0_11 = arith.constant 0 : index
      %13 = vector.load %arg6[%c0_10, %c0_11] : memref<16x128xf32, #tpu.memory_space<vmem>>, vector<16x128xf32>
      tpu.vector_store %arg6[%c0_10, %c0_11], %12 {strides = array<i32>} : memref<16x128xf32, #tpu.memory_space<vmem>>, vector<16x128xf32>,
    } else {
    }
    %c0 = arith.constant 0 : index
    %c0_1 = arith.constant 0 : index
    %3 = vector.load %arg6[%c0, %c0_1] : memref<16x128xf32, #tpu.memory_space<vmem>>, vector<16x128xf32>
    %c0_2 = arith.constant 0 : index
    %c0_3 = arith.constant 0 : index
    %4 = vector.load %arg3[%c0_2, %c0_3] : memref<16x128xbf16, #tpu.memory_space<vmem>>, vector<16x128xbf16>
    %c0_4 = arith.constant 0 : index
    %c0_5 = arith.constant 0 : index
    %5 = vector.load %arg4[%c0_4, %c0_5] : memref<128x128xbf16, #tpu.memory_space<vmem>>, vector<128x128xbf16>
    %cst = arith.constant dense<0.000000e+00> : vector<16x128xf32>
    %6 = tpu.matmul %4, %5, %cst {dimension_numbers = #tpu.dot_dimension_numbers<[1], [0], [0], [1], [0, 0, 1, 1], [], []>} : vector<16x128xbf16>, vector<128x128xbf16>, vector<16x128xf32> -> vector<16x128xf32>
    %7 = arith.addf %3, %6 : vector<16x128xf32>
    %c0_6 = arith.constant 0 : index
    %c0_7 = arith.constant 0 : index
    %8 = vector.load %arg6[%c0_6, %c0_7] : memref<16x128xf32, #tpu.memory_space<vmem>>, vector<16x128xf32>
    tpu.vector_store %arg6[%c0_6, %c0_7], %7 {strides = array<i32>} : memref<16x128xf32, #tpu.memory_space<vmem>>, vector<16x128xf32>,
    %c4_i32 = arith.constant 4 : i32
    %9 = arith.cmpi eq, %arg2, %c4_i32 : i32
    %10 = arith.extui %9 : i1 to i32
    %c0_i32_8 = arith.constant 0 : i32
    %11 = arith.cmpi ne, %10, %c0_i32_8 : i32
    scf.if %11 {
      %c0_9 = arith.constant 0 : index
      %c0_10 = arith.constant 0 : index
      %12 = vector.load %arg6[%c0_9, %c0_10] : memref<16x128xf32, #tpu.memory_space<vmem>>, vector<16x128xf32>
      %c0_11 = arith.constant 0 : index
      %c0_12 = arith.constant 0 : index
      %13 = vector.load %arg5[%c0_11, %c0_12] : memref<16x128xf32, #tpu.memory_space<vmem>>, vector<16x128xf32>
      tpu.vector_store %arg5[%c0_11, %c0_12], %12 {strides = array<i32>} : memref<16x128xf32, #tpu.memory_space<vmem>>, vector<16x128xf32>,
    } else {
    }
    return
  }
  func.func @transform_0(%arg0: i32, %arg1: i32, %arg2: i32) -> (i32, i32) {
    %c0_i32 = arith.constant 0 : i32
    return %arg0, %arg2 : i32, i32
  }
  func.func @transform_1(%arg0: i32, %arg1: i32, %arg2: i32) -> (i32, i32) {
    %c0_i32 = arith.constant 0 : i32
    return %arg2, %arg1 : i32, i32
  }
  func.func @transform_2(%arg0: i32, %arg1: i32, %arg2: i32) -> (i32, i32) {
    %c0_i32 = arith.constant 0 : i32
    return %arg0, %arg1 : i32, i32
  }
}

module attributes {stable_mosaic.version = 11 : i64} {
  func.func @_bn_relu_kernel(%arg0: i32, %arg1: memref<16x128xf32, #tpu.memory_space<vmem>>, %arg2: memref<1x128xf32, #tpu.memory_space<vmem>>, %arg3: memref<1x128xf32, #tpu.memory_space<vmem>>, %arg4: memref<16x128xf32, #tpu.memory_space<vmem>>) attributes {dimension_semantics = [#tpu.dimension_semantics<parallel>], iteration_bounds = array<i64: 1>, scalar_prefetch = 0 : i64, scratch_operands = 0 : i64, tpu.core_type = #tpu.core_type<tc>, window_params = [{transform_indices = @transform_0, window_bounds = array<i64: 16, 128>}, {pipeline_mode = #tpu.pipeline_mode<synchronous>, transform_indices = @transform_1, window_bounds = array<i64: 1, 128>}, {pipeline_mode = #tpu.pipeline_mode<synchronous>, transform_indices = @transform_2, window_bounds = array<i64: 1, 128>}, {transform_indices = @transform_3, window_bounds = array<i64: 16, 128>}]} {
    %c0 = arith.constant 0 : index
    %c0_0 = arith.constant 0 : index
    %0 = vector.load %arg1[%c0, %c0_0] : memref<16x128xf32, #tpu.memory_space<vmem>>, vector<16x128xf32>
    %c0_1 = arith.constant 0 : index
    %c0_2 = arith.constant 0 : index
    %1 = vector.load %arg2[%c0_1, %c0_2] : memref<1x128xf32, #tpu.memory_space<vmem>>, vector<1x128xf32>
    %2 = vector.broadcast %1 : vector<1x128xf32> to vector<16x128xf32>
    %3 = arith.mulf %0, %2 : vector<16x128xf32>
    %c0_3 = arith.constant 0 : index
    %c0_4 = arith.constant 0 : index
    %4 = vector.load %arg3[%c0_3, %c0_4] : memref<1x128xf32, #tpu.memory_space<vmem>>, vector<1x128xf32>
    %5 = vector.broadcast %4 : vector<1x128xf32> to vector<16x128xf32>
    %6 = arith.addf %3, %5 : vector<16x128xf32>
    %cst = arith.constant 0.000000e+00 : f32
    %7 = vector.broadcast %cst : f32 to vector<16x128xf32>
    %8 = arith.maximumf %6, %7 : vector<16x128xf32>
    %c0_5 = arith.constant 0 : index
    %c0_6 = arith.constant 0 : index
    %9 = vector.load %arg4[%c0_5, %c0_6] : memref<16x128xf32, #tpu.memory_space<vmem>>, vector<16x128xf32>
    tpu.vector_store %arg4[%c0_5, %c0_6], %8 {strides = array<i32>} : memref<16x128xf32, #tpu.memory_space<vmem>>, vector<16x128xf32>,
    return
  }
  func.func @transform_0(%arg0: i32) -> (i32, i32) {
    %c0_i32 = arith.constant 0 : i32
    %c0_i32_0 = arith.constant 0 : i32
    return %arg0, %c0_i32 : i32, i32
  }
  func.func @transform_1(%arg0: i32) -> (i32, i32) {
    %c0_i32 = arith.constant 0 : i32
    %c0_i32_0 = arith.constant 0 : i32
    %c0_i32_1 = arith.constant 0 : i32
    return %c0_i32, %c0_i32_0 : i32, i32
  }
  func.func @transform_2(%arg0: i32) -> (i32, i32) {
    %c0_i32 = arith.constant 0 : i32
    %c0_i32_0 = arith.constant 0 : i32
    %c0_i32_1 = arith.constant 0 : i32
    return %c0_i32, %c0_i32_0 : i32, i32
  }
  func.func @transform_3(%arg0: i32) -> (i32, i32) {
    %c0_i32 = arith.constant 0 : i32
    %c0_i32_0 = arith.constant 0 : i32
    return %arg0, %c0_i32 : i32, i32
  }
}

module attributes {stable_mosaic.version = 11 : i64} {
  func.func @_bn_add_relu_kernel(%arg0: i32, %arg1: memref<16x128xf32, #tpu.memory_space<vmem>>, %arg2: memref<1x128xf32, #tpu.memory_space<vmem>>, %arg3: memref<1x128xf32, #tpu.memory_space<vmem>>, %arg4: memref<16x128xf32, #tpu.memory_space<vmem>>, %arg5: memref<16x128xf32, #tpu.memory_space<vmem>>) attributes {dimension_semantics = [#tpu.dimension_semantics<parallel>], iteration_bounds = array<i64: 1>, scalar_prefetch = 0 : i64, scratch_operands = 0 : i64, tpu.core_type = #tpu.core_type<tc>, window_params = [{transform_indices = @transform_0, window_bounds = array<i64: 16, 128>}, {pipeline_mode = #tpu.pipeline_mode<synchronous>, transform_indices = @transform_1, window_bounds = array<i64: 1, 128>}, {pipeline_mode = #tpu.pipeline_mode<synchronous>, transform_indices = @transform_2, window_bounds = array<i64: 1, 128>}, {transform_indices = @transform_3, window_bounds = array<i64: 16, 128>}, {transform_indices = @transform_4, window_bounds = array<i64: 16, 128>}]} {
    %c0 = arith.constant 0 : index
    %c0_0 = arith.constant 0 : index
    %0 = vector.load %arg1[%c0, %c0_0] : memref<16x128xf32, #tpu.memory_space<vmem>>, vector<16x128xf32>
    %c0_1 = arith.constant 0 : index
    %c0_2 = arith.constant 0 : index
    %1 = vector.load %arg2[%c0_1, %c0_2] : memref<1x128xf32, #tpu.memory_space<vmem>>, vector<1x128xf32>
    %2 = vector.broadcast %1 : vector<1x128xf32> to vector<16x128xf32>
    %3 = arith.mulf %0, %2 : vector<16x128xf32>
    %c0_3 = arith.constant 0 : index
    %c0_4 = arith.constant 0 : index
    %4 = vector.load %arg3[%c0_3, %c0_4] : memref<1x128xf32, #tpu.memory_space<vmem>>, vector<1x128xf32>
    %5 = vector.broadcast %4 : vector<1x128xf32> to vector<16x128xf32>
    %6 = arith.addf %3, %5 : vector<16x128xf32>
    %c0_5 = arith.constant 0 : index
    %c0_6 = arith.constant 0 : index
    %7 = vector.load %arg4[%c0_5, %c0_6] : memref<16x128xf32, #tpu.memory_space<vmem>>, vector<16x128xf32>
    %8 = arith.addf %6, %7 : vector<16x128xf32>
    %cst = arith.constant 0.000000e+00 : f32
    %9 = vector.broadcast %cst : f32 to vector<16x128xf32>
    %10 = arith.maximumf %8, %9 : vector<16x128xf32>
    %c0_7 = arith.constant 0 : index
    %c0_8 = arith.constant 0 : index
    %11 = vector.load %arg5[%c0_7, %c0_8] : memref<16x128xf32, #tpu.memory_space<vmem>>, vector<16x128xf32>
    tpu.vector_store %arg5[%c0_7, %c0_8], %10 {strides = array<i32>} : memref<16x128xf32, #tpu.memory_space<vmem>>, vector<16x128xf32>,
    return
  }
  func.func @transform_0(%arg0: i32) -> (i32, i32) {
    %c0_i32 = arith.constant 0 : i32
    %c0_i32_0 = arith.constant 0 : i32
    return %arg0, %c0_i32 : i32, i32
  }
  func.func @transform_1(%arg0: i32) -> (i32, i32) {
    %c0_i32 = arith.constant 0 : i32
    %c0_i32_0 = arith.constant 0 : i32
    %c0_i32_1 = arith.constant 0 : i32
    return %c0_i32, %c0_i32_0 : i32, i32
  }
  func.func @transform_2(%arg0: i32) -> (i32, i32) {
    %c0_i32 = arith.constant 0 : i32
    %c0_i32_0 = arith.constant 0 : i32
    %c0_i32_1 = arith.constant 0 : i32
    return %c0_i32, %c0_i32_0 : i32, i32
  }
  func.func @transform_3(%arg0: i32) -> (i32, i32) {
    %c0_i32 = arith.constant 0 : i32
    %c0_i32_0 = arith.constant 0 : i32
    return %arg0, %c0_i32 : i32, i32
  }
  func.func @transform_4(%arg0: i32) -> (i32, i32) {
    %c0_i32 = arith.constant 0 : i32
    %c0_i32_0 = arith.constant 0 : i32
    return %arg0, %c0_i32 : i32, i32
  }
}

module attributes {stable_mosaic.version = 11 : i64} {
  func.func @_matmul_kernel(%arg0: i32, %arg1: i32, %arg2: i32, %arg3: memref<8x128xbf16, #tpu.memory_space<vmem>>, %arg4: memref<128x128xbf16, #tpu.memory_space<vmem>>, %arg5: memref<8x128xf32, #tpu.memory_space<vmem>>, %arg6: memref<8x128xf32, #tpu.memory_space<vmem>>) attributes {dimension_semantics = [#tpu.dimension_semantics<parallel>, #tpu.dimension_semantics<parallel>, #tpu.dimension_semantics<arbitrary>], iteration_bounds = array<i64: 1, 1, 5>, scalar_prefetch = 0 : i64, scratch_operands = 1 : i64, tpu.core_type = #tpu.core_type<tc>, window_params = [{transform_indices = @transform_0, window_bounds = array<i64: 8, 128>}, {transform_indices = @transform_1, window_bounds = array<i64: 128, 128>}, {transform_indices = @transform_2, window_bounds = array<i64: 8, 128>}]} {
    %c0_i32 = arith.constant 0 : i32
    %0 = arith.cmpi eq, %arg2, %c0_i32 : i32
    %1 = arith.extui %0 : i1 to i32
    %c0_i32_0 = arith.constant 0 : i32
    %2 = arith.cmpi ne, %1, %c0_i32_0 : i32
    scf.if %2 {
      %cst_9 = arith.constant 0.000000e+00 : f32
      %12 = vector.broadcast %cst_9 : f32 to vector<8x128xf32>
      %c0_10 = arith.constant 0 : index
      %c0_11 = arith.constant 0 : index
      %13 = vector.load %arg6[%c0_10, %c0_11] : memref<8x128xf32, #tpu.memory_space<vmem>>, vector<8x128xf32>
      tpu.vector_store %arg6[%c0_10, %c0_11], %12 {strides = array<i32>} : memref<8x128xf32, #tpu.memory_space<vmem>>, vector<8x128xf32>,
    } else {
    }
    %c0 = arith.constant 0 : index
    %c0_1 = arith.constant 0 : index
    %3 = vector.load %arg6[%c0, %c0_1] : memref<8x128xf32, #tpu.memory_space<vmem>>, vector<8x128xf32>
    %c0_2 = arith.constant 0 : index
    %c0_3 = arith.constant 0 : index
    %4 = vector.load %arg3[%c0_2, %c0_3] : memref<8x128xbf16, #tpu.memory_space<vmem>>, vector<8x128xbf16>
    %c0_4 = arith.constant 0 : index
    %c0_5 = arith.constant 0 : index
    %5 = vector.load %arg4[%c0_4, %c0_5] : memref<128x128xbf16, #tpu.memory_space<vmem>>, vector<128x128xbf16>
    %cst = arith.constant dense<0.000000e+00> : vector<8x128xf32>
    %6 = tpu.matmul %4, %5, %cst {dimension_numbers = #tpu.dot_dimension_numbers<[1], [0], [0], [1], [0, 0, 1, 1], [], []>} : vector<8x128xbf16>, vector<128x128xbf16>, vector<8x128xf32> -> vector<8x128xf32>
    %7 = arith.addf %3, %6 : vector<8x128xf32>
    %c0_6 = arith.constant 0 : index
    %c0_7 = arith.constant 0 : index
    %8 = vector.load %arg6[%c0_6, %c0_7] : memref<8x128xf32, #tpu.memory_space<vmem>>, vector<8x128xf32>
    tpu.vector_store %arg6[%c0_6, %c0_7], %7 {strides = array<i32>} : memref<8x128xf32, #tpu.memory_space<vmem>>, vector<8x128xf32>,
    %c4_i32 = arith.constant 4 : i32
    %9 = arith.cmpi eq, %arg2, %c4_i32 : i32
    %10 = arith.extui %9 : i1 to i32
    %c0_i32_8 = arith.constant 0 : i32
    %11 = arith.cmpi ne, %10, %c0_i32_8 : i32
    scf.if %11 {
      %c0_9 = arith.constant 0 : index
      %c0_10 = arith.constant 0 : index
      %12 = vector.load %arg6[%c0_9, %c0_10] : memref<8x128xf32, #tpu.memory_space<vmem>>, vector<8x128xf32>
      %c0_11 = arith.constant 0 : index
      %c0_12 = arith.constant 0 : index
      %13 = vector.load %arg5[%c0_11, %c0_12] : memref<8x128xf32, #tpu.memory_space<vmem>>, vector<8x128xf32>
      tpu.vector_store %arg5[%c0_11, %c0_12], %12 {strides = array<i32>} : memref<8x128xf32, #tpu.memory_space<vmem>>, vector<8x128xf32>,
    } else {
    }
    return
  }
  func.func @transform_0(%arg0: i32, %arg1: i32, %arg2: i32) -> (i32, i32) {
    %c0_i32 = arith.constant 0 : i32
    return %arg0, %arg2 : i32, i32
  }
  func.func @transform_1(%arg0: i32, %arg1: i32, %arg2: i32) -> (i32, i32) {
    %c0_i32 = arith.constant 0 : i32
    return %arg2, %arg1 : i32, i32
  }
  func.func @transform_2(%arg0: i32, %arg1: i32, %arg2: i32) -> (i32, i32) {
    %c0_i32 = arith.constant 0 : i32
    return %arg0, %arg1 : i32, i32
  }
}

module attributes {stable_mosaic.version = 11 : i64} {
  func.func @_matmul_kernel(%arg0: i32, %arg1: i32, %arg2: i32, %arg3: memref<8x384xbf16, #tpu.memory_space<vmem>>, %arg4: memref<384x128xbf16, #tpu.memory_space<vmem>>, %arg5: memref<8x128xf32, #tpu.memory_space<vmem>>, %arg6: memref<8x128xf32, #tpu.memory_space<vmem>>) attributes {dimension_semantics = [#tpu.dimension_semantics<parallel>, #tpu.dimension_semantics<parallel>, #tpu.dimension_semantics<arbitrary>], iteration_bounds = array<i64: 1, 1, 3>, scalar_prefetch = 0 : i64, scratch_operands = 1 : i64, tpu.core_type = #tpu.core_type<tc>, window_params = [{transform_indices = @transform_0, window_bounds = array<i64: 8, 384>}, {transform_indices = @transform_1, window_bounds = array<i64: 384, 128>}, {transform_indices = @transform_2, window_bounds = array<i64: 8, 128>}]} {
    %c0_i32 = arith.constant 0 : i32
    %0 = arith.cmpi eq, %arg2, %c0_i32 : i32
    %1 = arith.extui %0 : i1 to i32
    %c0_i32_0 = arith.constant 0 : i32
    %2 = arith.cmpi ne, %1, %c0_i32_0 : i32
    scf.if %2 {
      %cst_9 = arith.constant 0.000000e+00 : f32
      %12 = vector.broadcast %cst_9 : f32 to vector<8x128xf32>
      %c0_10 = arith.constant 0 : index
      %c0_11 = arith.constant 0 : index
      %13 = vector.load %arg6[%c0_10, %c0_11] : memref<8x128xf32, #tpu.memory_space<vmem>>, vector<8x128xf32>
      tpu.vector_store %arg6[%c0_10, %c0_11], %12 {strides = array<i32>} : memref<8x128xf32, #tpu.memory_space<vmem>>, vector<8x128xf32>,
    } else {
    }
    %c0 = arith.constant 0 : index
    %c0_1 = arith.constant 0 : index
    %3 = vector.load %arg6[%c0, %c0_1] : memref<8x128xf32, #tpu.memory_space<vmem>>, vector<8x128xf32>
    %c0_2 = arith.constant 0 : index
    %c0_3 = arith.constant 0 : index
    %4 = vector.load %arg3[%c0_2, %c0_3] : memref<8x384xbf16, #tpu.memory_space<vmem>>, vector<8x384xbf16>
    %c0_4 = arith.constant 0 : index
    %c0_5 = arith.constant 0 : index
    %5 = vector.load %arg4[%c0_4, %c0_5] : memref<384x128xbf16, #tpu.memory_space<vmem>>, vector<384x128xbf16>
    %cst = arith.constant dense<0.000000e+00> : vector<8x128xf32>
    %6 = tpu.matmul %4, %5, %cst {dimension_numbers = #tpu.dot_dimension_numbers<[1], [0], [0], [1], [0, 0, 1, 1], [], []>} : vector<8x384xbf16>, vector<384x128xbf16>, vector<8x128xf32> -> vector<8x128xf32>
    %7 = arith.addf %3, %6 : vector<8x128xf32>
    %c0_6 = arith.constant 0 : index
    %c0_7 = arith.constant 0 : index
    %8 = vector.load %arg6[%c0_6, %c0_7] : memref<8x128xf32, #tpu.memory_space<vmem>>, vector<8x128xf32>
    tpu.vector_store %arg6[%c0_6, %c0_7], %7 {strides = array<i32>} : memref<8x128xf32, #tpu.memory_space<vmem>>, vector<8x128xf32>,
    %c2_i32 = arith.constant 2 : i32
    %9 = arith.cmpi eq, %arg2, %c2_i32 : i32
    %10 = arith.extui %9 : i1 to i32
    %c0_i32_8 = arith.constant 0 : i32
    %11 = arith.cmpi ne, %10, %c0_i32_8 : i32
    scf.if %11 {
      %c0_9 = arith.constant 0 : index
      %c0_10 = arith.constant 0 : index
      %12 = vector.load %arg6[%c0_9, %c0_10] : memref<8x128xf32, #tpu.memory_space<vmem>>, vector<8x128xf32>
      %c0_11 = arith.constant 0 : index
      %c0_12 = arith.constant 0 : index
      %13 = vector.load %arg5[%c0_11, %c0_12] : memref<8x128xf32, #tpu.memory_space<vmem>>, vector<8x128xf32>
      tpu.vector_store %arg5[%c0_11, %c0_12], %12 {strides = array<i32>} : memref<8x128xf32, #tpu.memory_space<vmem>>, vector<8x128xf32>,
    } else {
    }
    return
  }
  func.func @transform_0(%arg0: i32, %arg1: i32, %arg2: i32) -> (i32, i32) {
    %c0_i32 = arith.constant 0 : i32
    return %arg0, %arg2 : i32, i32
  }
  func.func @transform_1(%arg0: i32, %arg1: i32, %arg2: i32) -> (i32, i32) {
    %c0_i32 = arith.constant 0 : i32
    return %arg2, %arg1 : i32, i32
  }
  func.func @transform_2(%arg0: i32, %arg1: i32, %arg2: i32) -> (i32, i32) {
    %c0_i32 = arith.constant 0 : i32
    return %arg0, %arg1 : i32, i32
  }
}

module attributes {stable_mosaic.version = 11 : i64} {
  func.func @_bn_relu_kernel(%arg0: i32, %arg1: memref<8x128xf32, #tpu.memory_space<vmem>>, %arg2: memref<1x128xf32, #tpu.memory_space<vmem>>, %arg3: memref<1x128xf32, #tpu.memory_space<vmem>>, %arg4: memref<8x128xf32, #tpu.memory_space<vmem>>) attributes {dimension_semantics = [#tpu.dimension_semantics<parallel>], iteration_bounds = array<i64: 1>, scalar_prefetch = 0 : i64, scratch_operands = 0 : i64, tpu.core_type = #tpu.core_type<tc>, window_params = [{transform_indices = @transform_0, window_bounds = array<i64: 8, 128>}, {pipeline_mode = #tpu.pipeline_mode<synchronous>, transform_indices = @transform_1, window_bounds = array<i64: 1, 128>}, {pipeline_mode = #tpu.pipeline_mode<synchronous>, transform_indices = @transform_2, window_bounds = array<i64: 1, 128>}, {transform_indices = @transform_3, window_bounds = array<i64: 8, 128>}]} {
    %c0 = arith.constant 0 : index
    %c0_0 = arith.constant 0 : index
    %0 = vector.load %arg1[%c0, %c0_0] : memref<8x128xf32, #tpu.memory_space<vmem>>, vector<8x128xf32>
    %c0_1 = arith.constant 0 : index
    %c0_2 = arith.constant 0 : index
    %1 = vector.load %arg2[%c0_1, %c0_2] : memref<1x128xf32, #tpu.memory_space<vmem>>, vector<1x128xf32>
    %2 = vector.broadcast %1 : vector<1x128xf32> to vector<8x128xf32>
    %3 = arith.mulf %0, %2 : vector<8x128xf32>
    %c0_3 = arith.constant 0 : index
    %c0_4 = arith.constant 0 : index
    %4 = vector.load %arg3[%c0_3, %c0_4] : memref<1x128xf32, #tpu.memory_space<vmem>>, vector<1x128xf32>
    %5 = vector.broadcast %4 : vector<1x128xf32> to vector<8x128xf32>
    %6 = arith.addf %3, %5 : vector<8x128xf32>
    %cst = arith.constant 0.000000e+00 : f32
    %7 = vector.broadcast %cst : f32 to vector<8x128xf32>
    %8 = arith.maximumf %6, %7 : vector<8x128xf32>
    %c0_5 = arith.constant 0 : index
    %c0_6 = arith.constant 0 : index
    %9 = vector.load %arg4[%c0_5, %c0_6] : memref<8x128xf32, #tpu.memory_space<vmem>>, vector<8x128xf32>
    tpu.vector_store %arg4[%c0_5, %c0_6], %8 {strides = array<i32>} : memref<8x128xf32, #tpu.memory_space<vmem>>, vector<8x128xf32>,
    return
  }
  func.func @transform_0(%arg0: i32) -> (i32, i32) {
    %c0_i32 = arith.constant 0 : i32
    %c0_i32_0 = arith.constant 0 : i32
    return %arg0, %c0_i32 : i32, i32
  }
  func.func @transform_1(%arg0: i32) -> (i32, i32) {
    %c0_i32 = arith.constant 0 : i32
    %c0_i32_0 = arith.constant 0 : i32
    %c0_i32_1 = arith.constant 0 : i32
    return %c0_i32, %c0_i32_0 : i32, i32
  }
  func.func @transform_2(%arg0: i32) -> (i32, i32) {
    %c0_i32 = arith.constant 0 : i32
    %c0_i32_0 = arith.constant 0 : i32
    %c0_i32_1 = arith.constant 0 : i32
    return %c0_i32, %c0_i32_0 : i32, i32
  }
  func.func @transform_3(%arg0: i32) -> (i32, i32) {
    %c0_i32 = arith.constant 0 : i32
    %c0_i32_0 = arith.constant 0 : i32
    return %arg0, %c0_i32 : i32, i32
  }
}

module attributes {stable_mosaic.version = 11 : i64} {
  func.func @_matmul_kernel(%arg0: i32, %arg1: i32, %arg2: i32, %arg3: memref<8x128xbf16, #tpu.memory_space<vmem>>, %arg4: memref<128x128xbf16, #tpu.memory_space<vmem>>, %arg5: memref<8x128xf32, #tpu.memory_space<vmem>>, %arg6: memref<8x128xf32, #tpu.memory_space<vmem>>) attributes {dimension_semantics = [#tpu.dimension_semantics<parallel>, #tpu.dimension_semantics<parallel>, #tpu.dimension_semantics<arbitrary>], iteration_bounds = array<i64: 1, 1, 1>, scalar_prefetch = 0 : i64, scratch_operands = 1 : i64, tpu.core_type = #tpu.core_type<tc>, window_params = [{transform_indices = @transform_0, window_bounds = array<i64: 8, 128>}, {transform_indices = @transform_1, window_bounds = array<i64: 128, 128>}, {transform_indices = @transform_2, window_bounds = array<i64: 8, 128>}]} {
    %c0_i32 = arith.constant 0 : i32
    %0 = arith.cmpi eq, %arg2, %c0_i32 : i32
    %1 = arith.extui %0 : i1 to i32
    %c0_i32_0 = arith.constant 0 : i32
    %2 = arith.cmpi ne, %1, %c0_i32_0 : i32
    scf.if %2 {
      %cst_10 = arith.constant 0.000000e+00 : f32
      %12 = vector.broadcast %cst_10 : f32 to vector<8x128xf32>
      %c0_11 = arith.constant 0 : index
      %c0_12 = arith.constant 0 : index
      %13 = vector.load %arg6[%c0_11, %c0_12] : memref<8x128xf32, #tpu.memory_space<vmem>>, vector<8x128xf32>
      tpu.vector_store %arg6[%c0_11, %c0_12], %12 {strides = array<i32>} : memref<8x128xf32, #tpu.memory_space<vmem>>, vector<8x128xf32>,
    } else {
    }
    %c0 = arith.constant 0 : index
    %c0_1 = arith.constant 0 : index
    %3 = vector.load %arg6[%c0, %c0_1] : memref<8x128xf32, #tpu.memory_space<vmem>>, vector<8x128xf32>
    %c0_2 = arith.constant 0 : index
    %c0_3 = arith.constant 0 : index
    %4 = vector.load %arg3[%c0_2, %c0_3] : memref<8x128xbf16, #tpu.memory_space<vmem>>, vector<8x128xbf16>
    %c0_4 = arith.constant 0 : index
    %c0_5 = arith.constant 0 : index
    %5 = vector.load %arg4[%c0_4, %c0_5] : memref<128x128xbf16, #tpu.memory_space<vmem>>, vector<128x128xbf16>
    %cst = arith.constant dense<0.000000e+00> : vector<8x128xf32>
    %6 = tpu.matmul %4, %5, %cst {dimension_numbers = #tpu.dot_dimension_numbers<[1], [0], [0], [1], [0, 0, 1, 1], [], []>} : vector<8x128xbf16>, vector<128x128xbf16>, vector<8x128xf32> -> vector<8x128xf32>
    %7 = arith.addf %3, %6 : vector<8x128xf32>
    %c0_6 = arith.constant 0 : index
    %c0_7 = arith.constant 0 : index
    %8 = vector.load %arg6[%c0_6, %c0_7] : memref<8x128xf32, #tpu.memory_space<vmem>>, vector<8x128xf32>
    tpu.vector_store %arg6[%c0_6, %c0_7], %7 {strides = array<i32>} : memref<8x128xf32, #tpu.memory_space<vmem>>, vector<8x128xf32>,
    %c0_i32_8 = arith.constant 0 : i32
    %9 = arith.cmpi eq, %arg2, %c0_i32_8 : i32
    %10 = arith.extui %9 : i1 to i32
    %c0_i32_9 = arith.constant 0 : i32
    %11 = arith.cmpi ne, %10, %c0_i32_9 : i32
    scf.if %11 {
      %c0_10 = arith.constant 0 : index
      %c0_11 = arith.constant 0 : index
      %12 = vector.load %arg6[%c0_10, %c0_11] : memref<8x128xf32, #tpu.memory_space<vmem>>, vector<8x128xf32>
      %c0_12 = arith.constant 0 : index
      %c0_13 = arith.constant 0 : index
      %13 = vector.load %arg5[%c0_12, %c0_13] : memref<8x128xf32, #tpu.memory_space<vmem>>, vector<8x128xf32>
      tpu.vector_store %arg5[%c0_12, %c0_13], %12 {strides = array<i32>} : memref<8x128xf32, #tpu.memory_space<vmem>>, vector<8x128xf32>,
    } else {
    }
    return
  }
  func.func @transform_0(%arg0: i32, %arg1: i32, %arg2: i32) -> (i32, i32) {
    %c0_i32 = arith.constant 0 : i32
    return %arg0, %arg2 : i32, i32
  }
  func.func @transform_1(%arg0: i32, %arg1: i32, %arg2: i32) -> (i32, i32) {
    %c0_i32 = arith.constant 0 : i32
    return %arg2, %arg1 : i32, i32
  }
  func.func @transform_2(%arg0: i32, %arg1: i32, %arg2: i32) -> (i32, i32) {
    %c0_i32 = arith.constant 0 : i32
    return %arg0, %arg1 : i32, i32
  }
}

module attributes {stable_mosaic.version = 11 : i64} {
  func.func @_bn_add_relu_kernel(%arg0: i32, %arg1: memref<8x128xf32, #tpu.memory_space<vmem>>, %arg2: memref<1x128xf32, #tpu.memory_space<vmem>>, %arg3: memref<1x128xf32, #tpu.memory_space<vmem>>, %arg4: memref<8x128xf32, #tpu.memory_space<vmem>>, %arg5: memref<8x128xf32, #tpu.memory_space<vmem>>) attributes {dimension_semantics = [#tpu.dimension_semantics<parallel>], iteration_bounds = array<i64: 1>, scalar_prefetch = 0 : i64, scratch_operands = 0 : i64, tpu.core_type = #tpu.core_type<tc>, window_params = [{transform_indices = @transform_0, window_bounds = array<i64: 8, 128>}, {pipeline_mode = #tpu.pipeline_mode<synchronous>, transform_indices = @transform_1, window_bounds = array<i64: 1, 128>}, {pipeline_mode = #tpu.pipeline_mode<synchronous>, transform_indices = @transform_2, window_bounds = array<i64: 1, 128>}, {transform_indices = @transform_3, window_bounds = array<i64: 8, 128>}, {transform_indices = @transform_4, window_bounds = array<i64: 8, 128>}]} {
    %c0 = arith.constant 0 : index
    %c0_0 = arith.constant 0 : index
    %0 = vector.load %arg1[%c0, %c0_0] : memref<8x128xf32, #tpu.memory_space<vmem>>, vector<8x128xf32>
    %c0_1 = arith.constant 0 : index
    %c0_2 = arith.constant 0 : index
    %1 = vector.load %arg2[%c0_1, %c0_2] : memref<1x128xf32, #tpu.memory_space<vmem>>, vector<1x128xf32>
    %2 = vector.broadcast %1 : vector<1x128xf32> to vector<8x128xf32>
    %3 = arith.mulf %0, %2 : vector<8x128xf32>
    %c0_3 = arith.constant 0 : index
    %c0_4 = arith.constant 0 : index
    %4 = vector.load %arg3[%c0_3, %c0_4] : memref<1x128xf32, #tpu.memory_space<vmem>>, vector<1x128xf32>
    %5 = vector.broadcast %4 : vector<1x128xf32> to vector<8x128xf32>
    %6 = arith.addf %3, %5 : vector<8x128xf32>
    %c0_5 = arith.constant 0 : index
    %c0_6 = arith.constant 0 : index
    %7 = vector.load %arg4[%c0_5, %c0_6] : memref<8x128xf32, #tpu.memory_space<vmem>>, vector<8x128xf32>
    %8 = arith.addf %6, %7 : vector<8x128xf32>
    %cst = arith.constant 0.000000e+00 : f32
    %9 = vector.broadcast %cst : f32 to vector<8x128xf32>
    %10 = arith.maximumf %8, %9 : vector<8x128xf32>
    %c0_7 = arith.constant 0 : index
    %c0_8 = arith.constant 0 : index
    %11 = vector.load %arg5[%c0_7, %c0_8] : memref<8x128xf32, #tpu.memory_space<vmem>>, vector<8x128xf32>
    tpu.vector_store %arg5[%c0_7, %c0_8], %10 {strides = array<i32>} : memref<8x128xf32, #tpu.memory_space<vmem>>, vector<8x128xf32>,
    return
  }
  func.func @transform_0(%arg0: i32) -> (i32, i32) {
    %c0_i32 = arith.constant 0 : i32
    %c0_i32_0 = arith.constant 0 : i32
    return %arg0, %c0_i32 : i32, i32
  }
  func.func @transform_1(%arg0: i32) -> (i32, i32) {
    %c0_i32 = arith.constant 0 : i32
    %c0_i32_0 = arith.constant 0 : i32
    %c0_i32_1 = arith.constant 0 : i32
    return %c0_i32, %c0_i32_0 : i32, i32
  }
  func.func @transform_2(%arg0: i32) -> (i32, i32) {
    %c0_i32 = arith.constant 0 : i32
    %c0_i32_0 = arith.constant 0 : i32
    %c0_i32_1 = arith.constant 0 : i32
    return %c0_i32, %c0_i32_0 : i32, i32
  }
  func.func @transform_3(%arg0: i32) -> (i32, i32) {
    %c0_i32 = arith.constant 0 : i32
    %c0_i32_0 = arith.constant 0 : i32
    return %arg0, %c0_i32 : i32, i32
  }
  func.func @transform_4(%arg0: i32) -> (i32, i32) {
    %c0_i32 = arith.constant 0 : i32
    %c0_i32_0 = arith.constant 0 : i32
    return %arg0, %c0_i32 : i32, i32
  }
}

module attributes {stable_mosaic.version = 11 : i64} {
  func.func @_matmul_kernel(%arg0: i32, %arg1: i32, %arg2: i32, %arg3: memref<8x384xbf16, #tpu.memory_space<vmem>>, %arg4: memref<384x256xbf16, #tpu.memory_space<vmem>>, %arg5: memref<8x256xf32, #tpu.memory_space<vmem>>, %arg6: memref<8x256xf32, #tpu.memory_space<vmem>>) attributes {dimension_semantics = [#tpu.dimension_semantics<parallel>, #tpu.dimension_semantics<parallel>, #tpu.dimension_semantics<arbitrary>], iteration_bounds = array<i64: 1, 1, 3>, scalar_prefetch = 0 : i64, scratch_operands = 1 : i64, tpu.core_type = #tpu.core_type<tc>, window_params = [{transform_indices = @transform_0, window_bounds = array<i64: 8, 384>}, {transform_indices = @transform_1, window_bounds = array<i64: 384, 256>}, {transform_indices = @transform_2, window_bounds = array<i64: 8, 256>}]} {
    %c0_i32 = arith.constant 0 : i32
    %0 = arith.cmpi eq, %arg2, %c0_i32 : i32
    %1 = arith.extui %0 : i1 to i32
    %c0_i32_0 = arith.constant 0 : i32
    %2 = arith.cmpi ne, %1, %c0_i32_0 : i32
    scf.if %2 {
      %cst_9 = arith.constant 0.000000e+00 : f32
      %12 = vector.broadcast %cst_9 : f32 to vector<8x256xf32>
      %c0_10 = arith.constant 0 : index
      %c0_11 = arith.constant 0 : index
      %13 = vector.load %arg6[%c0_10, %c0_11] : memref<8x256xf32, #tpu.memory_space<vmem>>, vector<8x256xf32>
      tpu.vector_store %arg6[%c0_10, %c0_11], %12 {strides = array<i32>} : memref<8x256xf32, #tpu.memory_space<vmem>>, vector<8x256xf32>,
    } else {
    }
    %c0 = arith.constant 0 : index
    %c0_1 = arith.constant 0 : index
    %3 = vector.load %arg6[%c0, %c0_1] : memref<8x256xf32, #tpu.memory_space<vmem>>, vector<8x256xf32>
    %c0_2 = arith.constant 0 : index
    %c0_3 = arith.constant 0 : index
    %4 = vector.load %arg3[%c0_2, %c0_3] : memref<8x384xbf16, #tpu.memory_space<vmem>>, vector<8x384xbf16>
    %c0_4 = arith.constant 0 : index
    %c0_5 = arith.constant 0 : index
    %5 = vector.load %arg4[%c0_4, %c0_5] : memref<384x256xbf16, #tpu.memory_space<vmem>>, vector<384x256xbf16>
    %cst = arith.constant dense<0.000000e+00> : vector<8x256xf32>
    %6 = tpu.matmul %4, %5, %cst {dimension_numbers = #tpu.dot_dimension_numbers<[1], [0], [0], [1], [0, 0, 1, 1], [], []>} : vector<8x384xbf16>, vector<384x256xbf16>, vector<8x256xf32> -> vector<8x256xf32>
    %7 = arith.addf %3, %6 : vector<8x256xf32>
    %c0_6 = arith.constant 0 : index
    %c0_7 = arith.constant 0 : index
    %8 = vector.load %arg6[%c0_6, %c0_7] : memref<8x256xf32, #tpu.memory_space<vmem>>, vector<8x256xf32>
    tpu.vector_store %arg6[%c0_6, %c0_7], %7 {strides = array<i32>} : memref<8x256xf32, #tpu.memory_space<vmem>>, vector<8x256xf32>,
    %c2_i32 = arith.constant 2 : i32
    %9 = arith.cmpi eq, %arg2, %c2_i32 : i32
    %10 = arith.extui %9 : i1 to i32
    %c0_i32_8 = arith.constant 0 : i32
    %11 = arith.cmpi ne, %10, %c0_i32_8 : i32
    scf.if %11 {
      %c0_9 = arith.constant 0 : index
      %c0_10 = arith.constant 0 : index
      %12 = vector.load %arg6[%c0_9, %c0_10] : memref<8x256xf32, #tpu.memory_space<vmem>>, vector<8x256xf32>
      %c0_11 = arith.constant 0 : index
      %c0_12 = arith.constant 0 : index
      %13 = vector.load %arg5[%c0_11, %c0_12] : memref<8x256xf32, #tpu.memory_space<vmem>>, vector<8x256xf32>
      tpu.vector_store %arg5[%c0_11, %c0_12], %12 {strides = array<i32>} : memref<8x256xf32, #tpu.memory_space<vmem>>, vector<8x256xf32>,
    } else {
    }
    return
  }
  func.func @transform_0(%arg0: i32, %arg1: i32, %arg2: i32) -> (i32, i32) {
    %c0_i32 = arith.constant 0 : i32
    return %arg0, %arg2 : i32, i32
  }
  func.func @transform_1(%arg0: i32, %arg1: i32, %arg2: i32) -> (i32, i32) {
    %c0_i32 = arith.constant 0 : i32
    return %arg2, %arg1 : i32, i32
  }
  func.func @transform_2(%arg0: i32, %arg1: i32, %arg2: i32) -> (i32, i32) {
    %c0_i32 = arith.constant 0 : i32
    return %arg0, %arg1 : i32, i32
  }
}

module attributes {stable_mosaic.version = 11 : i64} {
  func.func @_bn_relu_kernel(%arg0: i32, %arg1: memref<8x256xf32, #tpu.memory_space<vmem>>, %arg2: memref<1x256xf32, #tpu.memory_space<vmem>>, %arg3: memref<1x256xf32, #tpu.memory_space<vmem>>, %arg4: memref<8x256xf32, #tpu.memory_space<vmem>>) attributes {dimension_semantics = [#tpu.dimension_semantics<parallel>], iteration_bounds = array<i64: 1>, scalar_prefetch = 0 : i64, scratch_operands = 0 : i64, tpu.core_type = #tpu.core_type<tc>, window_params = [{transform_indices = @transform_0, window_bounds = array<i64: 8, 256>}, {pipeline_mode = #tpu.pipeline_mode<synchronous>, transform_indices = @transform_1, window_bounds = array<i64: 1, 256>}, {pipeline_mode = #tpu.pipeline_mode<synchronous>, transform_indices = @transform_2, window_bounds = array<i64: 1, 256>}, {transform_indices = @transform_3, window_bounds = array<i64: 8, 256>}]} {
    %c0 = arith.constant 0 : index
    %c0_0 = arith.constant 0 : index
    %0 = vector.load %arg1[%c0, %c0_0] : memref<8x256xf32, #tpu.memory_space<vmem>>, vector<8x256xf32>
    %c0_1 = arith.constant 0 : index
    %c0_2 = arith.constant 0 : index
    %1 = vector.load %arg2[%c0_1, %c0_2] : memref<1x256xf32, #tpu.memory_space<vmem>>, vector<1x256xf32>
    %2 = vector.broadcast %1 : vector<1x256xf32> to vector<8x256xf32>
    %3 = arith.mulf %0, %2 : vector<8x256xf32>
    %c0_3 = arith.constant 0 : index
    %c0_4 = arith.constant 0 : index
    %4 = vector.load %arg3[%c0_3, %c0_4] : memref<1x256xf32, #tpu.memory_space<vmem>>, vector<1x256xf32>
    %5 = vector.broadcast %4 : vector<1x256xf32> to vector<8x256xf32>
    %6 = arith.addf %3, %5 : vector<8x256xf32>
    %cst = arith.constant 0.000000e+00 : f32
    %7 = vector.broadcast %cst : f32 to vector<8x256xf32>
    %8 = arith.maximumf %6, %7 : vector<8x256xf32>
    %c0_5 = arith.constant 0 : index
    %c0_6 = arith.constant 0 : index
    %9 = vector.load %arg4[%c0_5, %c0_6] : memref<8x256xf32, #tpu.memory_space<vmem>>, vector<8x256xf32>
    tpu.vector_store %arg4[%c0_5, %c0_6], %8 {strides = array<i32>} : memref<8x256xf32, #tpu.memory_space<vmem>>, vector<8x256xf32>,
    return
  }
  func.func @transform_0(%arg0: i32) -> (i32, i32) {
    %c0_i32 = arith.constant 0 : i32
    %c0_i32_0 = arith.constant 0 : i32
    return %arg0, %c0_i32 : i32, i32
  }
  func.func @transform_1(%arg0: i32) -> (i32, i32) {
    %c0_i32 = arith.constant 0 : i32
    %c0_i32_0 = arith.constant 0 : i32
    %c0_i32_1 = arith.constant 0 : i32
    return %c0_i32, %c0_i32_0 : i32, i32
  }
  func.func @transform_2(%arg0: i32) -> (i32, i32) {
    %c0_i32 = arith.constant 0 : i32
    %c0_i32_0 = arith.constant 0 : i32
    %c0_i32_1 = arith.constant 0 : i32
    return %c0_i32, %c0_i32_0 : i32, i32
  }
  func.func @transform_3(%arg0: i32) -> (i32, i32) {
    %c0_i32 = arith.constant 0 : i32
    %c0_i32_0 = arith.constant 0 : i32
    return %arg0, %c0_i32 : i32, i32
  }
}

module attributes {stable_mosaic.version = 11 : i64} {
  func.func @_matmul_kernel(%arg0: i32, %arg1: i32, %arg2: i32, %arg3: memref<8x384xbf16, #tpu.memory_space<vmem>>, %arg4: memref<384x256xbf16, #tpu.memory_space<vmem>>, %arg5: memref<8x256xf32, #tpu.memory_space<vmem>>, %arg6: memref<8x256xf32, #tpu.memory_space<vmem>>) attributes {dimension_semantics = [#tpu.dimension_semantics<parallel>, #tpu.dimension_semantics<parallel>, #tpu.dimension_semantics<arbitrary>], iteration_bounds = array<i64: 1, 1, 6>, scalar_prefetch = 0 : i64, scratch_operands = 1 : i64, tpu.core_type = #tpu.core_type<tc>, window_params = [{transform_indices = @transform_0, window_bounds = array<i64: 8, 384>}, {transform_indices = @transform_1, window_bounds = array<i64: 384, 256>}, {transform_indices = @transform_2, window_bounds = array<i64: 8, 256>}]} {
    %c0_i32 = arith.constant 0 : i32
    %0 = arith.cmpi eq, %arg2, %c0_i32 : i32
    %1 = arith.extui %0 : i1 to i32
    %c0_i32_0 = arith.constant 0 : i32
    %2 = arith.cmpi ne, %1, %c0_i32_0 : i32
    scf.if %2 {
      %cst_9 = arith.constant 0.000000e+00 : f32
      %12 = vector.broadcast %cst_9 : f32 to vector<8x256xf32>
      %c0_10 = arith.constant 0 : index
      %c0_11 = arith.constant 0 : index
      %13 = vector.load %arg6[%c0_10, %c0_11] : memref<8x256xf32, #tpu.memory_space<vmem>>, vector<8x256xf32>
      tpu.vector_store %arg6[%c0_10, %c0_11], %12 {strides = array<i32>} : memref<8x256xf32, #tpu.memory_space<vmem>>, vector<8x256xf32>,
    } else {
    }
    %c0 = arith.constant 0 : index
    %c0_1 = arith.constant 0 : index
    %3 = vector.load %arg6[%c0, %c0_1] : memref<8x256xf32, #tpu.memory_space<vmem>>, vector<8x256xf32>
    %c0_2 = arith.constant 0 : index
    %c0_3 = arith.constant 0 : index
    %4 = vector.load %arg3[%c0_2, %c0_3] : memref<8x384xbf16, #tpu.memory_space<vmem>>, vector<8x384xbf16>
    %c0_4 = arith.constant 0 : index
    %c0_5 = arith.constant 0 : index
    %5 = vector.load %arg4[%c0_4, %c0_5] : memref<384x256xbf16, #tpu.memory_space<vmem>>, vector<384x256xbf16>
    %cst = arith.constant dense<0.000000e+00> : vector<8x256xf32>
    %6 = tpu.matmul %4, %5, %cst {dimension_numbers = #tpu.dot_dimension_numbers<[1], [0], [0], [1], [0, 0, 1, 1], [], []>} : vector<8x384xbf16>, vector<384x256xbf16>, vector<8x256xf32> -> vector<8x256xf32>
    %7 = arith.addf %3, %6 : vector<8x256xf32>
    %c0_6 = arith.constant 0 : index
    %c0_7 = arith.constant 0 : index
    %8 = vector.load %arg6[%c0_6, %c0_7] : memref<8x256xf32, #tpu.memory_space<vmem>>, vector<8x256xf32>
    tpu.vector_store %arg6[%c0_6, %c0_7], %7 {strides = array<i32>} : memref<8x256xf32, #tpu.memory_space<vmem>>, vector<8x256xf32>,
    %c5_i32 = arith.constant 5 : i32
    %9 = arith.cmpi eq, %arg2, %c5_i32 : i32
    %10 = arith.extui %9 : i1 to i32
    %c0_i32_8 = arith.constant 0 : i32
    %11 = arith.cmpi ne, %10, %c0_i32_8 : i32
    scf.if %11 {
      %c0_9 = arith.constant 0 : index
      %c0_10 = arith.constant 0 : index
      %12 = vector.load %arg6[%c0_9, %c0_10] : memref<8x256xf32, #tpu.memory_space<vmem>>, vector<8x256xf32>
      %c0_11 = arith.constant 0 : index
      %c0_12 = arith.constant 0 : index
      %13 = vector.load %arg5[%c0_11, %c0_12] : memref<8x256xf32, #tpu.memory_space<vmem>>, vector<8x256xf32>
      tpu.vector_store %arg5[%c0_11, %c0_12], %12 {strides = array<i32>} : memref<8x256xf32, #tpu.memory_space<vmem>>, vector<8x256xf32>,
    } else {
    }
    return
  }
  func.func @transform_0(%arg0: i32, %arg1: i32, %arg2: i32) -> (i32, i32) {
    %c0_i32 = arith.constant 0 : i32
    return %arg0, %arg2 : i32, i32
  }
  func.func @transform_1(%arg0: i32, %arg1: i32, %arg2: i32) -> (i32, i32) {
    %c0_i32 = arith.constant 0 : i32
    return %arg2, %arg1 : i32, i32
  }
  func.func @transform_2(%arg0: i32, %arg1: i32, %arg2: i32) -> (i32, i32) {
    %c0_i32 = arith.constant 0 : i32
    return %arg0, %arg1 : i32, i32
  }
}

module attributes {stable_mosaic.version = 11 : i64} {
  func.func @_matmul_kernel(%arg0: i32, %arg1: i32, %arg2: i32, %arg3: memref<8x128xbf16, #tpu.memory_space<vmem>>, %arg4: memref<128x256xbf16, #tpu.memory_space<vmem>>, %arg5: memref<8x256xf32, #tpu.memory_space<vmem>>, %arg6: memref<8x256xf32, #tpu.memory_space<vmem>>) attributes {dimension_semantics = [#tpu.dimension_semantics<parallel>, #tpu.dimension_semantics<parallel>, #tpu.dimension_semantics<arbitrary>], iteration_bounds = array<i64: 1, 1, 1>, scalar_prefetch = 0 : i64, scratch_operands = 1 : i64, tpu.core_type = #tpu.core_type<tc>, window_params = [{transform_indices = @transform_0, window_bounds = array<i64: 8, 128>}, {transform_indices = @transform_1, window_bounds = array<i64: 128, 256>}, {transform_indices = @transform_2, window_bounds = array<i64: 8, 256>}]} {
    %c0_i32 = arith.constant 0 : i32
    %0 = arith.cmpi eq, %arg2, %c0_i32 : i32
    %1 = arith.extui %0 : i1 to i32
    %c0_i32_0 = arith.constant 0 : i32
    %2 = arith.cmpi ne, %1, %c0_i32_0 : i32
    scf.if %2 {
      %cst_10 = arith.constant 0.000000e+00 : f32
      %12 = vector.broadcast %cst_10 : f32 to vector<8x256xf32>
      %c0_11 = arith.constant 0 : index
      %c0_12 = arith.constant 0 : index
      %13 = vector.load %arg6[%c0_11, %c0_12] : memref<8x256xf32, #tpu.memory_space<vmem>>, vector<8x256xf32>
      tpu.vector_store %arg6[%c0_11, %c0_12], %12 {strides = array<i32>} : memref<8x256xf32, #tpu.memory_space<vmem>>, vector<8x256xf32>,
    } else {
    }
    %c0 = arith.constant 0 : index
    %c0_1 = arith.constant 0 : index
    %3 = vector.load %arg6[%c0, %c0_1] : memref<8x256xf32, #tpu.memory_space<vmem>>, vector<8x256xf32>
    %c0_2 = arith.constant 0 : index
    %c0_3 = arith.constant 0 : index
    %4 = vector.load %arg3[%c0_2, %c0_3] : memref<8x128xbf16, #tpu.memory_space<vmem>>, vector<8x128xbf16>
    %c0_4 = arith.constant 0 : index
    %c0_5 = arith.constant 0 : index
    %5 = vector.load %arg4[%c0_4, %c0_5] : memref<128x256xbf16, #tpu.memory_space<vmem>>, vector<128x256xbf16>
    %cst = arith.constant dense<0.000000e+00> : vector<8x256xf32>
    %6 = tpu.matmul %4, %5, %cst {dimension_numbers = #tpu.dot_dimension_numbers<[1], [0], [0], [1], [0, 0, 1, 1], [], []>} : vector<8x128xbf16>, vector<128x256xbf16>, vector<8x256xf32> -> vector<8x256xf32>
    %7 = arith.addf %3, %6 : vector<8x256xf32>
    %c0_6 = arith.constant 0 : index
    %c0_7 = arith.constant 0 : index
    %8 = vector.load %arg6[%c0_6, %c0_7] : memref<8x256xf32, #tpu.memory_space<vmem>>, vector<8x256xf32>
    tpu.vector_store %arg6[%c0_6, %c0_7], %7 {strides = array<i32>} : memref<8x256xf32, #tpu.memory_space<vmem>>, vector<8x256xf32>,
    %c0_i32_8 = arith.constant 0 : i32
    %9 = arith.cmpi eq, %arg2, %c0_i32_8 : i32
    %10 = arith.extui %9 : i1 to i32
    %c0_i32_9 = arith.constant 0 : i32
    %11 = arith.cmpi ne, %10, %c0_i32_9 : i32
    scf.if %11 {
      %c0_10 = arith.constant 0 : index
      %c0_11 = arith.constant 0 : index
      %12 = vector.load %arg6[%c0_10, %c0_11] : memref<8x256xf32, #tpu.memory_space<vmem>>, vector<8x256xf32>
      %c0_12 = arith.constant 0 : index
      %c0_13 = arith.constant 0 : index
      %13 = vector.load %arg5[%c0_12, %c0_13] : memref<8x256xf32, #tpu.memory_space<vmem>>, vector<8x256xf32>
      tpu.vector_store %arg5[%c0_12, %c0_13], %12 {strides = array<i32>} : memref<8x256xf32, #tpu.memory_space<vmem>>, vector<8x256xf32>,
    } else {
    }
    return
  }
  func.func @transform_0(%arg0: i32, %arg1: i32, %arg2: i32) -> (i32, i32) {
    %c0_i32 = arith.constant 0 : i32
    return %arg0, %arg2 : i32, i32
  }
  func.func @transform_1(%arg0: i32, %arg1: i32, %arg2: i32) -> (i32, i32) {
    %c0_i32 = arith.constant 0 : i32
    return %arg2, %arg1 : i32, i32
  }
  func.func @transform_2(%arg0: i32, %arg1: i32, %arg2: i32) -> (i32, i32) {
    %c0_i32 = arith.constant 0 : i32
    return %arg0, %arg1 : i32, i32
  }
}

module attributes {stable_mosaic.version = 11 : i64} {
  func.func @_bn_add_relu_kernel(%arg0: i32, %arg1: memref<8x256xf32, #tpu.memory_space<vmem>>, %arg2: memref<1x256xf32, #tpu.memory_space<vmem>>, %arg3: memref<1x256xf32, #tpu.memory_space<vmem>>, %arg4: memref<8x256xf32, #tpu.memory_space<vmem>>, %arg5: memref<8x256xf32, #tpu.memory_space<vmem>>) attributes {dimension_semantics = [#tpu.dimension_semantics<parallel>], iteration_bounds = array<i64: 1>, scalar_prefetch = 0 : i64, scratch_operands = 0 : i64, tpu.core_type = #tpu.core_type<tc>, window_params = [{transform_indices = @transform_0, window_bounds = array<i64: 8, 256>}, {pipeline_mode = #tpu.pipeline_mode<synchronous>, transform_indices = @transform_1, window_bounds = array<i64: 1, 256>}, {pipeline_mode = #tpu.pipeline_mode<synchronous>, transform_indices = @transform_2, window_bounds = array<i64: 1, 256>}, {transform_indices = @transform_3, window_bounds = array<i64: 8, 256>}, {transform_indices = @transform_4, window_bounds = array<i64: 8, 256>}]} {
    %c0 = arith.constant 0 : index
    %c0_0 = arith.constant 0 : index
    %0 = vector.load %arg1[%c0, %c0_0] : memref<8x256xf32, #tpu.memory_space<vmem>>, vector<8x256xf32>
    %c0_1 = arith.constant 0 : index
    %c0_2 = arith.constant 0 : index
    %1 = vector.load %arg2[%c0_1, %c0_2] : memref<1x256xf32, #tpu.memory_space<vmem>>, vector<1x256xf32>
    %2 = vector.broadcast %1 : vector<1x256xf32> to vector<8x256xf32>
    %3 = arith.mulf %0, %2 : vector<8x256xf32>
    %c0_3 = arith.constant 0 : index
    %c0_4 = arith.constant 0 : index
    %4 = vector.load %arg3[%c0_3, %c0_4] : memref<1x256xf32, #tpu.memory_space<vmem>>, vector<1x256xf32>
    %5 = vector.broadcast %4 : vector<1x256xf32> to vector<8x256xf32>
    %6 = arith.addf %3, %5 : vector<8x256xf32>
    %c0_5 = arith.constant 0 : index
    %c0_6 = arith.constant 0 : index
    %7 = vector.load %arg4[%c0_5, %c0_6] : memref<8x256xf32, #tpu.memory_space<vmem>>, vector<8x256xf32>
    %8 = arith.addf %6, %7 : vector<8x256xf32>
    %cst = arith.constant 0.000000e+00 : f32
    %9 = vector.broadcast %cst : f32 to vector<8x256xf32>
    %10 = arith.maximumf %8, %9 : vector<8x256xf32>
    %c0_7 = arith.constant 0 : index
    %c0_8 = arith.constant 0 : index
    %11 = vector.load %arg5[%c0_7, %c0_8] : memref<8x256xf32, #tpu.memory_space<vmem>>, vector<8x256xf32>
    tpu.vector_store %arg5[%c0_7, %c0_8], %10 {strides = array<i32>} : memref<8x256xf32, #tpu.memory_space<vmem>>, vector<8x256xf32>,
    return
  }
  func.func @transform_0(%arg0: i32) -> (i32, i32) {
    %c0_i32 = arith.constant 0 : i32
    %c0_i32_0 = arith.constant 0 : i32
    return %arg0, %c0_i32 : i32, i32
  }
  func.func @transform_1(%arg0: i32) -> (i32, i32) {
    %c0_i32 = arith.constant 0 : i32
    %c0_i32_0 = arith.constant 0 : i32
    %c0_i32_1 = arith.constant 0 : i32
    return %c0_i32, %c0_i32_0 : i32, i32
  }
  func.func @transform_2(%arg0: i32) -> (i32, i32) {
    %c0_i32 = arith.constant 0 : i32
    %c0_i32_0 = arith.constant 0 : i32
    %c0_i32_1 = arith.constant 0 : i32
    return %c0_i32, %c0_i32_0 : i32, i32
  }
  func.func @transform_3(%arg0: i32) -> (i32, i32) {
    %c0_i32 = arith.constant 0 : i32
    %c0_i32_0 = arith.constant 0 : i32
    return %arg0, %c0_i32 : i32, i32
  }
  func.func @transform_4(%arg0: i32) -> (i32, i32) {
    %c0_i32 = arith.constant 0 : i32
    %c0_i32_0 = arith.constant 0 : i32
    return %arg0, %c0_i32 : i32, i32
  }
}

module attributes {stable_mosaic.version = 11 : i64} {
  func.func @_matmul_kernel(%arg0: i32, %arg1: i32, %arg2: i32, %arg3: memref<8x384xbf16, #tpu.memory_space<vmem>>, %arg4: memref<384x512xbf16, #tpu.memory_space<vmem>>, %arg5: memref<8x512xf32, #tpu.memory_space<vmem>>, %arg6: memref<8x512xf32, #tpu.memory_space<vmem>>) attributes {dimension_semantics = [#tpu.dimension_semantics<parallel>, #tpu.dimension_semantics<parallel>, #tpu.dimension_semantics<arbitrary>], iteration_bounds = array<i64: 1, 1, 6>, scalar_prefetch = 0 : i64, scratch_operands = 1 : i64, tpu.core_type = #tpu.core_type<tc>, window_params = [{transform_indices = @transform_0, window_bounds = array<i64: 8, 384>}, {transform_indices = @transform_1, window_bounds = array<i64: 384, 512>}, {transform_indices = @transform_2, window_bounds = array<i64: 8, 512>}]} {
    %c0_i32 = arith.constant 0 : i32
    %0 = arith.cmpi eq, %arg2, %c0_i32 : i32
    %1 = arith.extui %0 : i1 to i32
    %c0_i32_0 = arith.constant 0 : i32
    %2 = arith.cmpi ne, %1, %c0_i32_0 : i32
    scf.if %2 {
      %cst_9 = arith.constant 0.000000e+00 : f32
      %12 = vector.broadcast %cst_9 : f32 to vector<8x512xf32>
      %c0_10 = arith.constant 0 : index
      %c0_11 = arith.constant 0 : index
      %13 = vector.load %arg6[%c0_10, %c0_11] : memref<8x512xf32, #tpu.memory_space<vmem>>, vector<8x512xf32>
      tpu.vector_store %arg6[%c0_10, %c0_11], %12 {strides = array<i32>} : memref<8x512xf32, #tpu.memory_space<vmem>>, vector<8x512xf32>,
    } else {
    }
    %c0 = arith.constant 0 : index
    %c0_1 = arith.constant 0 : index
    %3 = vector.load %arg6[%c0, %c0_1] : memref<8x512xf32, #tpu.memory_space<vmem>>, vector<8x512xf32>
    %c0_2 = arith.constant 0 : index
    %c0_3 = arith.constant 0 : index
    %4 = vector.load %arg3[%c0_2, %c0_3] : memref<8x384xbf16, #tpu.memory_space<vmem>>, vector<8x384xbf16>
    %c0_4 = arith.constant 0 : index
    %c0_5 = arith.constant 0 : index
    %5 = vector.load %arg4[%c0_4, %c0_5] : memref<384x512xbf16, #tpu.memory_space<vmem>>, vector<384x512xbf16>
    %cst = arith.constant dense<0.000000e+00> : vector<8x512xf32>
    %6 = tpu.matmul %4, %5, %cst {dimension_numbers = #tpu.dot_dimension_numbers<[1], [0], [0], [1], [0, 0, 1, 1], [], []>} : vector<8x384xbf16>, vector<384x512xbf16>, vector<8x512xf32> -> vector<8x512xf32>
    %7 = arith.addf %3, %6 : vector<8x512xf32>
    %c0_6 = arith.constant 0 : index
    %c0_7 = arith.constant 0 : index
    %8 = vector.load %arg6[%c0_6, %c0_7] : memref<8x512xf32, #tpu.memory_space<vmem>>, vector<8x512xf32>
    tpu.vector_store %arg6[%c0_6, %c0_7], %7 {strides = array<i32>} : memref<8x512xf32, #tpu.memory_space<vmem>>, vector<8x512xf32>,
    %c5_i32 = arith.constant 5 : i32
    %9 = arith.cmpi eq, %arg2, %c5_i32 : i32
    %10 = arith.extui %9 : i1 to i32
    %c0_i32_8 = arith.constant 0 : i32
    %11 = arith.cmpi ne, %10, %c0_i32_8 : i32
    scf.if %11 {
      %c0_9 = arith.constant 0 : index
      %c0_10 = arith.constant 0 : index
      %12 = vector.load %arg6[%c0_9, %c0_10] : memref<8x512xf32, #tpu.memory_space<vmem>>, vector<8x512xf32>
      %c0_11 = arith.constant 0 : index
      %c0_12 = arith.constant 0 : index
      %13 = vector.load %arg5[%c0_11, %c0_12] : memref<8x512xf32, #tpu.memory_space<vmem>>, vector<8x512xf32>
      tpu.vector_store %arg5[%c0_11, %c0_12], %12 {strides = array<i32>} : memref<8x512xf32, #tpu.memory_space<vmem>>, vector<8x512xf32>,
    } else {
    }
    return
  }
  func.func @transform_0(%arg0: i32, %arg1: i32, %arg2: i32) -> (i32, i32) {
    %c0_i32 = arith.constant 0 : i32
    return %arg0, %arg2 : i32, i32
  }
  func.func @transform_1(%arg0: i32, %arg1: i32, %arg2: i32) -> (i32, i32) {
    %c0_i32 = arith.constant 0 : i32
    return %arg2, %arg1 : i32, i32
  }
  func.func @transform_2(%arg0: i32, %arg1: i32, %arg2: i32) -> (i32, i32) {
    %c0_i32 = arith.constant 0 : i32
    return %arg0, %arg1 : i32, i32
  }
}

module attributes {stable_mosaic.version = 11 : i64} {
  func.func @_bn_relu_kernel(%arg0: i32, %arg1: memref<8x512xf32, #tpu.memory_space<vmem>>, %arg2: memref<1x512xf32, #tpu.memory_space<vmem>>, %arg3: memref<1x512xf32, #tpu.memory_space<vmem>>, %arg4: memref<8x512xf32, #tpu.memory_space<vmem>>) attributes {dimension_semantics = [#tpu.dimension_semantics<parallel>], iteration_bounds = array<i64: 1>, scalar_prefetch = 0 : i64, scratch_operands = 0 : i64, tpu.core_type = #tpu.core_type<tc>, window_params = [{transform_indices = @transform_0, window_bounds = array<i64: 8, 512>}, {pipeline_mode = #tpu.pipeline_mode<synchronous>, transform_indices = @transform_1, window_bounds = array<i64: 1, 512>}, {pipeline_mode = #tpu.pipeline_mode<synchronous>, transform_indices = @transform_2, window_bounds = array<i64: 1, 512>}, {transform_indices = @transform_3, window_bounds = array<i64: 8, 512>}]} {
    %c0 = arith.constant 0 : index
    %c0_0 = arith.constant 0 : index
    %0 = vector.load %arg1[%c0, %c0_0] : memref<8x512xf32, #tpu.memory_space<vmem>>, vector<8x512xf32>
    %c0_1 = arith.constant 0 : index
    %c0_2 = arith.constant 0 : index
    %1 = vector.load %arg2[%c0_1, %c0_2] : memref<1x512xf32, #tpu.memory_space<vmem>>, vector<1x512xf32>
    %2 = vector.broadcast %1 : vector<1x512xf32> to vector<8x512xf32>
    %3 = arith.mulf %0, %2 : vector<8x512xf32>
    %c0_3 = arith.constant 0 : index
    %c0_4 = arith.constant 0 : index
    %4 = vector.load %arg3[%c0_3, %c0_4] : memref<1x512xf32, #tpu.memory_space<vmem>>, vector<1x512xf32>
    %5 = vector.broadcast %4 : vector<1x512xf32> to vector<8x512xf32>
    %6 = arith.addf %3, %5 : vector<8x512xf32>
    %cst = arith.constant 0.000000e+00 : f32
    %7 = vector.broadcast %cst : f32 to vector<8x512xf32>
    %8 = arith.maximumf %6, %7 : vector<8x512xf32>
    %c0_5 = arith.constant 0 : index
    %c0_6 = arith.constant 0 : index
    %9 = vector.load %arg4[%c0_5, %c0_6] : memref<8x512xf32, #tpu.memory_space<vmem>>, vector<8x512xf32>
    tpu.vector_store %arg4[%c0_5, %c0_6], %8 {strides = array<i32>} : memref<8x512xf32, #tpu.memory_space<vmem>>, vector<8x512xf32>,
    return
  }
  func.func @transform_0(%arg0: i32) -> (i32, i32) {
    %c0_i32 = arith.constant 0 : i32
    %c0_i32_0 = arith.constant 0 : i32
    return %arg0, %c0_i32 : i32, i32
  }
  func.func @transform_1(%arg0: i32) -> (i32, i32) {
    %c0_i32 = arith.constant 0 : i32
    %c0_i32_0 = arith.constant 0 : i32
    %c0_i32_1 = arith.constant 0 : i32
    return %c0_i32, %c0_i32_0 : i32, i32
  }
  func.func @transform_2(%arg0: i32) -> (i32, i32) {
    %c0_i32 = arith.constant 0 : i32
    %c0_i32_0 = arith.constant 0 : i32
    %c0_i32_1 = arith.constant 0 : i32
    return %c0_i32, %c0_i32_0 : i32, i32
  }
  func.func @transform_3(%arg0: i32) -> (i32, i32) {
    %c0_i32 = arith.constant 0 : i32
    %c0_i32_0 = arith.constant 0 : i32
    return %arg0, %c0_i32 : i32, i32
  }
}

module attributes {stable_mosaic.version = 11 : i64} {
  func.func @_matmul_kernel(%arg0: i32, %arg1: i32, %arg2: i32, %arg3: memref<8x512xbf16, #tpu.memory_space<vmem>>, %arg4: memref<512x512xbf16, #tpu.memory_space<vmem>>, %arg5: memref<8x512xf32, #tpu.memory_space<vmem>>, %arg6: memref<8x512xf32, #tpu.memory_space<vmem>>) attributes {dimension_semantics = [#tpu.dimension_semantics<parallel>, #tpu.dimension_semantics<parallel>, #tpu.dimension_semantics<arbitrary>], iteration_bounds = array<i64: 1, 1, 9>, scalar_prefetch = 0 : i64, scratch_operands = 1 : i64, tpu.core_type = #tpu.core_type<tc>, window_params = [{transform_indices = @transform_0, window_bounds = array<i64: 8, 512>}, {transform_indices = @transform_1, window_bounds = array<i64: 512, 512>}, {transform_indices = @transform_2, window_bounds = array<i64: 8, 512>}]} {
    %c0_i32 = arith.constant 0 : i32
    %0 = arith.cmpi eq, %arg2, %c0_i32 : i32
    %1 = arith.extui %0 : i1 to i32
    %c0_i32_0 = arith.constant 0 : i32
    %2 = arith.cmpi ne, %1, %c0_i32_0 : i32
    scf.if %2 {
      %cst_9 = arith.constant 0.000000e+00 : f32
      %12 = vector.broadcast %cst_9 : f32 to vector<8x512xf32>
      %c0_10 = arith.constant 0 : index
      %c0_11 = arith.constant 0 : index
      %13 = vector.load %arg6[%c0_10, %c0_11] : memref<8x512xf32, #tpu.memory_space<vmem>>, vector<8x512xf32>
      tpu.vector_store %arg6[%c0_10, %c0_11], %12 {strides = array<i32>} : memref<8x512xf32, #tpu.memory_space<vmem>>, vector<8x512xf32>,
    } else {
    }
    %c0 = arith.constant 0 : index
    %c0_1 = arith.constant 0 : index
    %3 = vector.load %arg6[%c0, %c0_1] : memref<8x512xf32, #tpu.memory_space<vmem>>, vector<8x512xf32>
    %c0_2 = arith.constant 0 : index
    %c0_3 = arith.constant 0 : index
    %4 = vector.load %arg3[%c0_2, %c0_3] : memref<8x512xbf16, #tpu.memory_space<vmem>>, vector<8x512xbf16>
    %c0_4 = arith.constant 0 : index
    %c0_5 = arith.constant 0 : index
    %5 = vector.load %arg4[%c0_4, %c0_5] : memref<512x512xbf16, #tpu.memory_space<vmem>>, vector<512x512xbf16>
    %cst = arith.constant dense<0.000000e+00> : vector<8x512xf32>
    %6 = tpu.matmul %4, %5, %cst {dimension_numbers = #tpu.dot_dimension_numbers<[1], [0], [0], [1], [0, 0, 1, 1], [], []>} : vector<8x512xbf16>, vector<512x512xbf16>, vector<8x512xf32> -> vector<8x512xf32>
    %7 = arith.addf %3, %6 : vector<8x512xf32>
    %c0_6 = arith.constant 0 : index
    %c0_7 = arith.constant 0 : index
    %8 = vector.load %arg6[%c0_6, %c0_7] : memref<8x512xf32, #tpu.memory_space<vmem>>, vector<8x512xf32>
    tpu.vector_store %arg6[%c0_6, %c0_7], %7 {strides = array<i32>} : memref<8x512xf32, #tpu.memory_space<vmem>>, vector<8x512xf32>,
    %c8_i32 = arith.constant 8 : i32
    %9 = arith.cmpi eq, %arg2, %c8_i32 : i32
    %10 = arith.extui %9 : i1 to i32
    %c0_i32_8 = arith.constant 0 : i32
    %11 = arith.cmpi ne, %10, %c0_i32_8 : i32
    scf.if %11 {
      %c0_9 = arith.constant 0 : index
      %c0_10 = arith.constant 0 : index
      %12 = vector.load %arg6[%c0_9, %c0_10] : memref<8x512xf32, #tpu.memory_space<vmem>>, vector<8x512xf32>
      %c0_11 = arith.constant 0 : index
      %c0_12 = arith.constant 0 : index
      %13 = vector.load %arg5[%c0_11, %c0_12] : memref<8x512xf32, #tpu.memory_space<vmem>>, vector<8x512xf32>
      tpu.vector_store %arg5[%c0_11, %c0_12], %12 {strides = array<i32>} : memref<8x512xf32, #tpu.memory_space<vmem>>, vector<8x512xf32>,
    } else {
    }
    return
  }
  func.func @transform_0(%arg0: i32, %arg1: i32, %arg2: i32) -> (i32, i32) {
    %c0_i32 = arith.constant 0 : i32
    return %arg0, %arg2 : i32, i32
  }
  func.func @transform_1(%arg0: i32, %arg1: i32, %arg2: i32) -> (i32, i32) {
    %c0_i32 = arith.constant 0 : i32
    return %arg2, %arg1 : i32, i32
  }
  func.func @transform_2(%arg0: i32, %arg1: i32, %arg2: i32) -> (i32, i32) {
    %c0_i32 = arith.constant 0 : i32
    return %arg0, %arg1 : i32, i32
  }
}

module attributes {stable_mosaic.version = 11 : i64} {
  func.func @_matmul_kernel(%arg0: i32, %arg1: i32, %arg2: i32, %arg3: memref<8x256xbf16, #tpu.memory_space<vmem>>, %arg4: memref<256x512xbf16, #tpu.memory_space<vmem>>, %arg5: memref<8x512xf32, #tpu.memory_space<vmem>>, %arg6: memref<8x512xf32, #tpu.memory_space<vmem>>) attributes {dimension_semantics = [#tpu.dimension_semantics<parallel>, #tpu.dimension_semantics<parallel>, #tpu.dimension_semantics<arbitrary>], iteration_bounds = array<i64: 1, 1, 1>, scalar_prefetch = 0 : i64, scratch_operands = 1 : i64, tpu.core_type = #tpu.core_type<tc>, window_params = [{transform_indices = @transform_0, window_bounds = array<i64: 8, 256>}, {transform_indices = @transform_1, window_bounds = array<i64: 256, 512>}, {transform_indices = @transform_2, window_bounds = array<i64: 8, 512>}]} {
    %c0_i32 = arith.constant 0 : i32
    %0 = arith.cmpi eq, %arg2, %c0_i32 : i32
    %1 = arith.extui %0 : i1 to i32
    %c0_i32_0 = arith.constant 0 : i32
    %2 = arith.cmpi ne, %1, %c0_i32_0 : i32
    scf.if %2 {
      %cst_10 = arith.constant 0.000000e+00 : f32
      %12 = vector.broadcast %cst_10 : f32 to vector<8x512xf32>
      %c0_11 = arith.constant 0 : index
      %c0_12 = arith.constant 0 : index
      %13 = vector.load %arg6[%c0_11, %c0_12] : memref<8x512xf32, #tpu.memory_space<vmem>>, vector<8x512xf32>
      tpu.vector_store %arg6[%c0_11, %c0_12], %12 {strides = array<i32>} : memref<8x512xf32, #tpu.memory_space<vmem>>, vector<8x512xf32>,
    } else {
    }
    %c0 = arith.constant 0 : index
    %c0_1 = arith.constant 0 : index
    %3 = vector.load %arg6[%c0, %c0_1] : memref<8x512xf32, #tpu.memory_space<vmem>>, vector<8x512xf32>
    %c0_2 = arith.constant 0 : index
    %c0_3 = arith.constant 0 : index
    %4 = vector.load %arg3[%c0_2, %c0_3] : memref<8x256xbf16, #tpu.memory_space<vmem>>, vector<8x256xbf16>
    %c0_4 = arith.constant 0 : index
    %c0_5 = arith.constant 0 : index
    %5 = vector.load %arg4[%c0_4, %c0_5] : memref<256x512xbf16, #tpu.memory_space<vmem>>, vector<256x512xbf16>
    %cst = arith.constant dense<0.000000e+00> : vector<8x512xf32>
    %6 = tpu.matmul %4, %5, %cst {dimension_numbers = #tpu.dot_dimension_numbers<[1], [0], [0], [1], [0, 0, 1, 1], [], []>} : vector<8x256xbf16>, vector<256x512xbf16>, vector<8x512xf32> -> vector<8x512xf32>
    %7 = arith.addf %3, %6 : vector<8x512xf32>
    %c0_6 = arith.constant 0 : index
    %c0_7 = arith.constant 0 : index
    %8 = vector.load %arg6[%c0_6, %c0_7] : memref<8x512xf32, #tpu.memory_space<vmem>>, vector<8x512xf32>
    tpu.vector_store %arg6[%c0_6, %c0_7], %7 {strides = array<i32>} : memref<8x512xf32, #tpu.memory_space<vmem>>, vector<8x512xf32>,
    %c0_i32_8 = arith.constant 0 : i32
    %9 = arith.cmpi eq, %arg2, %c0_i32_8 : i32
    %10 = arith.extui %9 : i1 to i32
    %c0_i32_9 = arith.constant 0 : i32
    %11 = arith.cmpi ne, %10, %c0_i32_9 : i32
    scf.if %11 {
      %c0_10 = arith.constant 0 : index
      %c0_11 = arith.constant 0 : index
      %12 = vector.load %arg6[%c0_10, %c0_11] : memref<8x512xf32, #tpu.memory_space<vmem>>, vector<8x512xf32>
      %c0_12 = arith.constant 0 : index
      %c0_13 = arith.constant 0 : index
      %13 = vector.load %arg5[%c0_12, %c0_13] : memref<8x512xf32, #tpu.memory_space<vmem>>, vector<8x512xf32>
      tpu.vector_store %arg5[%c0_12, %c0_13], %12 {strides = array<i32>} : memref<8x512xf32, #tpu.memory_space<vmem>>, vector<8x512xf32>,
    } else {
    }
    return
  }
  func.func @transform_0(%arg0: i32, %arg1: i32, %arg2: i32) -> (i32, i32) {
    %c0_i32 = arith.constant 0 : i32
    return %arg0, %arg2 : i32, i32
  }
  func.func @transform_1(%arg0: i32, %arg1: i32, %arg2: i32) -> (i32, i32) {
    %c0_i32 = arith.constant 0 : i32
    return %arg2, %arg1 : i32, i32
  }
  func.func @transform_2(%arg0: i32, %arg1: i32, %arg2: i32) -> (i32, i32) {
    %c0_i32 = arith.constant 0 : i32
    return %arg0, %arg1 : i32, i32
  }
}

module attributes {stable_mosaic.version = 11 : i64} {
  func.func @_bn_add_relu_kernel(%arg0: i32, %arg1: memref<8x512xf32, #tpu.memory_space<vmem>>, %arg2: memref<1x512xf32, #tpu.memory_space<vmem>>, %arg3: memref<1x512xf32, #tpu.memory_space<vmem>>, %arg4: memref<8x512xf32, #tpu.memory_space<vmem>>, %arg5: memref<8x512xf32, #tpu.memory_space<vmem>>) attributes {dimension_semantics = [#tpu.dimension_semantics<parallel>], iteration_bounds = array<i64: 1>, scalar_prefetch = 0 : i64, scratch_operands = 0 : i64, tpu.core_type = #tpu.core_type<tc>, window_params = [{transform_indices = @transform_0, window_bounds = array<i64: 8, 512>}, {pipeline_mode = #tpu.pipeline_mode<synchronous>, transform_indices = @transform_1, window_bounds = array<i64: 1, 512>}, {pipeline_mode = #tpu.pipeline_mode<synchronous>, transform_indices = @transform_2, window_bounds = array<i64: 1, 512>}, {transform_indices = @transform_3, window_bounds = array<i64: 8, 512>}, {transform_indices = @transform_4, window_bounds = array<i64: 8, 512>}]} {
    %c0 = arith.constant 0 : index
    %c0_0 = arith.constant 0 : index
    %0 = vector.load %arg1[%c0, %c0_0] : memref<8x512xf32, #tpu.memory_space<vmem>>, vector<8x512xf32>
    %c0_1 = arith.constant 0 : index
    %c0_2 = arith.constant 0 : index
    %1 = vector.load %arg2[%c0_1, %c0_2] : memref<1x512xf32, #tpu.memory_space<vmem>>, vector<1x512xf32>
    %2 = vector.broadcast %1 : vector<1x512xf32> to vector<8x512xf32>
    %3 = arith.mulf %0, %2 : vector<8x512xf32>
    %c0_3 = arith.constant 0 : index
    %c0_4 = arith.constant 0 : index
    %4 = vector.load %arg3[%c0_3, %c0_4] : memref<1x512xf32, #tpu.memory_space<vmem>>, vector<1x512xf32>
    %5 = vector.broadcast %4 : vector<1x512xf32> to vector<8x512xf32>
    %6 = arith.addf %3, %5 : vector<8x512xf32>
    %c0_5 = arith.constant 0 : index
    %c0_6 = arith.constant 0 : index
    %7 = vector.load %arg4[%c0_5, %c0_6] : memref<8x512xf32, #tpu.memory_space<vmem>>, vector<8x512xf32>
    %8 = arith.addf %6, %7 : vector<8x512xf32>
    %cst = arith.constant 0.000000e+00 : f32
    %9 = vector.broadcast %cst : f32 to vector<8x512xf32>
    %10 = arith.maximumf %8, %9 : vector<8x512xf32>
    %c0_7 = arith.constant 0 : index
    %c0_8 = arith.constant 0 : index
    %11 = vector.load %arg5[%c0_7, %c0_8] : memref<8x512xf32, #tpu.memory_space<vmem>>, vector<8x512xf32>
    tpu.vector_store %arg5[%c0_7, %c0_8], %10 {strides = array<i32>} : memref<8x512xf32, #tpu.memory_space<vmem>>, vector<8x512xf32>,
    return
  }
  func.func @transform_0(%arg0: i32) -> (i32, i32) {
    %c0_i32 = arith.constant 0 : i32
    %c0_i32_0 = arith.constant 0 : i32
    return %arg0, %c0_i32 : i32, i32
  }
  func.func @transform_1(%arg0: i32) -> (i32, i32) {
    %c0_i32 = arith.constant 0 : i32
    %c0_i32_0 = arith.constant 0 : i32
    %c0_i32_1 = arith.constant 0 : i32
    return %c0_i32, %c0_i32_0 : i32, i32
  }
  func.func @transform_2(%arg0: i32) -> (i32, i32) {
    %c0_i32 = arith.constant 0 : i32
    %c0_i32_0 = arith.constant 0 : i32
    %c0_i32_1 = arith.constant 0 : i32
    return %c0_i32, %c0_i32_0 : i32, i32
  }
  func.func @transform_3(%arg0: i32) -> (i32, i32) {
    %c0_i32 = arith.constant 0 : i32
    %c0_i32_0 = arith.constant 0 : i32
    return %arg0, %c0_i32 : i32, i32
  }
  func.func @transform_4(%arg0: i32) -> (i32, i32) {
    %c0_i32 = arith.constant 0 : i32
    %c0_i32_0 = arith.constant 0 : i32
    return %arg0, %c0_i32 : i32, i32
  }
}

</mosaic_0001>

<bundles_post_ra>
// kernel: tile.53
= control target key start
LH: loop header
LB: loop body
LE: loop exit
PB: predicated region body
PF: predicated region fallthrough
CT: control target
= control target key end

     0   :  { %s22_s0 = inlined_call_operand.vmem [shape: f32[64], index: 0, kind: input, shape index: {}]   ;;  %s23_s1 = inlined_call_operand.vmem [shape: f32[2,64], index: 1, kind: output, shape index: {}]  }
   0x1   :  { %v4_v0 = vld [vmem:[%s22_s0] ss:$0 sm:$0xff] }
   0x2   :  { %5 = vst [vmem:[%s23_s1] sm:$0x3] %v4_v0 }

// kernel: tile.58
= control target key start
LH: loop header
LB: loop body
LE: loop exit
PB: predicated region body
PF: predicated region fallthrough
CT: control target
= control target key end

     0   :  { %vm7_vm0 = vcmask 523264   ;;  %vm13_vm1 = vcmask 1048064   ;;  %s39_s0 = inlined_call_operand.vmem [shape: f32[2,64], index: 0, kind: input, shape index: {}]   ;;  %s40_s1 = inlined_call_operand.vmem [shape: f32[1,128], index: 1, kind: output, shape index: {}]  }
   0x1   :  { %v4_v0 = vld [vmem:[%s39_s0] sm:$0x3]  ;;  %s22_s0 = smov 64  }
   0x2   :  { %5 = vst [vmem:[#allocation1] sm:$0x3] %v4_v0 }
   0x9   :  { %v10_v1 = vld [vmem:[#allocation1 + $0x1] sm:$0x1]   ;;  %v6_v2 = vld [vmem:[#allocation1] sm:$0x1]  }
   0xa   :  { %11 = vrot.lane.b32.xlu0 %v10_v1, %s22_s0  ;;  %8 = vst.msk [vmem:[#allocation0] sm:$0x1] %vm7_vm0, %v6_v2  }
  0x7c   :  { %v12_v3 = vpop.permute.xlu0 %11  }
  0x7d   :  { %14 = vst.msk [vmem:[#allocation0] sm:$0x1] %vm13_vm1, %v12_v3  }
  0x84   :  { %v18_v4 = vld [vmem:[#allocation0] sm:$0x1] }
  0x85   :  { %20 = vst [vmem:[%s40_s1] sm:$0x1] %v18_v4 }

// kernel: _lambda_.38
= control target key start
LH: loop header
LB: loop body
LE: loop exit
PB: predicated region body
PF: predicated region fallthrough
CT: control target
= control target key end

     0   :  { %s148_s0 = inlined_call_operand.vmem [shape: f32[64,128], index: 0, kind: input, shape index: {}]   ;;  %s149_s1 = inlined_call_operand.vmem [shape: f32[1,128], index: 1, kind: input, shape index: {}]   ;;  %s150_s2 = inlined_call_operand.vmem [shape: f32[1,128], index: 2, kind: input, shape index: {}]   ;;  %s151_s3 = inlined_call_operand.vmem [shape: f32[64,128], index: 3, kind: output, shape index: {}]  }
   0x1   :  { %v14_v0 = vld [vmem:[%s148_s0] sm:$0xff]  ;;  %v15_v4 = vld [vmem:[%s148_s0 + $0x8] sm:$0xff]  ;;  %v16_v5 = vld [vmem:[%s148_s0 + $0x10] sm:$0xff] }
   0x2   :  { %v72_v1 = vld [vmem:[%s149_s1] ss:$0 sm:$0xff]  ;;  %v17_v6 = vld [vmem:[%s148_s0 + $0x18] sm:$0xff]  ;;  %v19_v11 = vld [vmem:[%s148_s0 + $0x28] sm:$0xff] }
   0x3   :  { %v73_v2 = vld [vmem:[%s150_s2] ss:$0 sm:$0xff]  ;;  %v29_v3 = vmul.f32 %v72_v1, %v14_v0  ;;  %v30_v7 = vmul.f32 %v72_v1, %v15_v4  ;;  %v31_v8 = vmul.f32 %v72_v1, %v16_v5  ;;  %v32_v9 = vmul.f32 %v72_v1, %v17_v6  ;;  %v20_v12 = vld [vmem:[%s148_s0 + $0x30] sm:$0xff]  ;;  %v21_v17 = vld [vmem:[%s148_s0 + $0x38] sm:$0xff] }
   0x4   :  { %v18_v10 = vld [vmem:[%s148_s0 + $0x20] sm:$0xff]  ;;  %v34_v15 = vmul.f32 %v72_v1, %v19_v11  ;;  %v35_v16 = vmul.f32 %v72_v1, %v20_v12  ;;  %v36_v21 = vmul.f32 %v72_v1, %v21_v17 }
   0x5   :  { %v44_v13 = vadd.f32 %v73_v2, %v29_v3  ;;  %v33_v14 = vmul.f32 %v72_v1, %v18_v10  ;;  %v45_v18 = vadd.f32 %v73_v2, %v30_v7  ;;  %v46_v19 = vadd.f32 %v73_v2, %v31_v8 }
   0x6   :  { %v47_v20 = vadd.f32 %v73_v2, %v32_v9  ;;  %v49_v24 = vadd.f32 %v73_v2, %v34_v15  ;;  %v50_v25 = vadd.f32 %v73_v2, %v35_v16  ;;  %v51_v29 = vadd.f32 %v73_v2, %v36_v21 }
   0x7   :  { %v52_v22 = vmax.f32 %v44_v13, 0.0  ;;  %v48_v23 = vadd.f32 %v73_v2, %v33_v14  ;;  %v53_v26 = vmax.f32 %v45_v18, 0.0  ;;  %v54_v27 = vmax.f32 %v46_v19, 0.0 }
   0x8   :  { %v55_v28 = vmax.f32 %v47_v20, 0.0  ;;  %v57_v31 = vmax.f32 %v49_v24, 0.0  ;;  %v58_v32 = vmax.f32 %v50_v25, 0.0  ;;  %v59_v33 = vmax.f32 %v51_v29, 0.0 }
   0x9   :  { %60 = vst [vmem:[%s151_s3] sm:$0xff] %v52_v22  ;;  %v56_v30 = vmax.f32 %v48_v23, 0.0  ;;  %61 = vst [vmem:[%s151_s3 + $0x8] sm:$0xff] %v53_v26 }
   0xa   :  { %62 = vst [vmem:[%s151_s3 + $0x10] sm:$0xff] %v54_v27  ;;  %63 = vst [vmem:[%s151_s3 + $0x18] sm:$0xff] %v55_v28 }
   0xb   :  { %64 = vst [vmem:[%s151_s3 + $0x20] sm:$0xff] %v56_v30  ;;  %65 = vst [vmem:[%s151_s3 + $0x28] sm:$0xff] %v57_v31 }
   0xc   :  { %66 = vst [vmem:[%s151_s3 + $0x30] sm:$0xff] %v58_v32  ;;  %67 = vst [vmem:[%s151_s3 + $0x38] sm:$0xff] %v59_v33 }

// kernel: _lambda_.37
= control target key start
LH: loop header
LB: loop body
LE: loop exit
PB: predicated region body
PF: predicated region fallthrough
CT: control target
= control target key end

     0   :  { %s685_s9 = smov 0   ;;  %s687_s10 = smov 0   ;;  %s752_s0 = inlined_call_operand.vmem [shape: bf16[128,128], index: 0, kind: input, shape index: {}]   ;;  %s753_s1 = inlined_call_operand.vmem [shape: bf16[128,128], index: 1, kind: input, shape index: {}]   ;;  %s754_s2 = inlined_call_operand.vmem [shape: f32[128,128], index: 2, kind: output, shape index: {}]  }
   0x1   :  { %s689_s11 = smov 0  }
   0x2 LB: > { %s31_s12 = sadd.s32 1, %s664_s10  ;;  %p539_p0 = scmp.ge.s32.totalorder %s668_s11, 1  ;;  %s668_s11 = sphi %s689_s11, %s12_s11   ;;  %s664_s10 = sphi %s687_s10, %s756_s10   ;;  %s660_s9 = sphi %s685_s9, %s755_s9  }
   0x3   : > { %p33_p1 = scmp.ge.s32.totalorder %s31_s12, 2  ;;  %p155_p2 = scmp.lt.s32.totalorder %s668_s11, 3 }
   0x5   : > { %s758_s12 = smov (%p33_p1, %s31_s12), 0  ;;  %p156_p3 = pnand %p539_p0, %p155_p2 }
   0x6   : > { %v634_v0 = vld [vmem:[%s753_s1] sm:$0xff] (!%p156_p3)   ;;  %s540_s15 = sshll.u32 (!%p156_p3), %s660_s9, 3  ;;  %v635_v1 = vld [vmem:[%s753_s1 + $0x8] sm:$0xff] (!%p156_p3)   ;;  %v636_v2 = vld [vmem:[%s753_s1 + $0x10] sm:$0xff] (!%p156_p3)  }
   0x7   : > { %159 = sbr.rel (%p156_p3) target bundleno = 255 (0xff), region = 28  ;;  %p192_p4 = scmp.lt.s32.totalorder (!%p156_p3), %s540_s15, 15  ;;  %570 = vmatprep.subr.bf16.mxu0 (!%p156_p3), %v634_v0  ;;  %594 = vmatprep.subr.bf16.mxu1 (!%p156_p3), %v634_v0  ;;  %v637_v3 = vld [vmem:[%s753_s1 + $0x18] sm:$0xff] (!%p156_p3)   ;;  %v638_v6 = vld [vmem:[%s753_s1 + $0x20] sm:$0xff] (!%p156_p3)   ;;  %v639_v7 = vld [vmem:[%s753_s1 + $0x28] sm:$0xff] (!%p156_p3)  }
   0x8   : > { %571 = vmatpush3.bf16.msra.mxu0 (!%p156_p3), %v634_v0  ;;  %602 = vmatpush3.bf16.msra.mxu1 (!%p156_p3), %v634_v0  ;;  %v640_v8 = vld [vmem:[%s753_s1 + $0x30] sm:$0xff] (!%p156_p3)   ;;  %v641_v9 = vld [vmem:[%s753_s1 + $0x38] sm:$0xff] (!%p156_p3)  }
   0x9   : > { %572 = vmatprep.subr.bf16.mxu0 (!%p156_p3), %v635_v1  ;;  %595 = vmatprep.subr.bf16.mxu1 (!%p156_p3), %v635_v1 }
   0xc   : > { %573 = vmatpush3.bf16.msra.mxu0 (!%p156_p3), %v635_v1  ;;  %603 = vmatpush3.bf16.msra.mxu1 (!%p156_p3), %v635_v1 }
   0xd   : > { %574 = vmatprep.subr.bf16.mxu0 (!%p156_p3), %v636_v2  ;;  %596 = vmatprep.subr.bf16.mxu1 (!%p156_p3), %v636_v2 }
   0xe   : > { %s760_s15 = smov (!%p192_p4, %s540_s15), 15 }
   0xf   : > { %s541_s20 = sshll.u32 %s760_s15, 2  ;;  %s543_s6 = sshll.u32 %s760_s15, 3 }
  0x10   : > { %s718_s23 = scalar_lea.vmem %s752_s0, %s541_s20  ;;  %575 = vmatpush3.bf16.msra.mxu0 %v636_v2  ;;  %604 = vmatpush3.bf16.msra.mxu1 %v636_v2  ;;  %s216_s9 = scalar_lea.vmem %s754_s2, %s543_s6 }
  0x11   : > { %v642_v4 = vld [vmem:[%s718_s23] sm:$0xff]   ;;  %v643_v5 = vld [vmem:[%s718_s23 + $0x10] sm:$0xff]   ;;  %576 = vmatprep.subr.bf16.mxu0 %v637_v3  ;;  %597 = vmatprep.subr.bf16.mxu1 %v637_v3  ;;  %v644_v10 = vld [vmem:[%s718_s23 + $0x8] sm:$0xff]  }
  0x12   : > { %586 = vmatprep.mubr.bf16.mxu0 %v642_v4  ;;  %590 = vmatprep.mubr.bf16.mxu1 %v643_v5  ;;  %v645_v11 = vld [vmem:[%s718_s23 + $0x18] sm:$0xff]  }
  0x14   : > { %577 = vmatpush3.bf16.msra.mxu0 %v637_v3  ;;  %605 = vmatpush3.bf16.msra.mxu1 %v637_v3 }
  0x15   : > { %578 = vmatprep.subr.bf16.mxu0 %v638_v6  ;;  %598 = vmatprep.subr.bf16.mxu1 %v638_v6 }
  0x18   : > { %579 = vmatpush3.bf16.msra.mxu0 %v638_v6  ;;  %606 = vmatpush3.bf16.msra.mxu1 %v638_v6 }
  0x19   : > { %580 = vmatprep.subr.bf16.mxu0 %v639_v7  ;;  %599 = vmatprep.subr.bf16.mxu1 %v639_v7 }
  0x1c   : > { %581 = vmatpush3.bf16.msra.mxu0 %v639_v7  ;;  %607 = vmatpush3.bf16.msra.mxu1 %v639_v7 }
  0x1d   : > { %582 = vmatprep.subr.bf16.mxu0 %v640_v8  ;;  %600 = vmatprep.subr.bf16.mxu1 %v640_v8 }
  0x20   : > { %583 = vmatpush3.bf16.msra.mxu0 %v640_v8  ;;  %608 = vmatpush3.bf16.msra.mxu1 %v640_v8 }
  0x21   : > { %584 = vmatprep.subr.bf16.mxu0 %v641_v9  ;;  %601 = vmatprep.subr.bf16.mxu1 %v641_v9 }
  0x24   : > { %585 = vmatpush3.bf16.msra.mxu0 %v641_v9  ;;  %609 = vmatpush3.bf16.msra.mxu1 %v641_v9 }
  0x27   : > { %587 = vmatmul.mubr.bf16.vlgmr.msra.gmra.mrb[0].mxu0 %v644_v10  ;;  %591 = vmatmul.mubr.bf16.vlgmr.msra.gmra.mrb[0].mxu1 %v645_v11 }
  0xfa   : > { %v588_v12 = vpop.f32.mrb[0].mxu0  ;;  %v592_v13 = vpop.f32.mrb[0].mxu1 }
  0xfb   : > { %429 = vst [vmem:[%s216_s9 + $0x10] sm:$0xff] %v588_v12  ;;  %433 = vst [vmem:[%s216_s9 + $0x30] sm:$0xff] %v592_v13  ;;  %v369_v14 = vpop.f32.mrb[1].mxu0  ;;  %v385_v15 = vpop.f32.mrb[1].mxu1 }
  0xfc   : > { %427 = vst [vmem:[%s216_s9] sm:$0xff] %v369_v14  ;;  %431 = vst [vmem:[%s216_s9 + $0x20] sm:$0xff] %v385_v15  ;;  %v589_v16 = vpop.f32.mrb[2].mxu0  ;;  %v593_v17 = vpop.f32.mrb[2].mxu1 }
  0xfd   : > { %430 = vst [vmem:[%s216_s9 + $0x18] sm:$0xff] %v589_v16  ;;  %434 = vst [vmem:[%s216_s9 + $0x38] sm:$0xff] %v593_v17  ;;  %v372_v18 = vpop.f32.mrb[3].mxu0  ;;  %v388_v19 = vpop.f32.mrb[3].mxu1 }
  0xfe   : > { %428 = vst [vmem:[%s216_s9 + $0x8] sm:$0xff] %v372_v18  ;;  %432 = vst [vmem:[%s216_s9 + $0x28] sm:$0xff] %v388_v19 }
  0xff PF: > { %s12_s11 = sadd.s32 1, %s668_s11   ;;  %s755_s9 = smov %s664_s10 }
 0x100   : > { %p9_p5 = scmp.ge.s32.totalorder %s12_s11, 4   ;;  %s756_s10 = smov %s758_s12 }
 0x102   :  { %11 = sbr.rel (!%p9_p5) target bundleno = 2 (0x2), region = 69 }

// kernel: _lambda_.39
= control target key start
LH: loop header
LB: loop body
LE: loop exit
PB: predicated region body
PF: predicated region fallthrough
CT: control target
= control target key end

     0   :  { %s693_s9 = smov 0   ;;  %s695_s10 = smov 0   ;;  %s806_s0 = inlined_call_operand.vmem [shape: bf16[32,640], index: 0, kind: input, shape index: {}]   ;;  %s807_s1 = inlined_call_operand.vmem [shape: bf16[640,128], index: 1, kind: input, shape index: {}]   ;;  %s808_s2 = inlined_call_operand.vmem [shape: f32[32,128], index: 2, kind: output, shape index: {}]  }
   0x1   :  { %s697_s11 = smov 0   ;;  %s699_s12 = smov 0  }
   0x2   :  { %s701_s13 = smov 0   ;;  %s703_s14 = smov 0  }
   0x3   :  { %s705_s15 = smov 0  }
   0x4 LB: > { %s24_s16 = sadd.s32 1, %s665_s13  ;;  %s31_s17 = sadd.s32 1, %s669_s14  ;;  %s673_s15 = sphi %s705_s15, %s12_s15   ;;  %s669_s14 = sphi %s703_s14, %s814_s14   ;;  %s665_s13 = sphi %s701_s13, %s813_s13   ;;  %s661_s12 = sphi %s699_s12, %s812_s12   ;;  %s657_s11 = sphi %s697_s11, %s811_s11   ;;  %s653_s10 = sphi %s695_s10, %s810_s10   ;;  %s649_s9 = sphi %s693_s9, %s809_s9  }
   0x5   : > { %p25_p0 = scmp.ge.s32.totalorder %s24_s16, 5  ;;  %p47_p1 = scmp.ne.s32.totalorder %s653_s10, %s649_s9 }
   0x6   : > { %p48_p2 = scmp.eq.s32.totalorder %s673_s15, 0  ;;  %s40_s21 = sadd.s32 1, %s653_s10 }
   0x7   : > { %s816_s16 = smov (%p25_p0, %s24_s16), 0  ;;  %s818_s17 = smov (!%p25_p0, %s31_s17), %s669_s14 }
   0x8   : > { %p49_p3 = por %p48_p2, %p47_p1  ;;  %p33_p4 = scmp.ge.s32.totalorder %s818_s17, 2 }
   0x9   : > { %s36_s18 = ssub.s32 %s665_s13, %s816_s16  ;;  %p497_p6 = scmp.ge.s32.totalorder %s673_s15, 10 }
   0xa   : > { %s820_s17 = smov (%p33_p4, %s818_s17), 0 }
   0xb   : > { %s35_s19 = ssub.s32 %s669_s14, %s820_s17  ;;  %129 = sbr.rel (%p497_p6) target bundleno = 26 (0x1a), region = 16 }
   0xc   : > { %s37_s20 = sor.u32 %s36_s18, %s35_s19 }
   0xd   : > { %p38_p5 = scmp.eq.s32.totalorder %s37_s20, 0 }
   0xf   : > { %s744_s22 = scalar_select %p38_p5, %s653_s10, %s40_s21  }
  0x12   : > { %132 = sbr.rel (!%p49_p3) target bundleno = 26 (0x1a), region = 20  ;;  %s134_s23 = sand.u32 (%p49_p3), 1, %s653_s10  }
  0x13   : > { %s550_s24 = smul.u32 (%p49_p3), 10, %s669_s14  ;;  %s498_s25 = sshll.u32 (%p49_p3), %s134_s23, 3 }
  0x14   : > { %s136_s3 = scalar_lea.vmem (%p49_p3), [#allocation3], %s498_s25 }
  0x15   : > { %s139_s26 = sadd.s32 (%p49_p3), %s665_s13, %s550_s24 }
  0x16   : > { %s501_s27 = sshll.u32 (%p49_p3), %s139_s26, 2 }
  0x17   : > { %s141_s30 = scalar_lea.vmem (%p49_p3), %s806_s0, %s501_s27 }
  0x18   : > { %v157_v0 = vld [vmem:[%s141_s30] sm:$0xf] (%p49_p3)  ;;  %v159_v1 = vld [vmem:[%s141_s30 + $0x14] sm:$0xf] (%p49_p3) }
  0x19   : > { %158 = vst [vmem:[%s136_s3] sm:$0xf] %v157_v0  ;;  %160 = vst [vmem:[%s136_s3 + $0x4] sm:$0xf] %v159_v1 }
  0x1a PF: > { %p502_p7 = scmp.ge.s32.totalorder %s673_s15, 1  ;;  %p198_p8 = scmp.lt.s32.totalorder %s673_s15, 11 }
  0x1c   : > { %p199_p9 = pnand %p502_p7, %p198_p8 }
  0x1d   : > { %s205_s4 = sand.u32 (!%p199_p9), 1, %s649_s9   ;;  %s504_s5 = sshll.u32 (!%p199_p9), %s657_s11, 4 }
  0x1e   : > { %202 = sbr.rel (%p199_p9) target bundleno = 305 (0x131), region = 65  ;;  %s757_s6 = sshll.u32 (!%p199_p9), %s205_s4, 3 }
  0x1f   : > { %p239_p10 = scmp.lt.s32.totalorder (!%p199_p9), %s504_s5, 79  ;;  %s506_s7 = sshll.u32 (!%p199_p9), %s661_s12, 1 }
  0x20   : > { %p248_p11 = scmp.lt.s32.totalorder (!%p199_p9), %s506_s7, 3  ;;  %s207_s25 = scalar_lea.vmem (!%p199_p9), [#allocation3], %s757_s6 }
  0x21   : > { %p508_p12 = scmp.ne.s32.totalorder (!%p199_p9), %s657_s11, 0 }
  0x25   : > { %s822_s5 = smov (!%p239_p10, %s504_s5), 79  ;;  %s824_s7 = smov (!%p248_p11, %s506_s7), 3 }
  0x26   : > { %s505_s8 = sshll.u32 %s822_s5, 2  ;;  %s507_s21 = sshll.u32 %s824_s7, 3  ;;  %v675_v2 = vmov (!%p508_p12), 0.0  }
  0x27   : > { %s763_s20 = scalar_lea.vmem %s807_s1, %s505_s8  ;;  %s768_s9 = scalar_lea.vmem %s808_s2, %s507_s21  ;;  %261 = vst [vmem:[#allocation2] sm:$0xff] (!%p508_p12), %v675_v2  ;;  %262 = vst [vmem:[#allocation2 + $0x8] sm:$0xff] (!%p508_p12), %v675_v2 }
  0x28   : > { %260 = sbr.rel (%p508_p12) target bundleno = 47 (0x2f), region = 73 }
  0x2f PF: > { %v610_v3 = vld [vmem:[%s763_s20] sm:$0xff]   ;;  %v676_v4 = vmov 0.0   ;;  %v611_v5 = vld [vmem:[%s763_s20 + $0x8] sm:$0xff]   ;;  %vm677_vm0 = vmmov 0   ;;  %v612_v6 = vld [vmem:[%s763_s20 + $0x10] sm:$0xff]   ;;  %p518_p13 = scmp.ne.s32.totalorder %s657_s11, 4 }
  0x30   : > { %530 = vmatprep.subr.bf16.mxu0 %v676_v4  ;;  %546 = vmatprep.mubr.msk.bf16.mxu0 %vm677_vm0, %v676_v4  ;;  %v613_v7 = vld [vmem:[%s763_s20 + $0x18] sm:$0xff]   ;;  %v614_v8 = vld [vmem:[%s763_s20 + $0x20] sm:$0xff]   ;;  %v615_v9 = vld [vmem:[%s763_s20 + $0x28] sm:$0xff]  }
  0x31   : > { %531 = vmatpush3.bf16.msra.mxu0 %v610_v3  ;;  %v616_v10 = vld [vmem:[%s763_s20 + $0x30] sm:$0xff]   ;;  %v617_v11 = vld [vmem:[%s763_s20 + $0x38] sm:$0xff]   ;;  %v263_v13 = vld [vmem:[#allocation2] sm:$0xff] }
  0x32   : > { %532 = vmatprep.subr.bf16.mxu0 %v676_v4  ;;  %v618_v12 = vld [vmem:[%s207_s25] sm:$0xff]   ;;  %v264_v15 = vld [vmem:[#allocation2 + $0x8] sm:$0xff] }
  0x35   : > { %533 = vmatpush3.bf16.msra.mxu0 %v611_v5 }
  0x36   : > { %534 = vmatprep.subr.bf16.mxu0 %v676_v4 }
  0x39   : > { %535 = vmatpush3.bf16.msra.mxu0 %v612_v6 }
  0x3a   : > { %536 = vmatprep.subr.bf16.mxu0 %v676_v4 }
  0x3d   : > { %537 = vmatpush3.bf16.msra.mxu0 %v613_v7 }
  0x3e   : > { %538 = vmatprep.subr.bf16.mxu0 %v676_v4 }
  0x41   : > { %539 = vmatpush3.bf16.msra.mxu0 %v614_v8 }
  0x42   : > { %540 = vmatprep.subr.bf16.mxu0 %v676_v4 }
  0x45   : > { %541 = vmatpush3.bf16.msra.mxu0 %v615_v9 }
  0x46   : > { %542 = vmatprep.subr.bf16.mxu0 %v676_v4 }
  0x49   : > { %543 = vmatpush3.bf16.msra.mxu0 %v616_v10 }
  0x4a   : > { %544 = vmatprep.subr.bf16.mxu0 %v676_v4 }
  0x4d   : > { %545 = vmatpush3.bf16.msra.mxu0 %v617_v11 }
  0x50   : > { %547 = vmatmul.mubr.bf16.vlgmr.msra.gmra.mrb[0].mxu0 %v618_v12 }
 0x122   : > { %385 = sbr.rel (%p518_p13) target bundleno = 305 (0x131), region = 77 }
 0x123   : > { %v371_v14 = vpop.f32.mrb[0].mxu0 }
 0x124   : > { %v378_v16 = vadd.f32 %v371_v14, %v263_v13  ;;  %v548_v17 = vpop.f32.mrb[1].mxu0 }
 0x125   : > { %v374_v18 = vpop.f32.mrb[2].mxu0 }
 0x126   : > { %380 = vst [vmem:[#allocation2] sm:$0xff] %v378_v16  ;;  %v379_v19 = vadd.f32 %v374_v18, %v264_v15  ;;  %v549_v20 = vpop.f32.mrb[3].mxu0 }
 0x128   : > { %381 = vst [vmem:[#allocation2 + $0x8] sm:$0xff] %v379_v19 }
 0x12d   : > { %v386_v21 = vld [vmem:[#allocation2] sm:$0xff] }
 0x12e   : > { %388 = vst [vmem:[%s768_s9] sm:$0xff] %v386_v21 }
 0x12f   : > { %v387_v22 = vld [vmem:[#allocation2 + $0x8] sm:$0xff] }
 0x130   : > { %389 = vst [vmem:[%s768_s9 + $0x8] sm:$0xff] %v387_v22 }
 0x131 PF: > { %s12_s15 = sadd.s32 1, %s673_s15   ;;  %s809_s9 = smov %s653_s10 }
 0x132   : > { %p9_p0 = scmp.ge.s32.totalorder %s12_s15, 12   ;;  %s810_s10 = smov %s744_s22 }
 0x133   : > { %s811_s11 = smov %s665_s13  ;;  %s812_s12 = smov %s669_s14 }
 0x134   : > { %s813_s13 = smov %s816_s16  ;;  %s814_s14 = smov %s820_s17 }
 0x135   :  { %11 = sbr.rel (!%p9_p0) target bundleno = 4 (0x4), region = 115 }

// kernel: _lambda_.42
= control target key start
LH: loop header
LB: loop body
LE: loop exit
PB: predicated region body
PF: predicated region fallthrough
CT: control target
= control target key end

     0   :  { %s100_s0 = inlined_call_operand.vmem [shape: f32[16,128], index: 0, kind: input, shape index: {}]   ;;  %s101_s1 = inlined_call_operand.vmem [shape: f32[1,128], index: 1, kind: input, shape index: {}]   ;;  %s102_s2 = inlined_call_operand.vmem [shape: f32[1,128], index: 2, kind: input, shape index: {}]   ;;  %s103_s3 = inlined_call_operand.vmem [shape: f32[16,128], index: 3, kind: input, shape index: {}]   ;;  %s104_s4 = inlined_call_operand.vmem [shape: f32[16,128], index: 4, kind: output, shape index: {}]  }
   0x1   :  { %v17_v0 = vld [vmem:[%s100_s0] sm:$0xff]  ;;  %v18_v4 = vld [vmem:[%s100_s0 + $0x8] sm:$0xff] }
   0x2   :  { %v49_v1 = vld [vmem:[%s101_s1] ss:$0 sm:$0xff]  ;;  %v38_v8 = vld [vmem:[%s103_s3 + $0x8] sm:$0xff] }
   0x3   :  { %v50_v2 = vld [vmem:[%s102_s2] ss:$0 sm:$0xff]  ;;  %v26_v3 = vmul.f32 %v49_v1, %v17_v0  ;;  %v27_v6 = vmul.f32 %v49_v1, %v18_v4 }
   0x4   :  { %v37_v5 = vld [vmem:[%s103_s3] sm:$0xff] }
   0x5   :  { %v35_v7 = vadd.f32 %v50_v2, %v26_v3  ;;  %v36_v9 = vadd.f32 %v50_v2, %v27_v6 }
   0x7   :  { %v39_v10 = vadd.f32 %v37_v5, %v35_v7  ;;  %v40_v11 = vadd.f32 %v38_v8, %v36_v9 }
   0x9   :  { %v41_v12 = vmax.f32 %v39_v10, 0.0  ;;  %v42_v13 = vmax.f32 %v40_v11, 0.0 }
   0xb   :  { %43 = vst [vmem:[%s104_s4] sm:$0xff] %v41_v12  ;;  %44 = vst [vmem:[%s104_s4 + $0x8] sm:$0xff] %v42_v13 }

// kernel: _lambda_.40
= control target key start
LH: loop header
LB: loop body
LE: loop exit
PB: predicated region body
PF: predicated region fallthrough
CT: control target
= control target key end

     0   :  { %s82_s0 = inlined_call_operand.vmem [shape: f32[16,128], index: 0, kind: input, shape index: {}]   ;;  %s83_s1 = inlined_call_operand.vmem [shape: f32[1,128], index: 1, kind: input, shape index: {}]   ;;  %s84_s2 = inlined_call_operand.vmem [shape: f32[1,128], index: 2, kind: input, shape index: {}]   ;;  %s85_s3 = inlined_call_operand.vmem [shape: f32[16,128], index: 3, kind: output, shape index: {}]  }
   0x1   :  { %v14_v0 = vld [vmem:[%s82_s0] sm:$0xff]  ;;  %v15_v4 = vld [vmem:[%s82_s0 + $0x8] sm:$0xff] }
   0x2   :  { %v42_v1 = vld [vmem:[%s83_s1] ss:$0 sm:$0xff] }
   0x3   :  { %v43_v2 = vld [vmem:[%s84_s2] ss:$0 sm:$0xff]  ;;  %v23_v3 = vmul.f32 %v42_v1, %v14_v0  ;;  %v24_v5 = vmul.f32 %v42_v1, %v15_v4 }
   0x5   :  { %v32_v6 = vadd.f32 %v43_v2, %v23_v3  ;;  %v33_v7 = vadd.f32 %v43_v2, %v24_v5 }
   0x7   :  { %v34_v8 = vmax.f32 %v32_v6, 0.0  ;;  %v35_v9 = vmax.f32 %v33_v7, 0.0 }
   0x9   :  { %36 = vst [vmem:[%s85_s3] sm:$0xff] %v34_v8  ;;  %37 = vst [vmem:[%s85_s3 + $0x8] sm:$0xff] %v35_v9 }

// kernel: _lambda_.47
= control target key start
LH: loop header
LB: loop body
LE: loop exit
PB: predicated region body
PF: predicated region fallthrough
CT: control target
= control target key end

     0   :  { %s552_s9 = smov 0   ;;  %s554_s10 = smov 0   ;;  %s598_s0 = inlined_call_operand.vmem [shape: bf16[8,640], index: 0, kind: input, shape index: {}]   ;;  %s599_s1 = inlined_call_operand.vmem [shape: bf16[640,128], index: 1, kind: input, shape index: {}]   ;;  %s600_s2 = inlined_call_operand.vmem [shape: f32[8,128], index: 2, kind: output, shape index: {}]  }
   0x1   :  { %s556_s11 = smov 0  }
   0x2 LB: > { %s24_s12 = sadd.s32 1, %s528_s10  ;;  %p429_p0 = scmp.ge.s32.totalorder %s532_s11, 1  ;;  %s532_s11 = sphi %s556_s11, %s12_s11   ;;  %s528_s10 = sphi %s554_s10, %s602_s10   ;;  %s524_s9 = sphi %s552_s9, %s601_s9  }
   0x3   : > { %p25_p1 = scmp.ge.s32.totalorder %s24_s12, 5  ;;  %p154_p2 = scmp.lt.s32.totalorder %s532_s11, 6 }
   0x5   : > { %s604_s12 = smov (%p25_p1, %s24_s12), 0  ;;  %p155_p3 = pnand %p429_p0, %p154_p2 }
   0x6   : > { %p191_p4 = scmp.lt.s32.totalorder (!%p155_p3), %s524_s9, 4  ;;  %s431_s13 = sshll.u32 (!%p155_p3), %s524_s9, 4 }
   0x7   : > { %158 = sbr.rel (%p155_p3) target bundleno = 278 (0x116), region = 28  ;;  %p198_p5 = scmp.lt.s32.totalorder (!%p155_p3), %s431_s13, 79 }
   0x8   : > { %p433_p6 = scmp.ne.s32.totalorder (!%p155_p3), %s524_s9, 0 }
   0xe   : > { %s192_s14 = scalar_select %p191_p4, %s524_s9, 4 }
   0xf   : > { %s606_s13 = smov (!%p198_p5, %s431_s13), 79  ;;  %217 = sbr.rel (%p433_p6) target bundleno = 22 (0x16), region = 32 }
  0x10   : > { %s430_s15 = sshll.u32 %s192_s14, 2  ;;  %s432_s19 = sshll.u32 %s606_s13, 2  ;;  %v534_v0 = vmov (!%p433_p6), 0.0  }
  0x11   : > { %s578_s18 = scalar_lea.vmem %s598_s0, %s430_s15  ;;  %s204_s22 = scalar_lea.vmem %s599_s1, %s432_s19  ;;  %218 = vst [vmem:[#allocation2] sm:$0xff] (!%p433_p6), %v534_v0 }
  0x16 PF: > { %v502_v1 = vld [vmem:[%s204_s22] sm:$0xff]   ;;  %v535_v2 = vmov 0.0   ;;  %v503_v3 = vld [vmem:[%s204_s22 + $0x8] sm:$0xff]   ;;  %vm536_vm0 = vmmov 0   ;;  %v504_v4 = vld [vmem:[%s204_s22 + $0x10] sm:$0xff]   ;;  %p442_p7 = scmp.ne.s32.totalorder %s524_s9, 4 }
  0x17   : > { %455 = vmatprep.subr.bf16.mxu0 %v535_v2  ;;  %471 = vmatprep.mubr.msk.bf16.mxu0 %vm536_vm0, %v535_v2  ;;  %v505_v5 = vld [vmem:[%s204_s22 + $0x18] sm:$0xff]   ;;  %v506_v6 = vld [vmem:[%s204_s22 + $0x20] sm:$0xff]   ;;  %v507_v7 = vld [vmem:[%s204_s22 + $0x28] sm:$0xff]  }
  0x18   : > { %456 = vmatpush3.bf16.msra.mxu0 %v502_v1  ;;  %v508_v8 = vld [vmem:[%s204_s22 + $0x30] sm:$0xff]   ;;  %v509_v9 = vld [vmem:[%s204_s22 + $0x38] sm:$0xff]   ;;  %v220_v10 = vld [vmem:[%s578_s18] sm:$0xf] }
  0x19   : > { %457 = vmatprep.subr.bf16.mxu0 %v535_v2  ;;  %v219_v11 = vld [vmem:[#allocation2] sm:$0xff] }
  0x1c   : > { %458 = vmatpush3.bf16.msra.mxu0 %v503_v3 }
  0x1d   : > { %459 = vmatprep.subr.bf16.mxu0 %v535_v2 }
  0x20   : > { %460 = vmatpush3.bf16.msra.mxu0 %v504_v4 }
  0x21   : > { %461 = vmatprep.subr.bf16.mxu0 %v535_v2 }
  0x24   : > { %462 = vmatpush3.bf16.msra.mxu0 %v505_v5 }
  0x25   : > { %463 = vmatprep.subr.bf16.mxu0 %v535_v2 }
  0x28   : > { %464 = vmatpush3.bf16.msra.mxu0 %v506_v6 }
  0x29   : > { %465 = vmatprep.subr.bf16.mxu0 %v535_v2 }
  0x2c   : > { %466 = vmatpush3.bf16.msra.mxu0 %v507_v7 }
  0x2d   : > { %467 = vmatprep.subr.bf16.mxu0 %v535_v2 }
  0x30   : > { %468 = vmatpush3.bf16.msra.mxu0 %v508_v8 }
  0x31   : > { %469 = vmatprep.subr.bf16.mxu0 %v535_v2 }
  0x34   : > { %470 = vmatpush3.bf16.msra.mxu0 %v509_v9 }
  0x37   : > { %472 = vmatmul.mubr.bf16.vlgmr.msra.gmra.mrb[0].mxu0 %v220_v10 }
 0x107   : > { %330 = sbr.rel (%p442_p7) target bundleno = 278 (0x116), region = 36 }
 0x10a   : > { %v319_v12 = vpop.f32.mrb[0].mxu0 }
 0x10b   : > { %v325_v13 = vadd.f32 %v319_v12, %v219_v11  ;;  %v473_v14 = vpop.f32.mrb[1].mxu0 }
 0x10c   : > { %v322_v15 = vpop.f32.mrb[2].mxu0 }
 0x10d   : > { %326 = vst [vmem:[#allocation2] sm:$0xff] %v325_v13  ;;  %v474_v16 = vpop.f32.mrb[3].mxu0 }
 0x114   : > { %v331_v17 = vld [vmem:[#allocation2] sm:$0xff] }
 0x115   : > { %332 = vst [vmem:[%s600_s2] sm:$0xff] %v331_v17 }
 0x116 PF: > { %s12_s11 = sadd.s32 1, %s532_s11   ;;  %s601_s9 = smov %s528_s10 }
 0x117   : > { %p9_p8 = scmp.ge.s32.totalorder %s12_s11, 7   ;;  %s602_s10 = smov %s604_s12 }
 0x119   :  { %11 = sbr.rel (!%p9_p8) target bundleno = 2 (0x2), region = 69 }

// kernel: _lambda_.48
= control target key start
LH: loop header
LB: loop body
LE: loop exit
PB: predicated region body
PF: predicated region fallthrough
CT: control target
= control target key end

     0   :  { %s71_s0 = inlined_call_operand.vmem [shape: f32[8,128], index: 0, kind: input, shape index: {}]   ;;  %s72_s1 = inlined_call_operand.vmem [shape: f32[1,128], index: 1, kind: input, shape index: {}]   ;;  %s73_s2 = inlined_call_operand.vmem [shape: f32[1,128], index: 2, kind: input, shape index: {}]   ;;  %s74_s3 = inlined_call_operand.vmem [shape: f32[8,128], index: 3, kind: output, shape index: {}]  }
   0x1   :  { %v14_v0 = vld [vmem:[%s71_s0] sm:$0xff] }
   0x2   :  { %v37_v1 = vld [vmem:[%s72_s1] ss:$0 sm:$0xff] }
   0x3   :  { %v38_v2 = vld [vmem:[%s73_s2] ss:$0 sm:$0xff]  ;;  %v22_v3 = vmul.f32 %v37_v1, %v14_v0 }
   0x5   :  { %v30_v4 = vadd.f32 %v38_v2, %v22_v3 }
   0x7   :  { %v31_v5 = vmax.f32 %v30_v4, 0.0 }
   0x9   :  { %32 = vst [vmem:[%s74_s3] sm:$0xff] %v31_v5 }

// kernel: _lambda_.49
= control target key start
LH: loop header
LB: loop body
LE: loop exit
PB: predicated region body
PF: predicated region fallthrough
CT: control target
= control target key end

     0   :  { %s796_s9 = smov 0   ;;  %s798_s10 = smov 0   ;;  %s868_s0 = inlined_call_operand.vmem [shape: bf16[8,1152], index: 0, kind: input, shape index: {}]   ;;  %s869_s1 = inlined_call_operand.vmem [shape: bf16[1152,128], index: 1, kind: input, shape index: {}]   ;;  %s870_s2 = inlined_call_operand.vmem [shape: f32[8,128], index: 2, kind: output, shape index: {}]  }
   0x1   :  { %s800_s11 = smov 0  }
   0x2 LB: > { %s24_s12 = sadd.s32 1, %s772_s10  ;;  %p614_p0 = scmp.ge.s32.totalorder %s776_s11, 1  ;;  %s776_s11 = sphi %s800_s11, %s12_s11   ;;  %s772_s10 = sphi %s798_s10, %s872_s10   ;;  %s768_s9 = sphi %s796_s9, %s871_s9  }
   0x3   : > { %p25_p1 = scmp.ge.s32.totalorder %s24_s12, 3  ;;  %p156_p2 = scmp.lt.s32.totalorder %s776_s11, 4 }
   0x5   : > { %s874_s12 = smov (%p25_p1, %s24_s12), 0  ;;  %p157_p3 = pnand %p614_p0, %p156_p2 }
   0x6   : > { %s192_s13 = smul.u32 (!%p157_p3), 3, %s768_s9  ;;  %p617_p6 = scmp.ne.s32.totalorder (!%p157_p3), %s768_s9, 0 }
   0x7   : > { %160 = sbr.rel (%p157_p3) target bundleno = 285 (0x11d), region = 28 }
   0x8   : > { %s202_s14 = smul.u32 (!%p157_p3), 48, %s768_s9  ;;  %p195_p4 = scmp.lt.s32.totalorder (!%p157_p3), %s192_s13, 8 }
   0xa   : > { %p203_p5 = scmp.lt.s32.totalorder (!%p157_p3), %s202_s14, 143 }
   0xe   : > { %s876_s13 = smov (!%p195_p4, %s192_s13), 8  ;;  %s878_s14 = smov (!%p203_p5, %s202_s14), 143 }
   0xf   : > { %s615_s15 = sshll.u32 %s876_s13, 2  ;;  %s616_s19 = sshll.u32 %s878_s14, 2  ;;  %v778_v0 = vmov (!%p617_p6), 0.0  }
  0x10   : > { %s821_s18 = scalar_lea.vmem %s868_s0, %s615_s15  ;;  %s826_s22 = scalar_lea.vmem %s869_s1, %s616_s19  ;;  %223 = vst [vmem:[#allocation2] sm:$0xff] (!%p617_p6), %v778_v0 }
  0x11   : > { %222 = sbr.rel (%p617_p6) target bundleno = 24 (0x18), region = 32 }
  0x18 PF: > { %v727_v1 = vld [vmem:[%s826_s22 + $0x40] sm:$0xff]   ;;  %v779_v2 = vmov 0.0   ;;  %vm780_vm0 = vmmov 0   ;;  %v730_v5 = vld [vmem:[%s826_s22 + $0x48] sm:$0xff]   ;;  %v733_v8 = vld [vmem:[%s826_s22 + $0x50] sm:$0xff]   ;;  %p645_p7 = scmp.ne.s32.totalorder %s768_s9, 2 }
  0x19   : > { %680 = vmatprep.subr.bf16.mxu1 %v779_v2  ;;  %v728_v3 = vld [vmem:[%s826_s22] sm:$0xff]   ;;  %649 = vmatprep.subr.bf16.mxu0 %v727_v1  ;;  %v731_v6 = vld [vmem:[%s826_s22 + $0x8] sm:$0xff]   ;;  %v734_v9 = vld [vmem:[%s826_s22 + $0x10] sm:$0xff]  }
  0x1a   : > { %v729_v4 = vld [vmem:[%s826_s22 + $0x80] sm:$0xff]   ;;  %696 = vmatprep.mubr.msk.bf16.mxu1 %vm780_vm0, %v779_v2  ;;  %650 = vmatpush3.bf16.msra.mxu0 %v728_v3  ;;  %v732_v7 = vld [vmem:[%s826_s22 + $0x88] sm:$0xff]   ;;  %v735_v10 = vld [vmem:[%s826_s22 + $0x90] sm:$0xff]  }
  0x1b   : > { %681 = vmatpush3.bf16.msra.mxu1 %v729_v4  ;;  %651 = vmatprep.subr.bf16.mxu0 %v730_v5  ;;  %v736_v11 = vld [vmem:[%s826_s22 + $0x58] sm:$0xff]   ;;  %v739_v14 = vld [vmem:[%s826_s22 + $0x60] sm:$0xff]   ;;  %v742_v17 = vld [vmem:[%s826_s22 + $0x68] sm:$0xff]  }
  0x1c   : > { %682 = vmatprep.subr.bf16.mxu1 %v779_v2  ;;  %v737_v12 = vld [vmem:[%s826_s22 + $0x18] sm:$0xff]   ;;  %v740_v15 = vld [vmem:[%s826_s22 + $0x20] sm:$0xff]   ;;  %v743_v18 = vld [vmem:[%s826_s22 + $0x28] sm:$0xff]  }
  0x1d   : > { %v738_v13 = vld [vmem:[%s826_s22 + $0x98] sm:$0xff]   ;;  %v741_v16 = vld [vmem:[%s826_s22 + $0xa0] sm:$0xff]   ;;  %v744_v19 = vld [vmem:[%s826_s22 + $0xa8] sm:$0xff]  }
  0x1e   : > { %652 = vmatpush3.bf16.msra.mxu0 %v731_v6  ;;  %v745_v20 = vld [vmem:[%s826_s22 + $0x70] sm:$0xff]   ;;  %v748_v23 = vld [vmem:[%s826_s22 + $0x78] sm:$0xff]   ;;  %v225_v24 = vld [vmem:[%s821_s18] sm:$0xff] }
  0x1f   : > { %683 = vmatpush3.bf16.msra.mxu1 %v732_v7  ;;  %653 = vmatprep.subr.bf16.mxu0 %v733_v8  ;;  %v746_v21 = vld [vmem:[%s826_s22 + $0x30] sm:$0xff]   ;;  %v619_v25 = vcombine.high %v225_v24, %v225_v24  ;;  %v749_v26 = vld [vmem:[%s826_s22 + $0x38] sm:$0xff]   ;;  %v618_v28 = vcombine.low %v225_v24, %v225_v24  ;;  %v753_v29 = vld [vmem:[%s821_s18 + $0x8] ss:$0 sps:$4 sm:$0xff]  }
  0x20   : > { %684 = vmatprep.subr.bf16.mxu1 %v779_v2  ;;  %v747_v22 = vld [vmem:[%s826_s22 + $0xb0] sm:$0xff]   ;;  %v750_v27 = vld [vmem:[%s826_s22 + $0xb8] sm:$0xff]   ;;  %v224_v36 = vld [vmem:[#allocation2] sm:$0xff] }
  0x21   : > { %462 = vmatprep.mubr.bf16.mxu0 %v619_v25 }
  0x22   : > { %654 = vmatpush3.bf16.msra.mxu0 %v734_v9 }
  0x23   : > { %685 = vmatpush3.bf16.msra.mxu1 %v735_v10  ;;  %655 = vmatprep.subr.bf16.mxu0 %v736_v11 }
  0x24   : > { %686 = vmatprep.subr.bf16.mxu1 %v779_v2 }
  0x26   : > { %656 = vmatpush3.bf16.msra.mxu0 %v737_v12 }
  0x27   : > { %687 = vmatpush3.bf16.msra.mxu1 %v738_v13  ;;  %657 = vmatprep.subr.bf16.mxu0 %v739_v14 }
  0x28   : > { %688 = vmatprep.subr.bf16.mxu1 %v779_v2 }
  0x2a   : > { %658 = vmatpush3.bf16.msra.mxu0 %v740_v15 }
  0x2b   : > { %689 = vmatpush3.bf16.msra.mxu1 %v741_v16  ;;  %659 = vmatprep.subr.bf16.mxu0 %v742_v17 }
  0x2c   : > { %690 = vmatprep.subr.bf16.mxu1 %v779_v2 }
  0x2e   : > { %660 = vmatpush3.bf16.msra.mxu0 %v743_v18 }
  0x2f   : > { %691 = vmatpush3.bf16.msra.mxu1 %v744_v19  ;;  %661 = vmatprep.subr.bf16.mxu0 %v745_v20 }
  0x30   : > { %692 = vmatprep.subr.bf16.mxu1 %v779_v2 }
  0x32   : > { %662 = vmatpush3.bf16.msra.mxu0 %v746_v21 }
  0x33   : > { %693 = vmatpush3.bf16.msra.mxu1 %v747_v22  ;;  %663 = vmatprep.subr.bf16.mxu0 %v748_v23 }
  0x34   : > { %694 = vmatprep.subr.bf16.mxu1 %v779_v2 }
  0x36   : > { %664 = vmatpush3.bf16.msra.mxu0 %v749_v26 }
  0x37   : > { %695 = vmatpush3.bf16.msra.mxu1 %v750_v27 }
  0x39   : > { %463 = vmatmul.mubr.bf16.vlgmr.msra.gmra.mrb[0].mxu0 %v618_v28 }
  0x3a   : > { %697 = vmatmul.mubr.bf16.vlgmr.msra.gmra.mrb[0].mxu1 %v753_v29 }
 0x10c   : > { %v665_v30 = vpop.f32.mrb[0].mxu0 }
 0x10d   : > { %v504_v31 = vpop.f32.mrb[0].mxu1  ;;  %v666_v32 = vpop.f32.mrb[1].mxu0 }
 0x10e   : > { %v667_v33 = vadd.f32 %v666_v32, %v665_v30  ;;  %v698_v34 = vpop.f32.mrb[1].mxu1  ;;  %v668_v35 = vpop.f32.mrb[2].mxu0  ;;  %515 = sbr.rel (%p645_p7) target bundleno = 285 (0x11d), region = 36 }
 0x10f   : > { %v507_v37 = vpop.f32.mrb[2].mxu1  ;;  %v669_v38 = vpop.f32.mrb[3].mxu0 }
 0x110   : > { %v505_v39 = vadd.f32 %v667_v33, %v504_v31  ;;  %v699_v40 = vpop.f32.mrb[3].mxu1 }
 0x112   : > { %v510_v41 = vadd.f32 %v505_v39, %v224_v36 }
 0x114   : > { %511 = vst [vmem:[#allocation2] sm:$0xff] %v510_v41 }
 0x11b   : > { %v516_v42 = vld [vmem:[#allocation2] sm:$0xff] }
 0x11c   : > { %517 = vst [vmem:[%s870_s2] sm:$0xff] %v516_v42 }
 0x11d PF: > { %s12_s11 = sadd.s32 1, %s776_s11   ;;  %s871_s9 = smov %s772_s10 }
 0x11e   : > { %p9_p8 = scmp.ge.s32.totalorder %s12_s11, 5   ;;  %s872_s10 = smov %s874_s12 }
 0x120   :  { %11 = sbr.rel (!%p9_p8) target bundleno = 2 (0x2), region = 69 }

// kernel: _lambda_.50
= control target key start
LH: loop header
LB: loop body
LE: loop exit
PB: predicated region body
PF: predicated region fallthrough
CT: control target
= control target key end

     0   :  { %v181_v0 = vmov 0.0   ;;  %vm182_vm0 = vmmov 0   ;;  %s228_s1 = inlined_call_operand.vmem [shape: bf16[128,128], index: 1, kind: input, shape index: {}]   ;;  %s229_s0 = inlined_call_operand.vmem [shape: bf16[8,128], index: 0, kind: input, shape index: {}]   ;;  %s230_s2 = inlined_call_operand.vmem [shape: f32[8,128], index: 2, kind: output, shape index: {}]  }
   0x1   :  { %151 = vmatprep.subr.bf16.mxu0 %v181_v0  ;;  %v173_v1 = vld [vmem:[%s228_s1] sm:$0xff]   ;;  %167 = vmatprep.mubr.msk.bf16.mxu0 %vm182_vm0, %v181_v0  ;;  %v174_v2 = vld [vmem:[%s228_s1 + $0x8] sm:$0xff]   ;;  %v175_v3 = vld [vmem:[%s228_s1 + $0x10] sm:$0xff]  }
   0x2   :  { %152 = vmatpush3.bf16.msra.mxu0 %v173_v1  ;;  %v176_v4 = vld [vmem:[%s228_s1 + $0x18] sm:$0xff]   ;;  %v177_v5 = vld [vmem:[%s228_s1 + $0x20] sm:$0xff]   ;;  %v178_v6 = vld [vmem:[%s228_s1 + $0x28] sm:$0xff]  }
   0x3   :  { %153 = vmatprep.subr.bf16.mxu0 %v181_v0  ;;  %v179_v7 = vld [vmem:[%s228_s1 + $0x30] sm:$0xff]   ;;  %v180_v8 = vld [vmem:[%s228_s1 + $0x38] sm:$0xff]   ;;  %v18_v9 = vld [vmem:[%s229_s0] sm:$0xf] }
   0x6   :  { %154 = vmatpush3.bf16.msra.mxu0 %v174_v2 }
   0x7   :  { %155 = vmatprep.subr.bf16.mxu0 %v181_v0 }
   0xa   :  { %156 = vmatpush3.bf16.msra.mxu0 %v175_v3 }
   0xb   :  { %157 = vmatprep.subr.bf16.mxu0 %v181_v0 }
   0xe   :  { %158 = vmatpush3.bf16.msra.mxu0 %v176_v4 }
   0xf   :  { %159 = vmatprep.subr.bf16.mxu0 %v181_v0 }
  0x12   :  { %160 = vmatpush3.bf16.msra.mxu0 %v177_v5 }
  0x13   :  { %161 = vmatprep.subr.bf16.mxu0 %v181_v0 }
  0x16   :  { %162 = vmatpush3.bf16.msra.mxu0 %v178_v6 }
  0x17   :  { %163 = vmatprep.subr.bf16.mxu0 %v181_v0 }
  0x1a   :  { %164 = vmatpush3.bf16.msra.mxu0 %v179_v7 }
  0x1b   :  { %165 = vmatprep.subr.bf16.mxu0 %v181_v0 }
  0x1e   :  { %166 = vmatpush3.bf16.msra.mxu0 %v180_v8 }
  0x21   :  { %168 = vmatmul.mubr.bf16.vlgmr.msra.gmra.mrb[0].mxu0 %v18_v9 }
  0xf4   :  { %v117_v10 = vpop.f32.mrb[0].mxu0 }
  0xf5   :  { %129 = vst [vmem:[%s230_s2] sm:$0xff] %v117_v10  ;;  %v169_v11 = vpop.f32.mrb[1].mxu0 }
  0xf6   :  { %v120_v12 = vpop.f32.mrb[2].mxu0 }
  0xf7   :  { %v170_v13 = vpop.f32.mrb[3].mxu0 }

// kernel: _lambda_.51
= control target key start
LH: loop header
LB: loop body
LE: loop exit
PB: predicated region body
PF: predicated region fallthrough
CT: control target
= control target key end

     0   :  { %s84_s0 = inlined_call_operand.vmem [shape: f32[8,128], index: 0, kind: input, shape index: {}]   ;;  %s85_s1 = inlined_call_operand.vmem [shape: f32[1,128], index: 1, kind: input, shape index: {}]   ;;  %s86_s2 = inlined_call_operand.vmem [shape: f32[1,128], index: 2, kind: input, shape index: {}]   ;;  %s87_s3 = inlined_call_operand.vmem [shape: f32[8,128], index: 3, kind: input, shape index: {}]   ;;  %s88_s4 = inlined_call_operand.vmem [shape: f32[8,128], index: 4, kind: output, shape index: {}]  }
   0x1   :  { %v17_v0 = vld [vmem:[%s84_s0] sm:$0xff] }
   0x2   :  { %v42_v1 = vld [vmem:[%s85_s1] ss:$0 sm:$0xff] }
   0x3   :  { %v43_v2 = vld [vmem:[%s86_s2] ss:$0 sm:$0xff]  ;;  %v25_v3 = vmul.f32 %v42_v1, %v17_v0 }
   0x4   :  { %v34_v4 = vld [vmem:[%s87_s3] sm:$0xff] }
   0x5   :  { %v33_v5 = vadd.f32 %v43_v2, %v25_v3 }
   0x7   :  { %v35_v6 = vadd.f32 %v34_v4, %v33_v5 }
   0x9   :  { %v36_v7 = vmax.f32 %v35_v6, 0.0 }
   0xb   :  { %37 = vst [vmem:[%s88_s4] sm:$0xff] %v36_v7 }

// kernel: _lambda_.56
= control target key start
LH: loop header
LB: loop body
LE: loop exit
PB: predicated region body
PF: predicated region fallthrough
CT: control target
= control target key end

     0   :  { %s947_s9 = smov 0   ;;  %s949_s10 = smov 0   ;;  %s1046_s0 = inlined_call_operand.vmem [shape: bf16[8,1152], index: 0, kind: input, shape index: {}]   ;;  %s1047_s1 = inlined_call_operand.vmem [shape: bf16[1152,256], index: 1, kind: input, shape index: {}]   ;;  %s1048_s2 = inlined_call_operand.vmem [shape: f32[8,256], index: 2, kind: output, shape index: {}]  }
   0x1   :  { %s951_s11 = smov 0  }
   0x2 LB: > { %s24_s12 = sadd.s32 1, %s924_s10  ;;  %p743_p0 = scmp.ge.s32.totalorder %s928_s11, 1  ;;  %s928_s11 = sphi %s951_s11, %s12_s11   ;;  %s924_s10 = sphi %s949_s10, %s1050_s10   ;;  %s920_s9 = sphi %s947_s9, %s1049_s9  }
   0x3   : > { %p25_p1 = scmp.ge.s32.totalorder %s24_s12, 3  ;;  %p159_p2 = scmp.lt.s32.totalorder %s928_s11, 4 }
   0x5   : > { %s1052_s12 = smov (%p25_p1, %s24_s12), 0  ;;  %p160_p3 = pnand %p743_p0, %p159_p2 }
   0x6   : > { %s199_s13 = smul.u32 (!%p160_p3), 3, %s920_s9  ;;  %p747_p6 = scmp.ne.s32.totalorder (!%p160_p3), %s920_s9, 0 }
   0x7   : > { %163 = sbr.rel (%p160_p3) target bundleno = 315 (0x13b), region = 28 }
   0x8   : > { %s209_s14 = smul.u32 (!%p160_p3), 48, %s920_s9  ;;  %p202_p4 = scmp.lt.s32.totalorder (!%p160_p3), %s199_s13, 8 }
   0xa   : > { %p211_p5 = scmp.lt.s32.totalorder (!%p160_p3), %s209_s14, 143 }
   0xe   : > { %s1054_s13 = smov (!%p202_p4, %s199_s13), 8  ;;  %s1056_s14 = smov (!%p211_p5, %s209_s14), 143 }
   0xf   : > { %s744_s15 = sshll.u32 %s1054_s13, 2  ;;  %s804_s19 = sshll.u32 %s1056_s14, 3  ;;  %v930_v0 = vmov (!%p747_p6), 0.0  }
  0x10   : > { %s972_s18 = scalar_lea.vmem %s1046_s0, %s744_s15  ;;  %s977_s22 = scalar_lea.vmem %s1047_s1, %s804_s19  ;;  %236 = vst [vmem:[#allocation2] sm:$0xff] (!%p747_p6), %v930_v0  ;;  %237 = vst [vmem:[#allocation2 + $0x8] sm:$0xff] (!%p747_p6), %v930_v0 }
  0x11   : > { %235 = sbr.rel (%p747_p6) target bundleno = 24 (0x18), region = 32 }
  0x18 PF: > { %v831_v1 = vld [vmem:[%s977_s22 + $0x4] ss:$8 sps:$4 sm:$0xff]   ;;  %v833_v2 = vld [vmem:[%s977_s22] ss:$8 sps:$4 sm:$0xff]   ;;  %v931_v3 = vmov 0   ;;  %p799_p7 = scmp.ne.s32.totalorder %s920_s9, 2 }
  0x19   : > { %614 = vmatprep.mubr.bf16.mxu1 %v931_v3  ;;  %541 = vmatprep.subr.bf16.mxu0 %v831_v1  ;;  %v834_v4 = vld [vmem:[%s977_s22 + $0x14] ss:$8 sps:$4 sm:$0xff]   ;;  %v836_v5 = vld [vmem:[%s977_s22 + $0x10] ss:$8 sps:$4 sm:$0xff]   ;;  %v837_v6 = vld [vmem:[%s977_s22 + $0x24] ss:$8 sps:$4 sm:$0xff]  }
  0x1a   : > { %542 = vmatpush1.bf16.msra.mxu0 %v833_v2  ;;  %v839_v7 = vld [vmem:[%s977_s22 + $0x20] ss:$8 sps:$4 sm:$0xff]   ;;  %v840_v8 = vld [vmem:[%s977_s22 + $0x34] ss:$8 sps:$4 sm:$0xff]   ;;  %v842_v9 = vld [vmem:[%s977_s22 + $0x30] ss:$8 sps:$4 sm:$0xff]  }
  0x1b   : > { %543 = vmatprep.subr.bf16.mxu0 %v834_v4  ;;  %v855_v10 = vld [vmem:[%s977_s22 + $0x104] ss:$8 sps:$4 sm:$0xff]   ;;  %v857_v11 = vld [vmem:[%s977_s22 + $0x100] ss:$8 sps:$4 sm:$0xff]   ;;  %v861_v13 = vld [vmem:[%s977_s22 + $0x114] ss:$8 sps:$4 sm:$0xff]  }
  0x1c   : > { %v843_v12 = vld [vmem:[%s977_s22 + $0x44] ss:$8 sps:$4 sm:$0xff]   ;;  %582 = vmatprep.subr.bf16.mxu1 %v855_v10  ;;  %v863_v14 = vld [vmem:[%s977_s22 + $0x110] ss:$8 sps:$4 sm:$0xff]   ;;  %v845_v15 = vld [vmem:[%s977_s22 + $0x40] ss:$8 sps:$4 sm:$0xff]  }
  0x1d   : > { %583 = vmatpush1.bf16.msra.mxu1 %v857_v11  ;;  %v846_v16 = vld [vmem:[%s977_s22 + $0x54] ss:$8 sps:$4 sm:$0xff]   ;;  %v867_v17 = vld [vmem:[%s977_s22 + $0x124] ss:$8 sps:$4 sm:$0xff]   ;;  %v869_v18 = vld [vmem:[%s977_s22 + $0x120] ss:$8 sps:$4 sm:$0xff]  }
  0x1e   : > { %544 = vmatpush1.bf16.msra.mxu0 %v836_v5  ;;  %584 = vmatprep.subr.bf16.mxu1 %v861_v13  ;;  %v848_v19 = vld [vmem:[%s977_s22 + $0x50] ss:$8 sps:$4 sm:$0xff]   ;;  %v873_v20 = vld [vmem:[%s977_s22 + $0x134] ss:$8 sps:$4 sm:$0xff]   ;;  %v849_v21 = vld [vmem:[%s977_s22 + $0x64] ss:$8 sps:$4 sm:$0xff]  }
  0x1f   : > { %545 = vmatprep.subr.bf16.mxu0 %v837_v6  ;;  %v875_v22 = vld [vmem:[%s977_s22 + $0x130] ss:$8 sps:$4 sm:$0xff]   ;;  %v851_v23 = vld [vmem:[%s977_s22 + $0x60] ss:$8 sps:$4 sm:$0xff]   ;;  %v879_v24 = vld [vmem:[%s977_s22 + $0x144] ss:$8 sps:$4 sm:$0xff]  }
  0x20   : > { %v852_v25 = vld [vmem:[%s977_s22 + $0x74] ss:$8 sps:$4 sm:$0xff]   ;;  %v881_v26 = vld [vmem:[%s977_s22 + $0x140] ss:$8 sps:$4 sm:$0xff]   ;;  %v854_v27 = vld [vmem:[%s977_s22 + $0x70] ss:$8 sps:$4 sm:$0xff]  }
  0x21   : > { %585 = vmatpush1.bf16.msra.mxu1 %v863_v14  ;;  %v885_v28 = vld [vmem:[%s977_s22 + $0x154] ss:$8 sps:$4 sm:$0xff]   ;;  %v858_v29 = vld [vmem:[%s977_s22 + $0x84] ss:$8 sps:$4 sm:$0xff]   ;;  %v887_v30 = vld [vmem:[%s977_s22 + $0x150] ss:$8 sps:$4 sm:$0xff]  }
  0x22   : > { %546 = vmatpush1.bf16.msra.mxu0 %v839_v7  ;;  %586 = vmatprep.subr.bf16.mxu1 %v867_v17  ;;  %v860_v31 = vld [vmem:[%s977_s22 + $0x80] ss:$8 sps:$4 sm:$0xff]   ;;  %v891_v32 = vld [vmem:[%s977_s22 + $0x164] ss:$8 sps:$4 sm:$0xff]   ;;  %v864_v33 = vld [vmem:[%s977_s22 + $0x94] ss:$8 sps:$4 sm:$0xff]  }
  0x23   : > { %547 = vmatprep.subr.bf16.mxu0 %v840_v8  ;;  %v240_v34 = vld [vmem:[%s972_s18] sm:$0xff]  ;;  %v866_v37 = vld [vmem:[%s977_s22 + $0x90] ss:$8 sps:$4 sm:$0xff]   ;;  %v897_v38 = vld [vmem:[%s977_s22 + $0x174] ss:$8 sps:$4 sm:$0xff]  }
  0x24   : > { %v749_v35 = vcombine.high %v240_v34, %v240_v34  ;;  %v893_v36 = vld [vmem:[%s977_s22 + $0x160] ss:$8 sps:$4 sm:$0xff]   ;;  %v870_v39 = vld [vmem:[%s977_s22 + $0xa4] ss:$8 sps:$4 sm:$0xff]   ;;  %v899_v40 = vld [vmem:[%s977_s22 + $0x170] ss:$8 sps:$4 sm:$0xff]   ;;  %v748_v53 = vcombine.low %v240_v34, %v240_v34 }
  0x25   : > { %587 = vmatpush1.bf16.msra.mxu1 %v869_v18  ;;  %v872_v41 = vld [vmem:[%s977_s22 + $0xa0] ss:$8 sps:$4 sm:$0xff]   ;;  %v876_v42 = vld [vmem:[%s977_s22 + $0xb4] ss:$8 sps:$4 sm:$0xff]   ;;  %v878_v44 = vld [vmem:[%s977_s22 + $0xb0] ss:$8 sps:$4 sm:$0xff]  }
  0x26   : > { %548 = vmatpush1.bf16.msra.mxu0 %v842_v9  ;;  %588 = vmatprep.subr.bf16.mxu1 %v873_v20  ;;  %v903_v43 = vld [vmem:[%s972_s18 + $0x8] ss:$0 sps:$4 sm:$0xff]   ;;  %v882_v45 = vld [vmem:[%s977_s22 + $0xc4] ss:$8 sps:$4 sm:$0xff]   ;;  %v888_v47 = vld [vmem:[%s977_s22 + $0xd4] ss:$8 sps:$4 sm:$0xff]  }
  0x27   : > { %549 = vmatprep.subr.bf16.mxu0 %v843_v12  ;;  %573 = vmatprep.mubr.bf16.mxu0 %v749_v35  ;;  %v884_v46 = vld [vmem:[%s977_s22 + $0xc0] ss:$8 sps:$4 sm:$0xff]   ;;  %v890_v48 = vld [vmem:[%s977_s22 + $0xd0] ss:$8 sps:$4 sm:$0xff]   ;;  %v894_v49 = vld [vmem:[%s977_s22 + $0xe4] ss:$8 sps:$4 sm:$0xff]  }
  0x28   : > { %v896_v50 = vld [vmem:[%s977_s22 + $0xe0] ss:$8 sps:$4 sm:$0xff]   ;;  %v900_v51 = vld [vmem:[%s977_s22 + $0xf4] ss:$8 sps:$4 sm:$0xff]   ;;  %v902_v52 = vld [vmem:[%s977_s22 + $0xf0] ss:$8 sps:$4 sm:$0xff]  }
  0x29   : > { %589 = vmatpush1.bf16.msra.mxu1 %v875_v22  ;;  %v238_v58 = vld [vmem:[#allocation2] sm:$0xff]  ;;  %v239_v61 = vld [vmem:[#allocation2 + $0x8] sm:$0xff] }
  0x2a   : > { %550 = vmatpush1.bf16.msra.mxu0 %v845_v15  ;;  %590 = vmatprep.subr.bf16.mxu1 %v879_v24 }
  0x2b   : > { %551 = vmatprep.subr.bf16.mxu0 %v846_v16 }
  0x2d   : > { %591 = vmatpush1.bf16.msra.mxu1 %v881_v26 }
  0x2e   : > { %552 = vmatpush1.bf16.msra.mxu0 %v848_v19  ;;  %592 = vmatprep.subr.bf16.mxu1 %v885_v28 }
  0x2f   : > { %553 = vmatprep.subr.bf16.mxu0 %v849_v21 }
  0x31   : > { %593 = vmatpush1.bf16.msra.mxu1 %v887_v30 }
  0x32   : > { %554 = vmatpush1.bf16.msra.mxu0 %v851_v23  ;;  %594 = vmatprep.subr.bf16.mxu1 %v891_v32 }
  0x33   : > { %555 = vmatprep.subr.bf16.mxu0 %v852_v25 }
  0x35   : > { %595 = vmatpush1.bf16.msra.mxu1 %v893_v36 }
  0x36   : > { %556 = vmatpush1.bf16.msra.mxu0 %v854_v27  ;;  %596 = vmatprep.subr.bf16.mxu1 %v897_v38 }
  0x37   : > { %557 = vmatprep.subr.bf16.mxu0 %v858_v29 }
  0x39   : > { %597 = vmatpush1.bf16.msra.mxu1 %v899_v40 }
  0x3a   : > { %558 = vmatpush1.bf16.msra.mxu0 %v860_v31 }
  0x3b   : > { %559 = vmatprep.subr.bf16.mxu0 %v864_v33 }
  0x3c   : > { %615 = vmatmul.mubr.bf16.vlgmr.msra.gmra.mrb[0].mxu1 %v903_v43 }
  0x3e   : > { %560 = vmatpush1.bf16.msra.mxu0 %v866_v37 }
  0x3f   : > { %561 = vmatprep.subr.bf16.mxu0 %v870_v39 }
  0x42   : > { %562 = vmatpush1.bf16.msra.mxu0 %v872_v41 }
  0x43   : > { %563 = vmatprep.subr.bf16.mxu0 %v876_v42 }
  0x46   : > { %564 = vmatpush1.bf16.msra.mxu0 %v878_v44 }
  0x47   : > { %565 = vmatprep.subr.bf16.mxu0 %v882_v45 }
  0x4a   : > { %566 = vmatpush1.bf16.msra.mxu0 %v884_v46 }
  0x4b   : > { %567 = vmatprep.subr.bf16.mxu0 %v888_v47 }
  0x4e   : > { %568 = vmatpush1.bf16.msra.mxu0 %v890_v48 }
  0x4f   : > { %569 = vmatprep.subr.bf16.mxu0 %v894_v49 }
  0x52   : > { %570 = vmatpush1.bf16.msra.mxu0 %v896_v50 }
  0x53   : > { %571 = vmatprep.subr.bf16.mxu0 %v900_v51 }
  0x56   : > { %572 = vmatpush1.bf16.msra.mxu0 %v902_v52 }
  0x59   : > { %574 = vmatmul.mubr.bf16.vlgmr.msra.gmra.mrb[0].mxu0 %v748_v53 }
 0x10f   : > { %v616_v54 = vpop.f32.mrb[0].mxu1 }
 0x110   : > { %v618_v55 = vpop.f32.mrb[1].mxu1 }
 0x111   : > { %v620_v56 = vpop.f32.mrb[2].mxu1 }
 0x112   : > { %v621_v57 = vpop.f32.mrb[3].mxu1 }
 0x12c   : > { %v575_v59 = vpop.f32.mrb[0].mxu0  ;;  %630 = sbr.rel (%p799_p7) target bundleno = 315 (0x13b), region = 36 }
 0x12d   : > { %v617_v60 = vadd.f32 %v616_v54, %v575_v59  ;;  %v577_v62 = vpop.f32.mrb[1].mxu0 }
 0x12e   : > { %v619_v63 = vadd.f32 %v618_v55, %v577_v62  ;;  %v579_v0 = vpop.f32.mrb[2].mxu0 }
 0x12f   : > { %v623_v1 = vadd.f32 %v617_v60, %v238_v58  ;;  %v580_v2 = vpop.f32.mrb[3].mxu0 }
 0x130   : > { %v624_v3 = vadd.f32 %v619_v63, %v239_v61 }
 0x131   : > { %625 = vst [vmem:[#allocation2] sm:$0xff] %v623_v1 }
 0x132   : > { %626 = vst [vmem:[#allocation2 + $0x8] sm:$0xff] %v624_v3 }
 0x138   : > { %v631_v4 = vld [vmem:[#allocation2] sm:$0xff] }
 0x139   : > { %v632_v5 = vld [vmem:[#allocation2 + $0x8] sm:$0xff]  ;;  %633 = vst [vmem:[%s1048_s2] sm:$0xff] %v631_v4 }
 0x13a   : > { %634 = vst [vmem:[%s1048_s2 + $0x8] sm:$0xff] %v632_v5 }
 0x13b PF: > { %s12_s11 = sadd.s32 1, %s928_s11   ;;  %s1049_s9 = smov %s924_s10 }
 0x13c   : > { %p9_p8 = scmp.ge.s32.totalorder %s12_s11, 5   ;;  %s1050_s10 = smov %s1052_s12 }
 0x13e   :  { %11 = sbr.rel (!%p9_p8) target bundleno = 2 (0x2), region = 69 }

// kernel: _lambda_.57
= control target key start
LH: loop header
LB: loop body
LE: loop exit
PB: predicated region body
PF: predicated region fallthrough
CT: control target
= control target key end

     0   :  { %v18_v0 = vlaneseq  ;;  %s90_s1 = inlined_call_operand.vmem [shape: f32[1,256], index: 1, kind: input, shape index: {}]   ;;  %s91_s2 = inlined_call_operand.vmem [shape: f32[1,256], index: 2, kind: input, shape index: {}]   ;;  %s92_s0 = inlined_call_operand.vmem [shape: f32[8,256], index: 0, kind: input, shape index: {}]   ;;  %s93_s3 = inlined_call_operand.vmem [shape: f32[8,256], index: 3, kind: output, shape index: {}]  }
   0x1   :  { %v16_v2 = vld [vmem:[%s90_s1] sm:$0x3]  ;;  %v15_v7 = vld [vmem:[%s92_s0 + $0x8] sm:$0xff] }
   0x2   :  { %v19_v1 = vshrl.u32 %v18_v0, 7  ;;  %v30_v3 = vld [vmem:[%s91_s2] sm:$0x3] }
   0x3   :  { %v14_v6 = vld [vmem:[%s92_s0] sm:$0xff] }
   0x4   :  { %v20_v4 = vsub.s32 0, %v19_v1  ;;  %v24_v5 = vsub.s32 1, %v19_v1 }
   0x6   :  { %v21_v8 = vrot.slane %v16_v2, %v20_v4  ;;  %v35_v9 = vrot.slane %v30_v3, %v20_v4  ;;  %v25_v10 = vrot.slane %v16_v2, %v24_v5  ;;  %v39_v11 = vrot.slane %v30_v3, %v24_v5 }
   0x8   :  { %v28_v12 = vmul.f32 %v21_v8, %v14_v6  ;;  %v29_v13 = vmul.f32 %v25_v10, %v15_v7 }
   0xa   :  { %v42_v14 = vadd.f32 %v35_v9, %v28_v12  ;;  %v43_v15 = vadd.f32 %v39_v11, %v29_v13 }
   0xc   :  { %v44_v16 = vmax.f32 %v42_v14, 0.0  ;;  %v45_v17 = vmax.f32 %v43_v15, 0.0 }
   0xe   :  { %46 = vst [vmem:[%s93_s3] sm:$0xff] %v44_v16  ;;  %47 = vst [vmem:[%s93_s3 + $0x8] sm:$0xff] %v45_v17 }

// kernel: _lambda_.59
= control target key start
LH: loop header
LB: loop body
LE: loop exit
PB: predicated region body
PF: predicated region fallthrough
CT: control target
= control target key end

     0   :  { %v214_v1 = vmov 0   ;;  %s287_s1 = inlined_call_operand.vmem [shape: bf16[128,256], index: 1, kind: input, shape index: {}]   ;;  %s288_s0 = inlined_call_operand.vmem [shape: bf16[8,128], index: 0, kind: input, shape index: {}]   ;;  %s289_s2 = inlined_call_operand.vmem [shape: f32[8,256], index: 2, kind: output, shape index: {}]  }
   0x1   :  { %v190_v0 = vld [vmem:[%s287_s1 + $0x4] ss:$8 sps:$4 sm:$0xff]   ;;  %149 = vmatprep.mubr.bf16.mxu0 %v214_v1  ;;  %v192_v2 = vld [vmem:[%s287_s1] ss:$8 sps:$4 sm:$0xff]   ;;  %v193_v3 = vld [vmem:[%s287_s1 + $0x14] ss:$8 sps:$4 sm:$0xff]  }
   0x2   :  { %117 = vmatprep.subr.bf16.mxu0 %v190_v0  ;;  %v195_v4 = vld [vmem:[%s287_s1 + $0x10] ss:$8 sps:$4 sm:$0xff]   ;;  %v196_v5 = vld [vmem:[%s287_s1 + $0x24] ss:$8 sps:$4 sm:$0xff]   ;;  %v198_v6 = vld [vmem:[%s287_s1 + $0x20] ss:$8 sps:$4 sm:$0xff]  }
   0x3   :  { %118 = vmatpush1.bf16.msra.mxu0 %v192_v2  ;;  %v199_v7 = vld [vmem:[%s287_s1 + $0x34] ss:$8 sps:$4 sm:$0xff]   ;;  %v201_v8 = vld [vmem:[%s287_s1 + $0x30] ss:$8 sps:$4 sm:$0xff]   ;;  %v202_v9 = vld [vmem:[%s287_s1 + $0x44] ss:$8 sps:$4 sm:$0xff]  }
   0x4   :  { %119 = vmatprep.subr.bf16.mxu0 %v193_v3  ;;  %v204_v10 = vld [vmem:[%s287_s1 + $0x40] ss:$8 sps:$4 sm:$0xff]   ;;  %v205_v11 = vld [vmem:[%s287_s1 + $0x54] ss:$8 sps:$4 sm:$0xff]   ;;  %v207_v12 = vld [vmem:[%s287_s1 + $0x50] ss:$8 sps:$4 sm:$0xff]  }
   0x5   :  { %v208_v13 = vld [vmem:[%s287_s1 + $0x64] ss:$8 sps:$4 sm:$0xff]   ;;  %v210_v14 = vld [vmem:[%s287_s1 + $0x60] ss:$8 sps:$4 sm:$0xff]   ;;  %v211_v15 = vld [vmem:[%s287_s1 + $0x74] ss:$8 sps:$4 sm:$0xff]  }
   0x6   :  { %v213_v16 = vld [vmem:[%s287_s1 + $0x70] ss:$8 sps:$4 sm:$0xff]   ;;  %v20_v17 = vld [vmem:[%s288_s0] sm:$0xf] }
   0x7   :  { %120 = vmatpush1.bf16.msra.mxu0 %v195_v4 }
   0x8   :  { %121 = vmatprep.subr.bf16.mxu0 %v196_v5 }
   0xb   :  { %122 = vmatpush1.bf16.msra.mxu0 %v198_v6 }
   0xc   :  { %123 = vmatprep.subr.bf16.mxu0 %v199_v7 }
   0xf   :  { %124 = vmatpush1.bf16.msra.mxu0 %v201_v8 }
  0x10   :  { %125 = vmatprep.subr.bf16.mxu0 %v202_v9 }
  0x13   :  { %126 = vmatpush1.bf16.msra.mxu0 %v204_v10 }
  0x14   :  { %127 = vmatprep.subr.bf16.mxu0 %v205_v11 }
  0x17   :  { %128 = vmatpush1.bf16.msra.mxu0 %v207_v12 }
  0x18   :  { %129 = vmatprep.subr.bf16.mxu0 %v208_v13 }
  0x1b   :  { %130 = vmatpush1.bf16.msra.mxu0 %v210_v14 }
  0x1c   :  { %131 = vmatprep.subr.bf16.mxu0 %v211_v15 }
  0x1f   :  { %132 = vmatpush1.bf16.msra.mxu0 %v213_v16 }
  0x22   :  { %150 = vmatmul.mubr.bf16.vlgmr.msra.gmra.mrb[0].mxu0 %v20_v17 }
  0xf5   :  { %v151_v18 = vpop.f32.mrb[0].mxu0 }
  0xf6   :  { %167 = vst [vmem:[%s289_s2] sm:$0xff] %v151_v18  ;;  %v153_v19 = vpop.f32.mrb[1].mxu0 }
  0xf7   :  { %168 = vst [vmem:[%s289_s2 + $0x8] sm:$0xff] %v153_v19  ;;  %v155_v20 = vpop.f32.mrb[2].mxu0 }
  0xf8   :  { %v156_v21 = vpop.f32.mrb[3].mxu0 }

// kernel: _lambda_.58
= control target key start
LH: loop header
LB: loop body
LE: loop exit
PB: predicated region body
PF: predicated region fallthrough
CT: control target
= control target key end

     0   :  { %s947_s9 = smov 0   ;;  %s949_s10 = smov 0   ;;  %s1046_s0 = inlined_call_operand.vmem [shape: bf16[8,2304], index: 0, kind: input, shape index: {}]   ;;  %s1047_s1 = inlined_call_operand.vmem [shape: bf16[2304,256], index: 1, kind: input, shape index: {}]   ;;  %s1048_s2 = inlined_call_operand.vmem [shape: f32[8,256], index: 2, kind: output, shape index: {}]  }
   0x1   :  { %s951_s11 = smov 0  }
   0x2 LB: > { %s24_s12 = sadd.s32 1, %s924_s10  ;;  %p743_p0 = scmp.ge.s32.totalorder %s928_s11, 1  ;;  %s928_s11 = sphi %s951_s11, %s12_s11   ;;  %s924_s10 = sphi %s949_s10, %s1050_s10   ;;  %s920_s9 = sphi %s947_s9, %s1049_s9  }
   0x3   : > { %p25_p1 = scmp.ge.s32.totalorder %s24_s12, 6  ;;  %p159_p2 = scmp.lt.s32.totalorder %s928_s11, 7 }
   0x5   : > { %s1052_s12 = smov (%p25_p1, %s24_s12), 0  ;;  %p160_p3 = pnand %p743_p0, %p159_p2 }
   0x6   : > { %s199_s13 = smul.u32 (!%p160_p3), 3, %s920_s9  ;;  %p747_p6 = scmp.ne.s32.totalorder (!%p160_p3), %s920_s9, 0 }
   0x7   : > { %163 = sbr.rel (%p160_p3) target bundleno = 315 (0x13b), region = 28 }
   0x8   : > { %s209_s14 = smul.u32 (!%p160_p3), 48, %s920_s9  ;;  %p202_p4 = scmp.lt.s32.totalorder (!%p160_p3), %s199_s13, 17 }
   0xa   : > { %p211_p5 = scmp.lt.s32.totalorder (!%p160_p3), %s209_s14, 287 }
   0xe   : > { %s1054_s13 = smov (!%p202_p4, %s199_s13), 17  ;;  %s1056_s14 = smov (!%p211_p5, %s209_s14), 287 }
   0xf   : > { %s744_s15 = sshll.u32 %s1054_s13, 2  ;;  %s804_s19 = sshll.u32 %s1056_s14, 3  ;;  %v930_v0 = vmov (!%p747_p6), 0.0  }
  0x10   : > { %s972_s18 = scalar_lea.vmem %s1046_s0, %s744_s15  ;;  %s977_s22 = scalar_lea.vmem %s1047_s1, %s804_s19  ;;  %236 = vst [vmem:[#allocation2] sm:$0xff] (!%p747_p6), %v930_v0  ;;  %237 = vst [vmem:[#allocation2 + $0x8] sm:$0xff] (!%p747_p6), %v930_v0 }
  0x11   : > { %235 = sbr.rel (%p747_p6) target bundleno = 24 (0x18), region = 32 }
  0x18 PF: > { %v831_v1 = vld [vmem:[%s977_s22 + $0x4] ss:$8 sps:$4 sm:$0xff]   ;;  %v833_v2 = vld [vmem:[%s977_s22] ss:$8 sps:$4 sm:$0xff]   ;;  %v931_v3 = vmov 0   ;;  %p799_p7 = scmp.ne.s32.totalorder %s920_s9, 5 }
  0x19   : > { %614 = vmatprep.mubr.bf16.mxu1 %v931_v3  ;;  %541 = vmatprep.subr.bf16.mxu0 %v831_v1  ;;  %v834_v4 = vld [vmem:[%s977_s22 + $0x14] ss:$8 sps:$4 sm:$0xff]   ;;  %v836_v5 = vld [vmem:[%s977_s22 + $0x10] ss:$8 sps:$4 sm:$0xff]   ;;  %v837_v6 = vld [vmem:[%s977_s22 + $0x24] ss:$8 sps:$4 sm:$0xff]  }
  0x1a   : > { %542 = vmatpush1.bf16.msra.mxu0 %v833_v2  ;;  %v839_v7 = vld [vmem:[%s977_s22 + $0x20] ss:$8 sps:$4 sm:$0xff]   ;;  %v840_v8 = vld [vmem:[%s977_s22 + $0x34] ss:$8 sps:$4 sm:$0xff]   ;;  %v842_v9 = vld [vmem:[%s977_s22 + $0x30] ss:$8 sps:$4 sm:$0xff]  }
  0x1b   : > { %543 = vmatprep.subr.bf16.mxu0 %v834_v4  ;;  %v855_v10 = vld [vmem:[%s977_s22 + $0x104] ss:$8 sps:$4 sm:$0xff]   ;;  %v857_v11 = vld [vmem:[%s977_s22 + $0x100] ss:$8 sps:$4 sm:$0xff]   ;;  %v861_v13 = vld [vmem:[%s977_s22 + $0x114] ss:$8 sps:$4 sm:$0xff]  }
  0x1c   : > { %v843_v12 = vld [vmem:[%s977_s22 + $0x44] ss:$8 sps:$4 sm:$0xff]   ;;  %582 = vmatprep.subr.bf16.mxu1 %v855_v10  ;;  %v863_v14 = vld [vmem:[%s977_s22 + $0x110] ss:$8 sps:$4 sm:$0xff]   ;;  %v845_v15 = vld [vmem:[%s977_s22 + $0x40] ss:$8 sps:$4 sm:$0xff]  }
  0x1d   : > { %583 = vmatpush1.bf16.msra.mxu1 %v857_v11  ;;  %v846_v16 = vld [vmem:[%s977_s22 + $0x54] ss:$8 sps:$4 sm:$0xff]   ;;  %v867_v17 = vld [vmem:[%s977_s22 + $0x124] ss:$8 sps:$4 sm:$0xff]   ;;  %v869_v18 = vld [vmem:[%s977_s22 + $0x120] ss:$8 sps:$4 sm:$0xff]  }
  0x1e   : > { %544 = vmatpush1.bf16.msra.mxu0 %v836_v5  ;;  %584 = vmatprep.subr.bf16.mxu1 %v861_v13  ;;  %v848_v19 = vld [vmem:[%s977_s22 + $0x50] ss:$8 sps:$4 sm:$0xff]   ;;  %v873_v20 = vld [vmem:[%s977_s22 + $0x134] ss:$8 sps:$4 sm:$0xff]   ;;  %v849_v21 = vld [vmem:[%s977_s22 + $0x64] ss:$8 sps:$4 sm:$0xff]  }
  0x1f   : > { %545 = vmatprep.subr.bf16.mxu0 %v837_v6  ;;  %v875_v22 = vld [vmem:[%s977_s22 + $0x130] ss:$8 sps:$4 sm:$0xff]   ;;  %v851_v23 = vld [vmem:[%s977_s22 + $0x60] ss:$8 sps:$4 sm:$0xff]   ;;  %v879_v24 = vld [vmem:[%s977_s22 + $0x144] ss:$8 sps:$4 sm:$0xff]  }
  0x20   : > { %v852_v25 = vld [vmem:[%s977_s22 + $0x74] ss:$8 sps:$4 sm:$0xff]   ;;  %v881_v26 = vld [vmem:[%s977_s22 + $0x140] ss:$8 sps:$4 sm:$0xff]   ;;  %v854_v27 = vld [vmem:[%s977_s22 + $0x70] ss:$8 sps:$4 sm:$0xff]  }
  0x21   : > { %585 = vmatpush1.bf16.msra.mxu1 %v863_v14  ;;  %v885_v28 = vld [vmem:[%s977_s22 + $0x154] ss:$8 sps:$4 sm:$0xff]   ;;  %v858_v29 = vld [vmem:[%s977_s22 + $0x84] ss:$8 sps:$4 sm:$0xff]   ;;  %v887_v30 = vld [vmem:[%s977_s22 + $0x150] ss:$8 sps:$4 sm:$0xff]  }
  0x22   : > { %546 = vmatpush1.bf16.msra.mxu0 %v839_v7  ;;  %586 = vmatprep.subr.bf16.mxu1 %v867_v17  ;;  %v860_v31 = vld [vmem:[%s977_s22 + $0x80] ss:$8 sps:$4 sm:$0xff]   ;;  %v891_v32 = vld [vmem:[%s977_s22 + $0x164] ss:$8 sps:$4 sm:$0xff]   ;;  %v864_v33 = vld [vmem:[%s977_s22 + $0x94] ss:$8 sps:$4 sm:$0xff]  }
  0x23   : > { %547 = vmatprep.subr.bf16.mxu0 %v840_v8  ;;  %v240_v34 = vld [vmem:[%s972_s18] sm:$0xff]  ;;  %v866_v37 = vld [vmem:[%s977_s22 + $0x90] ss:$8 sps:$4 sm:$0xff]   ;;  %v897_v38 = vld [vmem:[%s977_s22 + $0x174] ss:$8 sps:$4 sm:$0xff]  }
  0x24   : > { %v749_v35 = vcombine.high %v240_v34, %v240_v34  ;;  %v893_v36 = vld [vmem:[%s977_s22 + $0x160] ss:$8 sps:$4 sm:$0xff]   ;;  %v870_v39 = vld [vmem:[%s977_s22 + $0xa4] ss:$8 sps:$4 sm:$0xff]   ;;  %v899_v40 = vld [vmem:[%s977_s22 + $0x170] ss:$8 sps:$4 sm:$0xff]   ;;  %v748_v53 = vcombine.low %v240_v34, %v240_v34 }
  0x25   : > { %587 = vmatpush1.bf16.msra.mxu1 %v869_v18  ;;  %v872_v41 = vld [vmem:[%s977_s22 + $0xa0] ss:$8 sps:$4 sm:$0xff]   ;;  %v876_v42 = vld [vmem:[%s977_s22 + $0xb4] ss:$8 sps:$4 sm:$0xff]   ;;  %v878_v44 = vld [vmem:[%s977_s22 + $0xb0] ss:$8 sps:$4 sm:$0xff]  }
  0x26   : > { %548 = vmatpush1.bf16.msra.mxu0 %v842_v9  ;;  %588 = vmatprep.subr.bf16.mxu1 %v873_v20  ;;  %v903_v43 = vld [vmem:[%s972_s18 + $0x8] ss:$0 sps:$4 sm:$0xff]   ;;  %v882_v45 = vld [vmem:[%s977_s22 + $0xc4] ss:$8 sps:$4 sm:$0xff]   ;;  %v888_v47 = vld [vmem:[%s977_s22 + $0xd4] ss:$8 sps:$4 sm:$0xff]  }
  0x27   : > { %549 = vmatprep.subr.bf16.mxu0 %v843_v12  ;;  %573 = vmatprep.mubr.bf16.mxu0 %v749_v35  ;;  %v884_v46 = vld [vmem:[%s977_s22 + $0xc0] ss:$8 sps:$4 sm:$0xff]   ;;  %v890_v48 = vld [vmem:[%s977_s22 + $0xd0] ss:$8 sps:$4 sm:$0xff]   ;;  %v894_v49 = vld [vmem:[%s977_s22 + $0xe4] ss:$8 sps:$4 sm:$0xff]  }
  0x28   : > { %v896_v50 = vld [vmem:[%s977_s22 + $0xe0] ss:$8 sps:$4 sm:$0xff]   ;;  %v900_v51 = vld [vmem:[%s977_s22 + $0xf4] ss:$8 sps:$4 sm:$0xff]   ;;  %v902_v52 = vld [vmem:[%s977_s22 + $0xf0] ss:$8 sps:$4 sm:$0xff]  }
  0x29   : > { %589 = vmatpush1.bf16.msra.mxu1 %v875_v22  ;;  %v238_v58 = vld [vmem:[#allocation2] sm:$0xff]  ;;  %v239_v61 = vld [vmem:[#allocation2 + $0x8] sm:$0xff] }
  0x2a   : > { %550 = vmatpush1.bf16.msra.mxu0 %v845_v15  ;;  %590 = vmatprep.subr.bf16.mxu1 %v879_v24 }
  0x2b   : > { %551 = vmatprep.subr.bf16.mxu0 %v846_v16 }
  0x2d   : > { %591 = vmatpush1.bf16.msra.mxu1 %v881_v26 }
  0x2e   : > { %552 = vmatpush1.bf16.msra.mxu0 %v848_v19  ;;  %592 = vmatprep.subr.bf16.mxu1 %v885_v28 }
  0x2f   : > { %553 = vmatprep.subr.bf16.mxu0 %v849_v21 }
  0x31   : > { %593 = vmatpush1.bf16.msra.mxu1 %v887_v30 }
  0x32   : > { %554 = vmatpush1.bf16.msra.mxu0 %v851_v23  ;;  %594 = vmatprep.subr.bf16.mxu1 %v891_v32 }
  0x33   : > { %555 = vmatprep.subr.bf16.mxu0 %v852_v25 }
  0x35   : > { %595 = vmatpush1.bf16.msra.mxu1 %v893_v36 }
  0x36   : > { %556 = vmatpush1.bf16.msra.mxu0 %v854_v27  ;;  %596 = vmatprep.subr.bf16.mxu1 %v897_v38 }
  0x37   : > { %557 = vmatprep.subr.bf16.mxu0 %v858_v29 }
  0x39   : > { %597 = vmatpush1.bf16.msra.mxu1 %v899_v40 }
  0x3a   : > { %558 = vmatpush1.bf16.msra.mxu0 %v860_v31 }
  0x3b   : > { %559 = vmatprep.subr.bf16.mxu0 %v864_v33 }
  0x3c   : > { %615 = vmatmul.mubr.bf16.vlgmr.msra.gmra.mrb[0].mxu1 %v903_v43 }
  0x3e   : > { %560 = vmatpush1.bf16.msra.mxu0 %v866_v37 }
  0x3f   : > { %561 = vmatprep.subr.bf16.mxu0 %v870_v39 }
  0x42   : > { %562 = vmatpush1.bf16.msra.mxu0 %v872_v41 }
  0x43   : > { %563 = vmatprep.subr.bf16.mxu0 %v876_v42 }
  0x46   : > { %564 = vmatpush1.bf16.msra.mxu0 %v878_v44 }
  0x47   : > { %565 = vmatprep.subr.bf16.mxu0 %v882_v45 }
  0x4a   : > { %566 = vmatpush1.bf16.msra.mxu0 %v884_v46 }
  0x4b   : > { %567 = vmatprep.subr.bf16.mxu0 %v888_v47 }
  0x4e   : > { %568 = vmatpush1.bf16.msra.mxu0 %v890_v48 }
  0x4f   : > { %569 = vmatprep.subr.bf16.mxu0 %v894_v49 }
  0x52   : > { %570 = vmatpush1.bf16.msra.mxu0 %v896_v50 }
  0x53   : > { %571 = vmatprep.subr.bf16.mxu0 %v900_v51 }
  0x56   : > { %572 = vmatpush1.bf16.msra.mxu0 %v902_v52 }
  0x59   : > { %574 = vmatmul.mubr.bf16.vlgmr.msra.gmra.mrb[0].mxu0 %v748_v53 }
 0x10f   : > { %v616_v54 = vpop.f32.mrb[0].mxu1 }
 0x110   : > { %v618_v55 = vpop.f32.mrb[1].mxu1 }
 0x111   : > { %v620_v56 = vpop.f32.mrb[2].mxu1 }
 0x112   : > { %v621_v57 = vpop.f32.mrb[3].mxu1 }
 0x12c   : > { %v575_v59 = vpop.f32.mrb[0].mxu0  ;;  %630 = sbr.rel (%p799_p7) target bundleno = 315 (0x13b), region = 36 }
 0x12d   : > { %v617_v60 = vadd.f32 %v616_v54, %v575_v59  ;;  %v577_v62 = vpop.f32.mrb[1].mxu0 }
 0x12e   : > { %v619_v63 = vadd.f32 %v618_v55, %v577_v62  ;;  %v579_v0 = vpop.f32.mrb[2].mxu0 }
 0x12f   : > { %v623_v1 = vadd.f32 %v617_v60, %v238_v58  ;;  %v580_v2 = vpop.f32.mrb[3].mxu0 }
 0x130   : > { %v624_v3 = vadd.f32 %v619_v63, %v239_v61 }
 0x131   : > { %625 = vst [vmem:[#allocation2] sm:$0xff] %v623_v1 }
 0x132   : > { %626 = vst [vmem:[#allocation2 + $0x8] sm:$0xff] %v624_v3 }
 0x138   : > { %v631_v4 = vld [vmem:[#allocation2] sm:$0xff] }
 0x139   : > { %v632_v5 = vld [vmem:[#allocation2 + $0x8] sm:$0xff]  ;;  %633 = vst [vmem:[%s1048_s2] sm:$0xff] %v631_v4 }
 0x13a   : > { %634 = vst [vmem:[%s1048_s2 + $0x8] sm:$0xff] %v632_v5 }
 0x13b PF: > { %s12_s11 = sadd.s32 1, %s928_s11   ;;  %s1049_s9 = smov %s924_s10 }
 0x13c   : > { %p9_p8 = scmp.ge.s32.totalorder %s12_s11, 8   ;;  %s1050_s10 = smov %s1052_s12 }
 0x13e   :  { %11 = sbr.rel (!%p9_p8) target bundleno = 2 (0x2), region = 69 }

// kernel: _lambda_.60
= control target key start
LH: loop header
LB: loop body
LE: loop exit
PB: predicated region body
PF: predicated region fallthrough
CT: control target
= control target key end

     0   :  { %v21_v0 = vlaneseq  ;;  %s108_s1 = inlined_call_operand.vmem [shape: f32[1,256], index: 1, kind: input, shape index: {}]   ;;  %s109_s2 = inlined_call_operand.vmem [shape: f32[1,256], index: 2, kind: input, shape index: {}]   ;;  %s110_s0 = inlined_call_operand.vmem [shape: f32[8,256], index: 0, kind: input, shape index: {}]   ;;  %s111_s3 = inlined_call_operand.vmem [shape: f32[8,256], index: 3, kind: input, shape index: {}]   ;;  %s112_s4 = inlined_call_operand.vmem [shape: f32[8,256], index: 4, kind: output, shape index: {}]  }
   0x1   :  { %v19_v2 = vld [vmem:[%s108_s1] sm:$0x3]  ;;  %v18_v7 = vld [vmem:[%s110_s0 + $0x8] sm:$0xff] }
   0x2   :  { %v22_v1 = vshrl.u32 %v21_v0, 7  ;;  %v33_v3 = vld [vmem:[%s109_s2] sm:$0x3]  ;;  %v48_v15 = vld [vmem:[%s111_s3 + $0x8] sm:$0xff] }
   0x3   :  { %v17_v6 = vld [vmem:[%s110_s0] sm:$0xff] }
   0x4   :  { %v23_v4 = vsub.s32 0, %v22_v1  ;;  %v27_v5 = vsub.s32 1, %v22_v1  ;;  %v47_v14 = vld [vmem:[%s111_s3] sm:$0xff] }
   0x6   :  { %v24_v8 = vrot.slane %v19_v2, %v23_v4  ;;  %v38_v9 = vrot.slane %v33_v3, %v23_v4  ;;  %v28_v10 = vrot.slane %v19_v2, %v27_v5  ;;  %v42_v11 = vrot.slane %v33_v3, %v27_v5 }
   0x8   :  { %v31_v12 = vmul.f32 %v24_v8, %v17_v6  ;;  %v32_v13 = vmul.f32 %v28_v10, %v18_v7 }
   0xa   :  { %v45_v16 = vadd.f32 %v38_v9, %v31_v12  ;;  %v46_v17 = vadd.f32 %v42_v11, %v32_v13 }
   0xc   :  { %v49_v18 = vadd.f32 %v47_v14, %v45_v16  ;;  %v50_v19 = vadd.f32 %v48_v15, %v46_v17 }
   0xe   :  { %v51_v20 = vmax.f32 %v49_v18, 0.0  ;;  %v52_v21 = vmax.f32 %v50_v19, 0.0 }
  0x10   :  { %53 = vst [vmem:[%s112_s4] sm:$0xff] %v51_v20  ;;  %54 = vst [vmem:[%s112_s4 + $0x8] sm:$0xff] %v52_v21 }

// kernel: _lambda_.66
= control target key start
LH: loop header
LB: loop body
LE: loop exit
PB: predicated region body
PF: predicated region fallthrough
CT: control target
= control target key end

     0   :  { %v20_v0 = vlaneseq  ;;  %s132_s1 = inlined_call_operand.vmem [shape: f32[1,512], index: 1, kind: input, shape index: {}]   ;;  %s133_s2 = inlined_call_operand.vmem [shape: f32[1,512], index: 2, kind: input, shape index: {}]   ;;  %s134_s0 = inlined_call_operand.vmem [shape: f32[8,512], index: 0, kind: input, shape index: {}]   ;;  %s135_s3 = inlined_call_operand.vmem [shape: f32[8,512], index: 3, kind: output, shape index: {}]  }
   0x1   :  { %v18_v2 = vld [vmem:[%s132_s1] sm:$0xf]  ;;  %v15_v9 = vld [vmem:[%s134_s0 + $0x8] sm:$0xff]  ;;  %v16_v14 = vld [vmem:[%s134_s0 + $0x10] sm:$0xff] }
   0x2   :  { %v21_v1 = vshrl.u32 %v20_v0, 7  ;;  %v44_v3 = vld [vmem:[%s133_s2] sm:$0xf]  ;;  %v17_v15 = vld [vmem:[%s134_s0 + $0x18] sm:$0xff] }
   0x3   :  { %v14_v8 = vld [vmem:[%s134_s0] sm:$0xff] }
   0x4   :  { %v22_v4 = vsub.s32 0, %v21_v1  ;;  %v26_v5 = vsub.s32 1, %v21_v1  ;;  %v30_v6 = vsub.s32 2, %v21_v1  ;;  %v34_v7 = vsub.s32 3, %v21_v1 }
   0x6   :  { %v23_v10 = vrot.slane %v18_v2, %v22_v4  ;;  %v49_v11 = vrot.slane %v44_v3, %v22_v4  ;;  %v27_v12 = vrot.slane %v18_v2, %v26_v5  ;;  %v53_v13 = vrot.slane %v44_v3, %v26_v5 }
   0x7   :  { %v31_v16 = vrot.slane %v18_v2, %v30_v6  ;;  %v57_v17 = vrot.slane %v44_v3, %v30_v6  ;;  %v35_v18 = vrot.slane %v18_v2, %v34_v7  ;;  %v61_v19 = vrot.slane %v44_v3, %v34_v7 }
   0x8   :  { %v40_v20 = vmul.f32 %v23_v10, %v14_v8  ;;  %v41_v21 = vmul.f32 %v27_v12, %v15_v9 }
   0x9   :  { %v42_v22 = vmul.f32 %v31_v16, %v16_v14  ;;  %v43_v23 = vmul.f32 %v35_v18, %v17_v15 }
   0xa   :  { %v66_v24 = vadd.f32 %v49_v11, %v40_v20  ;;  %v67_v25 = vadd.f32 %v53_v13, %v41_v21 }
   0xb   :  { %v68_v26 = vadd.f32 %v57_v17, %v42_v22  ;;  %v69_v27 = vadd.f32 %v61_v19, %v43_v23 }
   0xc   :  { %v70_v28 = vmax.f32 %v66_v24, 0.0  ;;  %v71_v29 = vmax.f32 %v67_v25, 0.0 }
   0xd   :  { %v72_v30 = vmax.f32 %v68_v26, 0.0  ;;  %v73_v31 = vmax.f32 %v69_v27, 0.0 }
   0xe   :  { %74 = vst [vmem:[%s135_s3] sm:$0xff] %v70_v28  ;;  %75 = vst [vmem:[%s135_s3 + $0x8] sm:$0xff] %v71_v29 }
   0xf   :  { %76 = vst [vmem:[%s135_s3 + $0x10] sm:$0xff] %v72_v30  ;;  %77 = vst [vmem:[%s135_s3 + $0x18] sm:$0xff] %v73_v31 }

// kernel: _lambda_.65
= control target key start
LH: loop header
LB: loop body
LE: loop exit
PB: predicated region body
PF: predicated region fallthrough
CT: control target
= control target key end

     0   :  { %s1449_s9 = smov 0   ;;  %s1451_s10 = smov 0   ;;  %s1612_s0 = inlined_call_operand.vmem [shape: bf16[8,2304], index: 0, kind: input, shape index: {}]   ;;  %s1613_s1 = inlined_call_operand.vmem [shape: bf16[2304,512], index: 1, kind: input, shape index: {}]   ;;  %s1614_s2 = inlined_call_operand.vmem [shape: f32[8,512], index: 2, kind: output, shape index: {}]  }
   0x1   :  { %s1453_s11 = smov 0  }
   0x2 LB: > { %s24_s12 = sadd.s32 1, %s1426_s10  ;;  %p1125_p0 = scmp.ge.s32.totalorder %s1430_s11, 1  ;;  %s1430_s11 = sphi %s1453_s11, %s12_s11   ;;  %s1426_s10 = sphi %s1451_s10, %s1616_s10   ;;  %s1422_s9 = sphi %s1449_s9, %s1615_s9  }
   0x3   : > { %p25_p1 = scmp.ge.s32.totalorder %s24_s12, 6  ;;  %p159_p2 = scmp.lt.s32.totalorder %s1430_s11, 7 }
   0x5   : > { %s1618_s12 = smov (%p25_p1, %s24_s12), 0  ;;  %p160_p3 = pnand %p1125_p0, %p159_p2 }
   0x6   : > { %s199_s13 = smul.u32 (!%p160_p3), 3, %s1422_s9  ;;  %p1129_p6 = scmp.ne.s32.totalorder (!%p160_p3), %s1422_s9, 0 }
   0x7   : > { %163 = sbr.rel (%p160_p3) target bundleno = 348 (0x15c), region = 28 }
   0x8   : > { %s209_s14 = smul.u32 (!%p160_p3), 48, %s1422_s9  ;;  %p202_p4 = scmp.lt.s32.totalorder (!%p160_p3), %s199_s13, 17 }
   0xa   : > { %p211_p5 = scmp.lt.s32.totalorder (!%p160_p3), %s209_s14, 287 }
   0xe   : > { %s1620_s13 = smov (!%p202_p4, %s199_s13), 17  ;;  %s1622_s14 = smov (!%p211_p5, %s209_s14), 287 }
   0xf   : > { %s1126_s15 = sshll.u32 %s1620_s13, 2  ;;  %s1234_s19 = sshll.u32 %s1622_s14, 4  ;;  %v1432_v0 = vmov (!%p1129_p6), 0.0  }
  0x10   : > { %s1474_s18 = scalar_lea.vmem %s1612_s0, %s1126_s15  ;;  %s1479_s22 = scalar_lea.vmem %s1613_s1, %s1234_s19  ;;  %236 = vst [vmem:[#allocation2] sm:$0xff] (!%p1129_p6), %v1432_v0  ;;  %237 = vst [vmem:[#allocation2 + $0x8] sm:$0xff] (!%p1129_p6), %v1432_v0 }
  0x11   : > { %235 = sbr.rel (%p1129_p6) target bundleno = 24 (0x18), region = 32  ;;  %238 = vst [vmem:[#allocation2 + $0x10] sm:$0xff] (!%p1129_p6), %v1432_v0  ;;  %239 = vst [vmem:[#allocation2 + $0x18] sm:$0xff] (!%p1129_p6), %v1432_v0 }
  0x18 PF: > { %v1261_v1 = vld [vmem:[%s1479_s22 + $0x4] ss:$16 sps:$4 sm:$0xff]   ;;  %v1433_v3 = vmov 0   ;;  %v1265_v4 = vld [vmem:[%s1479_s22] ss:$16 sps:$4 sm:$0xff]   ;;  %p1229_p7 = scmp.ne.s32.totalorder %s1422_s9, 5 }
  0x19   : > { %v1263_v2 = vld [vmem:[%s1479_s22 + $0x204] ss:$16 sps:$4 sm:$0xff]   ;;  %906 = vmatprep.mubr.bf16.mxu1 %v1433_v3  ;;  %833 = vmatprep.subr.bf16.mxu0 %v1261_v1  ;;  %v1266_v5 = vld [vmem:[%s1479_s22 + $0x200] ss:$16 sps:$4 sm:$0xff]   ;;  %v1314_v35 = vld [vmem:[%s1479_s22 + $0xc] ss:$16 sps:$4 sm:$0xff]  }
  0x1a   : > { %874 = vmatprep.subr.bf16.mxu1 %v1263_v2  ;;  %v1267_v6 = vld [vmem:[%s1479_s22 + $0x24] ss:$16 sps:$4 sm:$0xff]   ;;  %834 = vmatpush1.bf16.msra.mxu0 %v1265_v4  ;;  %v1271_v8 = vld [vmem:[%s1479_s22 + $0x20] ss:$16 sps:$4 sm:$0xff]   ;;  %v1518_v36 = vld [vmem:[%s1474_s18 + $0x8] ss:$0 sps:$4 sm:$0xff]  }
  0x1b   : > { %875 = vmatpush1.bf16.msra.mxu1 %v1266_v5  ;;  %v1269_v7 = vld [vmem:[%s1479_s22 + $0x224] ss:$16 sps:$4 sm:$0xff]   ;;  %835 = vmatprep.subr.bf16.mxu0 %v1267_v6  ;;  %v1272_v9 = vld [vmem:[%s1479_s22 + $0x220] ss:$16 sps:$4 sm:$0xff]   ;;  %v1312_v37 = vld [vmem:[%s1479_s22 + $0x8] ss:$16 sps:$4 sm:$0xff]  }
  0x1c   : > { %876 = vmatprep.subr.bf16.mxu1 %v1269_v7  ;;  %v1273_v10 = vld [vmem:[%s1479_s22 + $0x44] ss:$16 sps:$4 sm:$0xff]   ;;  %v1277_v12 = vld [vmem:[%s1479_s22 + $0x40] ss:$16 sps:$4 sm:$0xff]   ;;  %v1320_v40 = vld [vmem:[%s1479_s22 + $0x2c] ss:$16 sps:$4 sm:$0xff]  }
  0x1d   : > { %v1275_v11 = vld [vmem:[%s1479_s22 + $0x244] ss:$16 sps:$4 sm:$0xff]   ;;  %v1278_v13 = vld [vmem:[%s1479_s22 + $0x240] ss:$16 sps:$4 sm:$0xff]   ;;  %v1318_v41 = vld [vmem:[%s1479_s22 + $0x28] ss:$16 sps:$4 sm:$0xff]  }
  0x1e   : > { %836 = vmatpush1.bf16.msra.mxu0 %v1271_v8  ;;  %v1279_v14 = vld [vmem:[%s1479_s22 + $0x64] ss:$16 sps:$4 sm:$0xff]   ;;  %v1283_v16 = vld [vmem:[%s1479_s22 + $0x60] ss:$16 sps:$4 sm:$0xff]   ;;  %v1326_v44 = vld [vmem:[%s1479_s22 + $0x4c] ss:$16 sps:$4 sm:$0xff]  }
  0x1f   : > { %877 = vmatpush1.bf16.msra.mxu1 %v1272_v9  ;;  %837 = vmatprep.subr.bf16.mxu0 %v1273_v10  ;;  %v1281_v15 = vld [vmem:[%s1479_s22 + $0x264] ss:$16 sps:$4 sm:$0xff]   ;;  %v1284_v17 = vld [vmem:[%s1479_s22 + $0x260] ss:$16 sps:$4 sm:$0xff]   ;;  %v1324_v45 = vld [vmem:[%s1479_s22 + $0x48] ss:$16 sps:$4 sm:$0xff]  }
  0x20   : > { %878 = vmatprep.subr.bf16.mxu1 %v1275_v11  ;;  %v1285_v18 = vld [vmem:[%s1479_s22 + $0x84] ss:$16 sps:$4 sm:$0xff]   ;;  %v1289_v20 = vld [vmem:[%s1479_s22 + $0x80] ss:$16 sps:$4 sm:$0xff]   ;;  %v1332_v48 = vld [vmem:[%s1479_s22 + $0x6c] ss:$16 sps:$4 sm:$0xff]  }
  0x21   : > { %v1287_v19 = vld [vmem:[%s1479_s22 + $0x284] ss:$16 sps:$4 sm:$0xff]   ;;  %v1290_v21 = vld [vmem:[%s1479_s22 + $0x280] ss:$16 sps:$4 sm:$0xff]   ;;  %v1330_v49 = vld [vmem:[%s1479_s22 + $0x68] ss:$16 sps:$4 sm:$0xff]  }
  0x22   : > { %838 = vmatpush1.bf16.msra.mxu0 %v1277_v12  ;;  %v1291_v22 = vld [vmem:[%s1479_s22 + $0xa4] ss:$16 sps:$4 sm:$0xff]   ;;  %v1295_v24 = vld [vmem:[%s1479_s22 + $0xa0] ss:$16 sps:$4 sm:$0xff]   ;;  %v1338_v54 = vld [vmem:[%s1479_s22 + $0x8c] ss:$16 sps:$4 sm:$0xff]  }
  0x23   : > { %879 = vmatpush1.bf16.msra.mxu1 %v1278_v13  ;;  %839 = vmatprep.subr.bf16.mxu0 %v1279_v14  ;;  %v1293_v23 = vld [vmem:[%s1479_s22 + $0x2a4] ss:$16 sps:$4 sm:$0xff]   ;;  %v1296_v25 = vld [vmem:[%s1479_s22 + $0x2a0] ss:$16 sps:$4 sm:$0xff]   ;;  %v1336_v55 = vld [vmem:[%s1479_s22 + $0x88] ss:$16 sps:$4 sm:$0xff]  }
  0x24   : > { %880 = vmatprep.subr.bf16.mxu1 %v1281_v15  ;;  %v1297_v26 = vld [vmem:[%s1479_s22 + $0xc4] ss:$16 sps:$4 sm:$0xff]   ;;  %v1301_v28 = vld [vmem:[%s1479_s22 + $0xc0] ss:$16 sps:$4 sm:$0xff]   ;;  %v1344_v58 = vld [vmem:[%s1479_s22 + $0xac] ss:$16 sps:$4 sm:$0xff]  }
  0x25   : > { %v1299_v27 = vld [vmem:[%s1479_s22 + $0x2c4] ss:$16 sps:$4 sm:$0xff]   ;;  %v1302_v29 = vld [vmem:[%s1479_s22 + $0x2c0] ss:$16 sps:$4 sm:$0xff]   ;;  %v1342_v59 = vld [vmem:[%s1479_s22 + $0xa8] ss:$16 sps:$4 sm:$0xff]  }
  0x26   : > { %840 = vmatpush1.bf16.msra.mxu0 %v1283_v16  ;;  %v1303_v30 = vld [vmem:[%s1479_s22 + $0xe4] ss:$16 sps:$4 sm:$0xff]   ;;  %v1307_v32 = vld [vmem:[%s1479_s22 + $0xe0] ss:$16 sps:$4 sm:$0xff]   ;;  %v1350_v62 = vld [vmem:[%s1479_s22 + $0xcc] ss:$16 sps:$4 sm:$0xff]  }
  0x27   : > { %881 = vmatpush1.bf16.msra.mxu1 %v1284_v17  ;;  %841 = vmatprep.subr.bf16.mxu0 %v1285_v18  ;;  %v1305_v31 = vld [vmem:[%s1479_s22 + $0x2e4] ss:$16 sps:$4 sm:$0xff]   ;;  %v1308_v33 = vld [vmem:[%s1479_s22 + $0x2e0] ss:$16 sps:$4 sm:$0xff]   ;;  %v1348_v63 = vld [vmem:[%s1479_s22 + $0xc8] ss:$16 sps:$4 sm:$0xff]  }
  0x28   : > { %882 = vmatprep.subr.bf16.mxu1 %v1287_v19  ;;  %v1309_v34 = vld [vmem:[%s1479_s22 + $0x104] ss:$16 sps:$4 sm:$0xff]   ;;  %v1315_v38 = vld [vmem:[%s1479_s22 + $0x100] ss:$16 sps:$4 sm:$0xff]   ;;  %v1356_v2 = vld [vmem:[%s1479_s22 + $0xec] ss:$16 sps:$4 sm:$0xff]  }
  0x29   : > { %v1316_v39 = vld [vmem:[%s1479_s22 + $0x124] ss:$16 sps:$4 sm:$0xff]   ;;  %v1321_v42 = vld [vmem:[%s1479_s22 + $0x120] ss:$16 sps:$4 sm:$0xff]   ;;  %v1354_v4 = vld [vmem:[%s1479_s22 + $0xe8] ss:$16 sps:$4 sm:$0xff]  }
  0x2a   : > { %842 = vmatpush1.bf16.msra.mxu0 %v1289_v20  ;;  %v1322_v43 = vld [vmem:[%s1479_s22 + $0x144] ss:$16 sps:$4 sm:$0xff]   ;;  %v1327_v46 = vld [vmem:[%s1479_s22 + $0x140] ss:$16 sps:$4 sm:$0xff]   ;;  %v1362_v6 = vld [vmem:[%s1479_s22 + $0x10c] ss:$16 sps:$4 sm:$0xff]  }
  0x2b   : > { %883 = vmatpush1.bf16.msra.mxu1 %v1290_v21  ;;  %843 = vmatprep.subr.bf16.mxu0 %v1291_v22  ;;  %v1328_v47 = vld [vmem:[%s1479_s22 + $0x164] ss:$16 sps:$4 sm:$0xff]   ;;  %v1333_v51 = vld [vmem:[%s1479_s22 + $0x160] ss:$16 sps:$4 sm:$0xff]   ;;  %v1365_v7 = vld [vmem:[%s1479_s22 + $0x20c] ss:$16 sps:$4 sm:$0xff]  }
  0x2c   : > { %884 = vmatprep.subr.bf16.mxu1 %v1293_v23  ;;  %v244_v50 = vld [vmem:[%s1474_s18] sm:$0xff]  ;;  %v1360_v9 = vld [vmem:[%s1479_s22 + $0x108] ss:$16 sps:$4 sm:$0xff]   ;;  %v1368_v11 = vld [vmem:[%s1479_s22 + $0x12c] ss:$16 sps:$4 sm:$0xff]  }
  0x2d   : > { %v1334_v52 = vld [vmem:[%s1479_s22 + $0x184] ss:$16 sps:$4 sm:$0xff]   ;;  %v1131_v53 = vcombine.high %v244_v50, %v244_v50  ;;  %v1339_v56 = vld [vmem:[%s1479_s22 + $0x180] ss:$16 sps:$4 sm:$0xff]   ;;  %v1554_v8 = vcombine.low %v244_v50, %v244_v50  ;;  %v1363_v10 = vld [vmem:[%s1479_s22 + $0x208] ss:$16 sps:$4 sm:$0xff]  }
  0x2e   : > { %844 = vmatpush1.bf16.msra.mxu0 %v1295_v24  ;;  %v1340_v57 = vld [vmem:[%s1479_s22 + $0x1a4] ss:$16 sps:$4 sm:$0xff]   ;;  %v1345_v60 = vld [vmem:[%s1479_s22 + $0x1a0] ss:$16 sps:$4 sm:$0xff]   ;;  %v1371_v12 = vld [vmem:[%s1479_s22 + $0x22c] ss:$16 sps:$4 sm:$0xff]  }
  0x2f   : > { %885 = vmatpush1.bf16.msra.mxu1 %v1296_v25  ;;  %845 = vmatprep.subr.bf16.mxu0 %v1297_v26  ;;  %v1346_v61 = vld [vmem:[%s1479_s22 + $0x1c4] ss:$16 sps:$4 sm:$0xff]   ;;  %v1351_v0 = vld [vmem:[%s1479_s22 + $0x1c0] ss:$16 sps:$4 sm:$0xff]   ;;  %v1366_v13 = vld [vmem:[%s1479_s22 + $0x128] ss:$16 sps:$4 sm:$0xff]  }
  0x30   : > { %886 = vmatprep.subr.bf16.mxu1 %v1299_v27  ;;  %865 = vmatprep.mubr.bf16.mxu0 %v1131_v53  ;;  %v1352_v1 = vld [vmem:[%s1479_s22 + $0x1e4] ss:$16 sps:$4 sm:$0xff]   ;;  %v1357_v5 = vld [vmem:[%s1479_s22 + $0x1e0] ss:$16 sps:$4 sm:$0xff]   ;;  %v1369_v14 = vld [vmem:[%s1479_s22 + $0x228] ss:$16 sps:$4 sm:$0xff]  }
  0x31   : > { %v1374_v15 = vld [vmem:[%s1479_s22 + $0x14c] ss:$16 sps:$4 sm:$0xff]   ;;  %v1372_v17 = vld [vmem:[%s1479_s22 + $0x148] ss:$16 sps:$4 sm:$0xff]  }
  0x32   : > { %846 = vmatpush1.bf16.msra.mxu0 %v1301_v28  ;;  %v1377_v16 = vld [vmem:[%s1479_s22 + $0x24c] ss:$16 sps:$4 sm:$0xff]   ;;  %v1375_v18 = vld [vmem:[%s1479_s22 + $0x248] ss:$16 sps:$4 sm:$0xff]  }
  0x33   : > { %887 = vmatpush1.bf16.msra.mxu1 %v1302_v29  ;;  %847 = vmatprep.subr.bf16.mxu0 %v1303_v30  ;;  %v1380_v19 = vld [vmem:[%s1479_s22 + $0x16c] ss:$16 sps:$4 sm:$0xff]   ;;  %v1378_v21 = vld [vmem:[%s1479_s22 + $0x168] ss:$16 sps:$4 sm:$0xff]  }
  0x34   : > { %888 = vmatprep.subr.bf16.mxu1 %v1305_v31  ;;  %v1383_v20 = vld [vmem:[%s1479_s22 + $0x26c] ss:$16 sps:$4 sm:$0xff]   ;;  %v1381_v22 = vld [vmem:[%s1479_s22 + $0x268] ss:$16 sps:$4 sm:$0xff]  }
  0x35   : > { %v1389_v23 = vld [vmem:[%s1479_s22 + $0x28c] ss:$16 sps:$4 sm:$0xff]   ;;  %v1384_v24 = vld [vmem:[%s1479_s22 + $0x188] ss:$16 sps:$4 sm:$0xff]  }
  0x36   : > { %848 = vmatpush1.bf16.msra.mxu0 %v1307_v32  ;;  %v1387_v25 = vld [vmem:[%s1479_s22 + $0x288] ss:$16 sps:$4 sm:$0xff]   ;;  %v1392_v26 = vld [vmem:[%s1479_s22 + $0x1ac] ss:$16 sps:$4 sm:$0xff]  }
  0x37   : > { %889 = vmatpush1.bf16.msra.mxu1 %v1308_v33  ;;  %849 = vmatprep.subr.bf16.mxu0 %v1309_v34  ;;  %v1395_v27 = vld [vmem:[%s1479_s22 + $0x2ac] ss:$16 sps:$4 sm:$0xff]   ;;  %v1390_v28 = vld [vmem:[%s1479_s22 + $0x1a8] ss:$16 sps:$4 sm:$0xff]  }
  0x38   : > { %915 = vmatprep.subr.bf16.mxu1 %v1314_v35  ;;  %v1393_v29 = vld [vmem:[%s1479_s22 + $0x2a8] ss:$16 sps:$4 sm:$0xff]   ;;  %v1398_v30 = vld [vmem:[%s1479_s22 + $0x1cc] ss:$16 sps:$4 sm:$0xff]  }
  0x39   : > { %v1401_v31 = vld [vmem:[%s1479_s22 + $0x2cc] ss:$16 sps:$4 sm:$0xff]   ;;  %v1396_v32 = vld [vmem:[%s1479_s22 + $0x1c8] ss:$16 sps:$4 sm:$0xff]  }
  0x3a   : > { %907 = vmatmul.mubr.bf16.vlgmr.msra.gmra.mrb[0].mxu1 %v1518_v36  ;;  %850 = vmatpush1.bf16.msra.mxu0 %v1315_v38  ;;  %v1399_v33 = vld [vmem:[%s1479_s22 + $0x2c8] ss:$16 sps:$4 sm:$0xff]   ;;  %v1404_v34 = vld [vmem:[%s1479_s22 + $0x1ec] ss:$16 sps:$4 sm:$0xff]  }
  0x3b   : > { %916 = vmatpush1.bf16.msra.mxu1 %v1312_v37  ;;  %851 = vmatprep.subr.bf16.mxu0 %v1316_v39  ;;  %v1407_v35 = vld [vmem:[%s1479_s22 + $0x2ec] ss:$16 sps:$4 sm:$0xff]   ;;  %v1402_v37 = vld [vmem:[%s1479_s22 + $0x1e8] ss:$16 sps:$4 sm:$0xff]  }
  0x3c   : > { %917 = vmatprep.subr.bf16.mxu1 %v1320_v40  ;;  %947 = vmatprep.mubr.bf16.mxu1 %v1131_v53  ;;  %v1405_v38 = vld [vmem:[%s1479_s22 + $0x2e8] ss:$16 sps:$4 sm:$0xff]  }
  0x3e   : > { %852 = vmatpush1.bf16.msra.mxu0 %v1321_v42 }
  0x3f   : > { %918 = vmatpush1.bf16.msra.mxu1 %v1318_v41  ;;  %853 = vmatprep.subr.bf16.mxu0 %v1322_v43  ;;  %v240_v43 = vld [vmem:[#allocation2] sm:$0xff] }
  0x40   : > { %919 = vmatprep.subr.bf16.mxu1 %v1326_v44 }
  0x42   : > { %854 = vmatpush1.bf16.msra.mxu0 %v1327_v46  ;;  %v241_v46 = vld [vmem:[#allocation2 + $0x8] sm:$0xff] }
  0x43   : > { %920 = vmatpush1.bf16.msra.mxu1 %v1324_v45  ;;  %855 = vmatprep.subr.bf16.mxu0 %v1328_v47 }
  0x44   : > { %921 = vmatprep.subr.bf16.mxu1 %v1332_v48 }
  0x46   : > { %856 = vmatpush1.bf16.msra.mxu0 %v1333_v51 }
  0x47   : > { %922 = vmatpush1.bf16.msra.mxu1 %v1330_v49  ;;  %857 = vmatprep.subr.bf16.mxu0 %v1334_v52 }
  0x48   : > { %923 = vmatprep.subr.bf16.mxu1 %v1338_v54  ;;  %v242_v54 = vld [vmem:[#allocation2 + $0x10] sm:$0xff] }
  0x4a   : > { %858 = vmatpush1.bf16.msra.mxu0 %v1339_v56 }
  0x4b   : > { %924 = vmatpush1.bf16.msra.mxu1 %v1336_v55  ;;  %859 = vmatprep.subr.bf16.mxu0 %v1340_v57  ;;  %v243_v57 = vld [vmem:[#allocation2 + $0x18] sm:$0xff] }
  0x4c   : > { %925 = vmatprep.subr.bf16.mxu1 %v1344_v58 }
  0x4e   : > { %860 = vmatpush1.bf16.msra.mxu0 %v1345_v60 }
  0x4f   : > { %926 = vmatpush1.bf16.msra.mxu1 %v1342_v59  ;;  %861 = vmatprep.subr.bf16.mxu0 %v1346_v61 }
  0x50   : > { %927 = vmatprep.subr.bf16.mxu1 %v1350_v62 }
  0x52   : > { %862 = vmatpush1.bf16.msra.mxu0 %v1351_v0 }
  0x53   : > { %928 = vmatpush1.bf16.msra.mxu1 %v1348_v63  ;;  %863 = vmatprep.subr.bf16.mxu0 %v1352_v1 }
  0x54   : > { %929 = vmatprep.subr.bf16.mxu1 %v1356_v2 }
  0x56   : > { %864 = vmatpush1.bf16.msra.mxu0 %v1357_v5 }
  0x57   : > { %930 = vmatpush1.bf16.msra.mxu1 %v1354_v4  ;;  %956 = vmatprep.subr.bf16.mxu0 %v1365_v7 }
  0x58   : > { %931 = vmatprep.subr.bf16.mxu1 %v1362_v6 }
  0x59   : > { %866 = vmatmul.mubr.bf16.vlgmr.msra.gmra.mrb[0].mxu0 %v1554_v8 }
  0x5a   : > { %957 = vmatpush1.bf16.msra.mxu0 %v1363_v10  ;;  %988 = vmatprep.mubr.bf16.mxu0 %v1433_v3  ;;  %v1386_v3 = vld [vmem:[%s1479_s22 + $0x18c] ss:$16 sps:$4 sm:$0xff]  }
  0x5b   : > { %932 = vmatpush1.bf16.msra.mxu1 %v1360_v9  ;;  %958 = vmatprep.subr.bf16.mxu0 %v1371_v12 }
  0x5c   : > { %933 = vmatprep.subr.bf16.mxu1 %v1368_v11 }
  0x5e   : > { %959 = vmatpush1.bf16.msra.mxu0 %v1369_v14 }
  0x5f   : > { %934 = vmatpush1.bf16.msra.mxu1 %v1366_v13  ;;  %960 = vmatprep.subr.bf16.mxu0 %v1377_v16 }
  0x60   : > { %935 = vmatprep.subr.bf16.mxu1 %v1374_v15 }
  0x62   : > { %961 = vmatpush1.bf16.msra.mxu0 %v1375_v18 }
  0x63   : > { %936 = vmatpush1.bf16.msra.mxu1 %v1372_v17  ;;  %962 = vmatprep.subr.bf16.mxu0 %v1383_v20 }
  0x64   : > { %937 = vmatprep.subr.bf16.mxu1 %v1380_v19 }
  0x66   : > { %963 = vmatpush1.bf16.msra.mxu0 %v1381_v22 }
  0x67   : > { %938 = vmatpush1.bf16.msra.mxu1 %v1378_v21  ;;  %964 = vmatprep.subr.bf16.mxu0 %v1389_v23 }
  0x68   : > { %939 = vmatprep.subr.bf16.mxu1 %v1386_v3 }
  0x6a   : > { %965 = vmatpush1.bf16.msra.mxu0 %v1387_v25 }
  0x6b   : > { %940 = vmatpush1.bf16.msra.mxu1 %v1384_v24  ;;  %966 = vmatprep.subr.bf16.mxu0 %v1395_v27 }
  0x6c   : > { %941 = vmatprep.subr.bf16.mxu1 %v1392_v26 }
  0x6e   : > { %967 = vmatpush1.bf16.msra.mxu0 %v1393_v29 }
  0x6f   : > { %942 = vmatpush1.bf16.msra.mxu1 %v1390_v28  ;;  %968 = vmatprep.subr.bf16.mxu0 %v1401_v31 }
  0x70   : > { %943 = vmatprep.subr.bf16.mxu1 %v1398_v30 }
  0x72   : > { %969 = vmatpush1.bf16.msra.mxu0 %v1399_v33 }
  0x73   : > { %944 = vmatpush1.bf16.msra.mxu1 %v1396_v32  ;;  %970 = vmatprep.subr.bf16.mxu0 %v1407_v35 }
  0x74   : > { %945 = vmatprep.subr.bf16.mxu1 %v1404_v34 }
  0x76   : > { %971 = vmatpush1.bf16.msra.mxu0 %v1405_v38 }
  0x77   : > { %946 = vmatpush1.bf16.msra.mxu1 %v1402_v37 }
  0x79   : > { %989 = vmatmul.mubr.bf16.vlgmr.msra.gmra.mrb[4].mxu0 %v1518_v36 }
  0x7a   : > { %948 = vmatmul.mubr.bf16.vlgmr.msra.gmra.mrb[4].mxu1 %v1554_v8 }
 0x10d   : > { %v908_v39 = vpop.f32.mrb[0].mxu1 }
 0x10e   : > { %v910_v40 = vpop.f32.mrb[1].mxu1 }
 0x10f   : > { %v912_v41 = vpop.f32.mrb[2].mxu1 }
 0x110   : > { %v913_v42 = vpop.f32.mrb[3].mxu1 }
 0x12c   : > { %v867_v44 = vpop.f32.mrb[0].mxu0 }
 0x12d   : > { %v909_v45 = vadd.f32 %v908_v39, %v867_v44  ;;  %v869_v47 = vpop.f32.mrb[1].mxu0 }
 0x12e   : > { %v911_v48 = vadd.f32 %v910_v40, %v869_v47  ;;  %v871_v49 = vpop.f32.mrb[2].mxu0 }
 0x12f   : > { %v997_v50 = vadd.f32 %v909_v45, %v240_v43  ;;  %v872_v51 = vpop.f32.mrb[3].mxu0 }
 0x130   : > { %v998_v52 = vadd.f32 %v911_v48, %v241_v46 }
 0x131   : > { %1001 = vst [vmem:[#allocation2] sm:$0xff] %v997_v50 }
 0x132   : > { %1002 = vst [vmem:[#allocation2 + $0x8] sm:$0xff] %v998_v52 }
 0x138   : > { %v1009_v2 = vld [vmem:[#allocation2] sm:$0xff] (!%p1229_p7) }
 0x139   : > { %v1010_v4 = vld [vmem:[#allocation2 + $0x8] sm:$0xff] (!%p1229_p7)  ;;  %1013 = vst [vmem:[%s1614_s2] sm:$0xff] (!%p1229_p7), %v1009_v2 }
 0x13a   : > { %1014 = vst [vmem:[%s1614_s2 + $0x8] sm:$0xff] (!%p1229_p7), %v1010_v4 }
 0x14c   : > { %v990_v55 = vpop.f32.mrb[4].mxu0 }
 0x14d   : > { %v949_v53 = vpop.f32.mrb[4].mxu1  ;;  %v992_v58 = vpop.f32.mrb[5].mxu0  ;;  %1008 = sbr.rel (%p1229_p7) target bundleno = 348 (0x15c), region = 36 }
 0x14e   : > { %v991_v36 = vadd.f32 %v990_v55, %v949_v53  ;;  %v951_v56 = vpop.f32.mrb[5].mxu1  ;;  %v994_v61 = vpop.f32.mrb[6].mxu0 }
 0x14f   : > { %v993_v59 = vadd.f32 %v992_v58, %v951_v56  ;;  %v953_v60 = vpop.f32.mrb[6].mxu1  ;;  %v995_v0 = vpop.f32.mrb[7].mxu0 }
 0x150   : > { %v999_v62 = vadd.f32 %v991_v36, %v242_v54  ;;  %v954_v63 = vpop.f32.mrb[7].mxu1 }
 0x151   : > { %v1000_v1 = vadd.f32 %v993_v59, %v243_v57 }
 0x152   : > { %1003 = vst [vmem:[#allocation2 + $0x10] sm:$0xff] %v999_v62 }
 0x153   : > { %1004 = vst [vmem:[#allocation2 + $0x18] sm:$0xff] %v1000_v1 }
 0x159   : > { %v1011_v5 = vld [vmem:[#allocation2 + $0x10] sm:$0xff] }
 0x15a   : > { %1015 = vst [vmem:[%s1614_s2 + $0x10] sm:$0xff] %v1011_v5  ;;  %v1012_v6 = vld [vmem:[#allocation2 + $0x18] sm:$0xff] }
 0x15b   : > { %1016 = vst [vmem:[%s1614_s2 + $0x18] sm:$0xff] %v1012_v6 }
 0x15c PF: > { %s12_s11 = sadd.s32 1, %s1430_s11   ;;  %s1615_s9 = smov %s1426_s10 }
 0x15d   : > { %p9_p8 = scmp.ge.s32.totalorder %s12_s11, 8   ;;  %s1616_s10 = smov %s1618_s12 }
 0x15f   :  { %11 = sbr.rel (!%p9_p8) target bundleno = 2 (0x2), region = 69 }

// kernel: _lambda_.67
= control target key start
LH: loop header
LB: loop body
LE: loop exit
PB: predicated region body
PF: predicated region fallthrough
CT: control target
= control target key end

     0   :  { %s1725_s9 = smov 0   ;;  %s1727_s10 = smov 0   ;;  %s1922_s0 = inlined_call_operand.vmem [shape: bf16[8,4608], index: 0, kind: input, shape index: {}]   ;;  %s1923_s1 = inlined_call_operand.vmem [shape: bf16[4608,512], index: 1, kind: input, shape index: {}]   ;;  %s1924_s2 = inlined_call_operand.vmem [shape: f32[8,512], index: 2, kind: output, shape index: {}]  }
   0x1   :  { %s1729_s11 = smov 0  }
   0x2 LB: > { %s24_s12 = sadd.s32 1, %s1703_s10  ;;  %p1319_p0 = scmp.ge.s32.totalorder %s1707_s11, 1  ;;  %s1707_s11 = sphi %s1729_s11, %s12_s11   ;;  %s1703_s10 = sphi %s1727_s10, %s1926_s10   ;;  %s1699_s9 = sphi %s1725_s9, %s1925_s9  }
   0x3   : > { %p25_p1 = scmp.ge.s32.totalorder %s24_s12, 9  ;;  %p159_p2 = scmp.lt.s32.totalorder %s1707_s11, 10 }
   0x5   : > { %s1928_s12 = smov (%p25_p1, %s24_s12), 0  ;;  %p160_p3 = pnand %p1319_p0, %p159_p2 }
   0x6   : > { %s1320_s13 = sshll.u32 (!%p160_p3), %s1699_s9, 2  ;;  %s1322_s14 = sshll.u32 (!%p160_p3), %s1699_s9, 6 }
   0x7   : > { %163 = sbr.rel (%p160_p3) target bundleno = 380 (0x17c), region = 28  ;;  %p202_p4 = scmp.lt.s32.totalorder (!%p160_p3), %s1320_s13, 35 }
   0x8   : > { %p211_p5 = scmp.lt.s32.totalorder (!%p160_p3), %s1322_s14, 575  ;;  %p1325_p6 = scmp.ne.s32.totalorder (!%p160_p3), %s1699_s9, 0 }
   0xe   : > { %s1930_s13 = smov (!%p202_p4, %s1320_s13), 35  ;;  %s1932_s14 = smov (!%p211_p5, %s1322_s14), 575 }
   0xf   : > { %s1321_s15 = sshll.u32 %s1930_s13, 2  ;;  %s1463_s19 = sshll.u32 %s1932_s14, 4  ;;  %v1709_v0 = vmov (!%p1325_p6), 0.0  }
  0x10   : > { %s1750_s18 = scalar_lea.vmem %s1922_s0, %s1321_s15  ;;  %s1755_s22 = scalar_lea.vmem %s1923_s1, %s1463_s19  ;;  %235 = vst [vmem:[#allocation2] sm:$0xff] (!%p1325_p6), %v1709_v0  ;;  %236 = vst [vmem:[#allocation2 + $0x8] sm:$0xff] (!%p1325_p6), %v1709_v0 }
  0x11   : > { %234 = sbr.rel (%p1325_p6) target bundleno = 24 (0x18), region = 32  ;;  %237 = vst [vmem:[#allocation2 + $0x10] sm:$0xff] (!%p1325_p6), %v1709_v0  ;;  %238 = vst [vmem:[#allocation2 + $0x18] sm:$0xff] (!%p1325_p6), %v1709_v0 }
  0x18 PF: > { %v1489_v1 = vld [vmem:[%s1755_s22 + $0x4] ss:$16 sps:$4 sm:$0xff]   ;;  %v1493_v3 = vld [vmem:[%s1755_s22] ss:$16 sps:$4 sm:$0xff]   ;;  %v244_v49 = vld [vmem:[%s1750_s18 + $0x8] sm:$0xff]  ;;  %p1458_p7 = scmp.ne.s32.totalorder %s1699_s9, 8 }
  0x19   : > { %v1491_v2 = vld [vmem:[%s1755_s22 + $0x204] ss:$16 sps:$4 sm:$0xff]   ;;  %1027 = vmatprep.subr.bf16.mxu0 %v1489_v1  ;;  %v1494_v4 = vld [vmem:[%s1755_s22 + $0x200] ss:$16 sps:$4 sm:$0xff]   ;;  %v1329_v52 = vcombine.high %v244_v49, %v244_v49 }
  0x1a   : > { %1068 = vmatprep.subr.bf16.mxu1 %v1491_v2  ;;  %v1495_v5 = vld [vmem:[%s1755_s22 + $0x24] ss:$16 sps:$4 sm:$0xff]   ;;  %1028 = vmatpush1.bf16.msra.mxu0 %v1493_v3  ;;  %v1499_v7 = vld [vmem:[%s1755_s22 + $0x20] ss:$16 sps:$4 sm:$0xff]  }
  0x1b   : > { %1069 = vmatpush1.bf16.msra.mxu1 %v1494_v4  ;;  %v1497_v6 = vld [vmem:[%s1755_s22 + $0x224] ss:$16 sps:$4 sm:$0xff]   ;;  %1029 = vmatprep.subr.bf16.mxu0 %v1495_v5  ;;  %v1500_v8 = vld [vmem:[%s1755_s22 + $0x220] ss:$16 sps:$4 sm:$0xff]   ;;  %v1591_v5 = vld [vmem:[%s1755_s22 + $0xc] ss:$16 sps:$4 sm:$0xff]  }
  0x1c   : > { %1070 = vmatprep.subr.bf16.mxu1 %v1497_v6  ;;  %v1501_v9 = vld [vmem:[%s1755_s22 + $0x44] ss:$16 sps:$4 sm:$0xff]   ;;  %v1505_v11 = vld [vmem:[%s1755_s22 + $0x40] ss:$16 sps:$4 sm:$0xff]   ;;  %1100 = vmatprep.mubr.bf16.mxu1 %v1329_v52  ;;  %v1594_v6 = vld [vmem:[%s1755_s22 + $0x20c] ss:$16 sps:$4 sm:$0xff]  }
  0x1d   : > { %v1503_v10 = vld [vmem:[%s1755_s22 + $0x244] ss:$16 sps:$4 sm:$0xff]   ;;  %v1506_v12 = vld [vmem:[%s1755_s22 + $0x240] ss:$16 sps:$4 sm:$0xff]  }
  0x1e   : > { %1030 = vmatpush1.bf16.msra.mxu0 %v1499_v7  ;;  %v1507_v13 = vld [vmem:[%s1755_s22 + $0x64] ss:$16 sps:$4 sm:$0xff]   ;;  %v1511_v15 = vld [vmem:[%s1755_s22 + $0x60] ss:$16 sps:$4 sm:$0xff]  }
  0x1f   : > { %1071 = vmatpush1.bf16.msra.mxu1 %v1500_v8  ;;  %1031 = vmatprep.subr.bf16.mxu0 %v1501_v9  ;;  %v1509_v14 = vld [vmem:[%s1755_s22 + $0x264] ss:$16 sps:$4 sm:$0xff]   ;;  %v1512_v16 = vld [vmem:[%s1755_s22 + $0x260] ss:$16 sps:$4 sm:$0xff]   ;;  %v1831_v8 = vcombine.low %v244_v49, %v244_v49  ;;  %v1589_v9 = vld [vmem:[%s1755_s22 + $0x8] ss:$16 sps:$4 sm:$0xff]  }
  0x20   : > { %1072 = vmatprep.subr.bf16.mxu1 %v1503_v10  ;;  %v1513_v17 = vld [vmem:[%s1755_s22 + $0x84] ss:$16 sps:$4 sm:$0xff]   ;;  %v1517_v19 = vld [vmem:[%s1755_s22 + $0x80] ss:$16 sps:$4 sm:$0xff]   ;;  %v1592_v10 = vld [vmem:[%s1755_s22 + $0x208] ss:$16 sps:$4 sm:$0xff]  }
  0x21   : > { %v1515_v18 = vld [vmem:[%s1755_s22 + $0x284] ss:$16 sps:$4 sm:$0xff]   ;;  %v1518_v20 = vld [vmem:[%s1755_s22 + $0x280] ss:$16 sps:$4 sm:$0xff]   ;;  %v1649_v49 = vld [vmem:[%s1755_s22 + $0x148] ss:$16 sps:$4 sm:$0xff]  }
  0x22   : > { %1032 = vmatpush1.bf16.msra.mxu0 %v1505_v11  ;;  %v1519_v21 = vld [vmem:[%s1755_s22 + $0xa4] ss:$16 sps:$4 sm:$0xff]   ;;  %v1523_v23 = vld [vmem:[%s1755_s22 + $0xa0] ss:$16 sps:$4 sm:$0xff]   ;;  %v1597_v11 = vld [vmem:[%s1755_s22 + $0x2c] ss:$16 sps:$4 sm:$0xff]  }
  0x23   : > { %1073 = vmatpush1.bf16.msra.mxu1 %v1506_v12  ;;  %1033 = vmatprep.subr.bf16.mxu0 %v1507_v13  ;;  %v1521_v22 = vld [vmem:[%s1755_s22 + $0x2a4] ss:$16 sps:$4 sm:$0xff]   ;;  %v1524_v24 = vld [vmem:[%s1755_s22 + $0x2a0] ss:$16 sps:$4 sm:$0xff]   ;;  %v1600_v12 = vld [vmem:[%s1755_s22 + $0x22c] ss:$16 sps:$4 sm:$0xff]  }
  0x24   : > { %1074 = vmatprep.subr.bf16.mxu1 %v1509_v14  ;;  %v1525_v25 = vld [vmem:[%s1755_s22 + $0xc4] ss:$16 sps:$4 sm:$0xff]   ;;  %v1529_v27 = vld [vmem:[%s1755_s22 + $0xc0] ss:$16 sps:$4 sm:$0xff]   ;;  %v1595_v13 = vld [vmem:[%s1755_s22 + $0x28] ss:$16 sps:$4 sm:$0xff]  }
  0x25   : > { %v1527_v26 = vld [vmem:[%s1755_s22 + $0x2c4] ss:$16 sps:$4 sm:$0xff]   ;;  %v1530_v28 = vld [vmem:[%s1755_s22 + $0x2c0] ss:$16 sps:$4 sm:$0xff]   ;;  %v1598_v14 = vld [vmem:[%s1755_s22 + $0x228] ss:$16 sps:$4 sm:$0xff]  }
  0x26   : > { %1034 = vmatpush1.bf16.msra.mxu0 %v1511_v15  ;;  %v1531_v29 = vld [vmem:[%s1755_s22 + $0xe4] ss:$16 sps:$4 sm:$0xff]   ;;  %v1535_v31 = vld [vmem:[%s1755_s22 + $0xe0] ss:$16 sps:$4 sm:$0xff]   ;;  %v1603_v15 = vld [vmem:[%s1755_s22 + $0x4c] ss:$16 sps:$4 sm:$0xff]  }
  0x27   : > { %1075 = vmatpush1.bf16.msra.mxu1 %v1512_v16  ;;  %1035 = vmatprep.subr.bf16.mxu0 %v1513_v17  ;;  %v1533_v30 = vld [vmem:[%s1755_s22 + $0x2e4] ss:$16 sps:$4 sm:$0xff]   ;;  %v1536_v32 = vld [vmem:[%s1755_s22 + $0x2e0] ss:$16 sps:$4 sm:$0xff]   ;;  %v1606_v16 = vld [vmem:[%s1755_s22 + $0x24c] ss:$16 sps:$4 sm:$0xff]  }
  0x28   : > { %1076 = vmatprep.subr.bf16.mxu1 %v1515_v18  ;;  %v1537_v33 = vld [vmem:[%s1755_s22 + $0x104] ss:$16 sps:$4 sm:$0xff]   ;;  %v1541_v35 = vld [vmem:[%s1755_s22 + $0x100] ss:$16 sps:$4 sm:$0xff]   ;;  %v1601_v17 = vld [vmem:[%s1755_s22 + $0x48] ss:$16 sps:$4 sm:$0xff]  }
  0x29   : > { %v1539_v34 = vld [vmem:[%s1755_s22 + $0x304] ss:$16 sps:$4 sm:$0xff]   ;;  %v1542_v36 = vld [vmem:[%s1755_s22 + $0x300] ss:$16 sps:$4 sm:$0xff]   ;;  %v1604_v18 = vld [vmem:[%s1755_s22 + $0x248] ss:$16 sps:$4 sm:$0xff]  }
  0x2a   : > { %1036 = vmatpush1.bf16.msra.mxu0 %v1517_v19  ;;  %v1543_v37 = vld [vmem:[%s1755_s22 + $0x124] ss:$16 sps:$4 sm:$0xff]   ;;  %v1547_v39 = vld [vmem:[%s1755_s22 + $0x120] ss:$16 sps:$4 sm:$0xff]   ;;  %v1609_v19 = vld [vmem:[%s1755_s22 + $0x6c] ss:$16 sps:$4 sm:$0xff]  }
  0x2b   : > { %1077 = vmatpush1.bf16.msra.mxu1 %v1518_v20  ;;  %1037 = vmatprep.subr.bf16.mxu0 %v1519_v21  ;;  %v1545_v38 = vld [vmem:[%s1755_s22 + $0x324] ss:$16 sps:$4 sm:$0xff]   ;;  %v1548_v40 = vld [vmem:[%s1755_s22 + $0x320] ss:$16 sps:$4 sm:$0xff]   ;;  %v1612_v20 = vld [vmem:[%s1755_s22 + $0x26c] ss:$16 sps:$4 sm:$0xff]  }
  0x2c   : > { %1078 = vmatprep.subr.bf16.mxu1 %v1521_v22  ;;  %v1549_v41 = vld [vmem:[%s1755_s22 + $0x144] ss:$16 sps:$4 sm:$0xff]   ;;  %v1553_v43 = vld [vmem:[%s1755_s22 + $0x140] ss:$16 sps:$4 sm:$0xff]   ;;  %v1607_v21 = vld [vmem:[%s1755_s22 + $0x68] ss:$16 sps:$4 sm:$0xff]  }
  0x2d   : > { %v1551_v42 = vld [vmem:[%s1755_s22 + $0x344] ss:$16 sps:$4 sm:$0xff]   ;;  %v1554_v44 = vld [vmem:[%s1755_s22 + $0x340] ss:$16 sps:$4 sm:$0xff]   ;;  %v1610_v22 = vld [vmem:[%s1755_s22 + $0x268] ss:$16 sps:$4 sm:$0xff]  }
  0x2e   : > { %1038 = vmatpush1.bf16.msra.mxu0 %v1523_v23  ;;  %v1555_v45 = vld [vmem:[%s1755_s22 + $0x164] ss:$16 sps:$4 sm:$0xff]   ;;  %v1559_v50 = vld [vmem:[%s1755_s22 + $0x160] ss:$16 sps:$4 sm:$0xff]   ;;  %v1615_v23 = vld [vmem:[%s1755_s22 + $0x8c] ss:$16 sps:$4 sm:$0xff]  }
  0x2f   : > { %1079 = vmatpush1.bf16.msra.mxu1 %v1524_v24  ;;  %1039 = vmatprep.subr.bf16.mxu0 %v1525_v25  ;;  %v1557_v46 = vld [vmem:[%s1755_s22 + $0x364] ss:$16 sps:$4 sm:$0xff]   ;;  %v1560_v51 = vld [vmem:[%s1755_s22 + $0x360] ss:$16 sps:$4 sm:$0xff]   ;;  %v1618_v24 = vld [vmem:[%s1755_s22 + $0x28c] ss:$16 sps:$4 sm:$0xff]  }
  0x30   : > { %1080 = vmatprep.subr.bf16.mxu1 %v1527_v26  ;;  %v243_v47 = vld [vmem:[%s1750_s18] sm:$0xff]  ;;  %v1613_v25 = vld [vmem:[%s1755_s22 + $0x88] ss:$16 sps:$4 sm:$0xff]  }
  0x31   : > { %v1805_v48 = vcombine.high %v243_v47, %v243_v47  ;;  %v1561_v53 = vld [vmem:[%s1755_s22 + $0x184] ss:$16 sps:$4 sm:$0xff]   ;;  %v1565_v55 = vld [vmem:[%s1755_s22 + $0x180] ss:$16 sps:$4 sm:$0xff]   ;;  %v1829_v7 = vcombine.low %v243_v47, %v243_v47  ;;  %v1616_v26 = vld [vmem:[%s1755_s22 + $0x288] ss:$16 sps:$4 sm:$0xff]  }
  0x32   : > { %1040 = vmatpush1.bf16.msra.mxu0 %v1529_v27  ;;  %v1563_v54 = vld [vmem:[%s1755_s22 + $0x384] ss:$16 sps:$4 sm:$0xff]   ;;  %v1566_v56 = vld [vmem:[%s1755_s22 + $0x380] ss:$16 sps:$4 sm:$0xff]   ;;  %v1621_v27 = vld [vmem:[%s1755_s22 + $0xac] ss:$16 sps:$4 sm:$0xff]  }
  0x33   : > { %1081 = vmatpush1.bf16.msra.mxu1 %v1530_v28  ;;  %1041 = vmatprep.subr.bf16.mxu0 %v1531_v29  ;;  %v1567_v57 = vld [vmem:[%s1755_s22 + $0x1a4] ss:$16 sps:$4 sm:$0xff]   ;;  %v1571_v59 = vld [vmem:[%s1755_s22 + $0x1a0] ss:$16 sps:$4 sm:$0xff]   ;;  %v1624_v28 = vld [vmem:[%s1755_s22 + $0x2ac] ss:$16 sps:$4 sm:$0xff]  }
  0x34   : > { %1082 = vmatprep.subr.bf16.mxu1 %v1533_v30  ;;  %1059 = vmatprep.mubr.bf16.mxu0 %v1805_v48  ;;  %v1569_v58 = vld [vmem:[%s1755_s22 + $0x3a4] ss:$16 sps:$4 sm:$0xff]   ;;  %v1572_v60 = vld [vmem:[%s1755_s22 + $0x3a0] ss:$16 sps:$4 sm:$0xff]   ;;  %v1619_v29 = vld [vmem:[%s1755_s22 + $0xa8] ss:$16 sps:$4 sm:$0xff]  }
  0x35   : > { %v1573_v61 = vld [vmem:[%s1755_s22 + $0x1c4] ss:$16 sps:$4 sm:$0xff]   ;;  %v1577_v63 = vld [vmem:[%s1755_s22 + $0x1c0] ss:$16 sps:$4 sm:$0xff]   ;;  %v1622_v30 = vld [vmem:[%s1755_s22 + $0x2a8] ss:$16 sps:$4 sm:$0xff]  }
  0x36   : > { %1042 = vmatpush1.bf16.msra.mxu0 %v1535_v31  ;;  %v1575_v62 = vld [vmem:[%s1755_s22 + $0x3c4] ss:$16 sps:$4 sm:$0xff]   ;;  %v1578_v0 = vld [vmem:[%s1755_s22 + $0x3c0] ss:$16 sps:$4 sm:$0xff]   ;;  %v1627_v31 = vld [vmem:[%s1755_s22 + $0xcc] ss:$16 sps:$4 sm:$0xff]  }
  0x37   : > { %1083 = vmatpush1.bf16.msra.mxu1 %v1536_v32  ;;  %1043 = vmatprep.subr.bf16.mxu0 %v1537_v33  ;;  %v1579_v1 = vld [vmem:[%s1755_s22 + $0x1e4] ss:$16 sps:$4 sm:$0xff]   ;;  %v1583_v3 = vld [vmem:[%s1755_s22 + $0x1e0] ss:$16 sps:$4 sm:$0xff]   ;;  %v1630_v32 = vld [vmem:[%s1755_s22 + $0x2cc] ss:$16 sps:$4 sm:$0xff]  }
  0x38   : > { %1084 = vmatprep.subr.bf16.mxu1 %v1539_v34  ;;  %v1581_v2 = vld [vmem:[%s1755_s22 + $0x3e4] ss:$16 sps:$4 sm:$0xff]   ;;  %v1584_v4 = vld [vmem:[%s1755_s22 + $0x3e0] ss:$16 sps:$4 sm:$0xff]   ;;  %v1625_v33 = vld [vmem:[%s1755_s22 + $0xc8] ss:$16 sps:$4 sm:$0xff]  }
  0x39   : > { %v1628_v34 = vld [vmem:[%s1755_s22 + $0x2c8] ss:$16 sps:$4 sm:$0xff]   ;;  %v1651_v47 = vld [vmem:[%s1755_s22 + $0x14c] ss:$16 sps:$4 sm:$0xff]  }
  0x3a   : > { %1044 = vmatpush1.bf16.msra.mxu0 %v1541_v35  ;;  %v1633_v35 = vld [vmem:[%s1755_s22 + $0xec] ss:$16 sps:$4 sm:$0xff]  }
  0x3b   : > { %1085 = vmatpush1.bf16.msra.mxu1 %v1542_v36  ;;  %1045 = vmatprep.subr.bf16.mxu0 %v1543_v37  ;;  %v1636_v36 = vld [vmem:[%s1755_s22 + $0x2ec] ss:$16 sps:$4 sm:$0xff]   ;;  %v1631_v37 = vld [vmem:[%s1755_s22 + $0xe8] ss:$16 sps:$4 sm:$0xff]  }
  0x3c   : > { %1086 = vmatprep.subr.bf16.mxu1 %v1545_v38  ;;  %v1634_v38 = vld [vmem:[%s1755_s22 + $0x2e8] ss:$16 sps:$4 sm:$0xff]  }
  0x3e   : > { %1046 = vmatpush1.bf16.msra.mxu0 %v1547_v39  ;;  %v1639_v39 = vld [vmem:[%s1755_s22 + $0x10c] ss:$16 sps:$4 sm:$0xff]  }
  0x3f   : > { %1087 = vmatpush1.bf16.msra.mxu1 %v1548_v40  ;;  %1047 = vmatprep.subr.bf16.mxu0 %v1549_v41  ;;  %v1642_v40 = vld [vmem:[%s1755_s22 + $0x30c] ss:$16 sps:$4 sm:$0xff]   ;;  %v1637_v41 = vld [vmem:[%s1755_s22 + $0x108] ss:$16 sps:$4 sm:$0xff]  }
  0x40   : > { %1088 = vmatprep.subr.bf16.mxu1 %v1551_v42  ;;  %v1640_v42 = vld [vmem:[%s1755_s22 + $0x308] ss:$16 sps:$4 sm:$0xff]  }
  0x42   : > { %1048 = vmatpush1.bf16.msra.mxu0 %v1553_v43  ;;  %v1645_v43 = vld [vmem:[%s1755_s22 + $0x12c] ss:$16 sps:$4 sm:$0xff]  }
  0x43   : > { %1089 = vmatpush1.bf16.msra.mxu1 %v1554_v44  ;;  %1049 = vmatprep.subr.bf16.mxu0 %v1555_v45  ;;  %v1648_v44 = vld [vmem:[%s1755_s22 + $0x32c] ss:$16 sps:$4 sm:$0xff]   ;;  %v1643_v45 = vld [vmem:[%s1755_s22 + $0x128] ss:$16 sps:$4 sm:$0xff]  }
  0x44   : > { %1090 = vmatprep.subr.bf16.mxu1 %v1557_v46  ;;  %v1646_v46 = vld [vmem:[%s1755_s22 + $0x328] ss:$16 sps:$4 sm:$0xff]  }
  0x46   : > { %1050 = vmatpush1.bf16.msra.mxu0 %v1559_v50  ;;  %v1652_v50 = vld [vmem:[%s1755_s22 + $0x348] ss:$16 sps:$4 sm:$0xff]  }
  0x47   : > { %1091 = vmatpush1.bf16.msra.mxu1 %v1560_v51  ;;  %1051 = vmatprep.subr.bf16.mxu0 %v1561_v53  ;;  %v1657_v51 = vld [vmem:[%s1755_s22 + $0x16c] ss:$16 sps:$4 sm:$0xff]   ;;  %v1655_v53 = vld [vmem:[%s1755_s22 + $0x168] ss:$16 sps:$4 sm:$0xff]  }
  0x48   : > { %1092 = vmatprep.subr.bf16.mxu1 %v1563_v54  ;;  %v1658_v54 = vld [vmem:[%s1755_s22 + $0x368] ss:$16 sps:$4 sm:$0xff]  }
  0x4a   : > { %1052 = vmatpush1.bf16.msra.mxu0 %v1565_v55  ;;  %v1663_v55 = vld [vmem:[%s1755_s22 + $0x18c] ss:$16 sps:$4 sm:$0xff]  }
  0x4b   : > { %1093 = vmatpush1.bf16.msra.mxu1 %v1566_v56  ;;  %1053 = vmatprep.subr.bf16.mxu0 %v1567_v57  ;;  %v1666_v56 = vld [vmem:[%s1755_s22 + $0x38c] ss:$16 sps:$4 sm:$0xff]   ;;  %v1661_v57 = vld [vmem:[%s1755_s22 + $0x188] ss:$16 sps:$4 sm:$0xff]  }
  0x4c   : > { %1094 = vmatprep.subr.bf16.mxu1 %v1569_v58  ;;  %v1664_v58 = vld [vmem:[%s1755_s22 + $0x388] ss:$16 sps:$4 sm:$0xff]  }
  0x4e   : > { %1054 = vmatpush1.bf16.msra.mxu0 %v1571_v59  ;;  %v1669_v59 = vld [vmem:[%s1755_s22 + $0x1ac] ss:$16 sps:$4 sm:$0xff]  }
  0x4f   : > { %1095 = vmatpush1.bf16.msra.mxu1 %v1572_v60  ;;  %1055 = vmatprep.subr.bf16.mxu0 %v1573_v61  ;;  %v1672_v60 = vld [vmem:[%s1755_s22 + $0x3ac] ss:$16 sps:$4 sm:$0xff]   ;;  %v1667_v61 = vld [vmem:[%s1755_s22 + $0x1a8] ss:$16 sps:$4 sm:$0xff]  }
  0x50   : > { %1096 = vmatprep.subr.bf16.mxu1 %v1575_v62  ;;  %v1670_v62 = vld [vmem:[%s1755_s22 + $0x3a8] ss:$16 sps:$4 sm:$0xff]  }
  0x52   : > { %1056 = vmatpush1.bf16.msra.mxu0 %v1577_v63  ;;  %v1675_v63 = vld [vmem:[%s1755_s22 + $0x1cc] ss:$16 sps:$4 sm:$0xff]  }
  0x53   : > { %1097 = vmatpush1.bf16.msra.mxu1 %v1578_v0  ;;  %1057 = vmatprep.subr.bf16.mxu0 %v1579_v1  ;;  %v1678_v0 = vld [vmem:[%s1755_s22 + $0x3cc] ss:$16 sps:$4 sm:$0xff]   ;;  %v1673_v1 = vld [vmem:[%s1755_s22 + $0x1c8] ss:$16 sps:$4 sm:$0xff]  }
  0x54   : > { %1098 = vmatprep.subr.bf16.mxu1 %v1581_v2  ;;  %v1676_v2 = vld [vmem:[%s1755_s22 + $0x3c8] ss:$16 sps:$4 sm:$0xff]  }
  0x56   : > { %1058 = vmatpush1.bf16.msra.mxu0 %v1583_v3  ;;  %v1681_v3 = vld [vmem:[%s1755_s22 + $0x1ec] ss:$16 sps:$4 sm:$0xff]  }
  0x57   : > { %1099 = vmatpush1.bf16.msra.mxu1 %v1584_v4  ;;  %1109 = vmatprep.subr.bf16.mxu0 %v1591_v5  ;;  %v1684_v4 = vld [vmem:[%s1755_s22 + $0x3ec] ss:$16 sps:$4 sm:$0xff]   ;;  %v1679_v5 = vld [vmem:[%s1755_s22 + $0x1e8] ss:$16 sps:$4 sm:$0xff]  }
  0x58   : > { %1150 = vmatprep.subr.bf16.mxu1 %v1594_v6  ;;  %v1682_v6 = vld [vmem:[%s1755_s22 + $0x3e8] ss:$16 sps:$4 sm:$0xff]  }
  0x59   : > { %1060 = vmatmul.mubr.bf16.vlgmr.msra.gmra.mrb[0].mxu0 %v1829_v7 }
  0x5a   : > { %1101 = vmatmul.mubr.bf16.vlgmr.msra.gmra.mrb[0].mxu1 %v1831_v8  ;;  %1110 = vmatpush1.bf16.msra.mxu0 %v1589_v9 }
  0x5b   : > { %1151 = vmatpush1.bf16.msra.mxu1 %v1592_v10  ;;  %1111 = vmatprep.subr.bf16.mxu0 %v1597_v11  ;;  %v239_v10 = vld [vmem:[#allocation2] sm:$0xff] }
  0x5c   : > { %1152 = vmatprep.subr.bf16.mxu1 %v1600_v12  ;;  %1141 = vmatprep.mubr.bf16.mxu0 %v1805_v48  ;;  %v1654_v48 = vld [vmem:[%s1755_s22 + $0x34c] ss:$16 sps:$4 sm:$0xff]  }
  0x5d   : > { %1182 = vmatprep.mubr.bf16.mxu1 %v1329_v52  ;;  %v1660_v52 = vld [vmem:[%s1755_s22 + $0x36c] ss:$16 sps:$4 sm:$0xff]  }
  0x5e   : > { %1112 = vmatpush1.bf16.msra.mxu0 %v1595_v13 }
  0x5f   : > { %1153 = vmatpush1.bf16.msra.mxu1 %v1598_v14  ;;  %1113 = vmatprep.subr.bf16.mxu0 %v1603_v15  ;;  %v240_v14 = vld [vmem:[#allocation2 + $0x8] sm:$0xff] }
  0x60   : > { %1154 = vmatprep.subr.bf16.mxu1 %v1606_v16 }
  0x62   : > { %1114 = vmatpush1.bf16.msra.mxu0 %v1601_v17 }
  0x63   : > { %1155 = vmatpush1.bf16.msra.mxu1 %v1604_v18  ;;  %1115 = vmatprep.subr.bf16.mxu0 %v1609_v19 }
  0x64   : > { %1156 = vmatprep.subr.bf16.mxu1 %v1612_v20 }
  0x66   : > { %1116 = vmatpush1.bf16.msra.mxu0 %v1607_v21 }
  0x67   : > { %1157 = vmatpush1.bf16.msra.mxu1 %v1610_v22  ;;  %1117 = vmatprep.subr.bf16.mxu0 %v1615_v23 }
  0x68   : > { %1158 = vmatprep.subr.bf16.mxu1 %v1618_v24 }
  0x6a   : > { %1118 = vmatpush1.bf16.msra.mxu0 %v1613_v25 }
  0x6b   : > { %1159 = vmatpush1.bf16.msra.mxu1 %v1616_v26  ;;  %1119 = vmatprep.subr.bf16.mxu0 %v1621_v27  ;;  %v242_v26 = vld [vmem:[#allocation2 + $0x18] sm:$0xff] }
  0x6c   : > { %1160 = vmatprep.subr.bf16.mxu1 %v1624_v28 }
  0x6e   : > { %1120 = vmatpush1.bf16.msra.mxu0 %v1619_v29 }
  0x6f   : > { %1161 = vmatpush1.bf16.msra.mxu1 %v1622_v30  ;;  %1121 = vmatprep.subr.bf16.mxu0 %v1627_v31 }
  0x70   : > { %1162 = vmatprep.subr.bf16.mxu1 %v1630_v32 }
  0x72   : > { %1122 = vmatpush1.bf16.msra.mxu0 %v1625_v33 }
  0x73   : > { %1163 = vmatpush1.bf16.msra.mxu1 %v1628_v34  ;;  %1123 = vmatprep.subr.bf16.mxu0 %v1633_v35 }
  0x74   : > { %1164 = vmatprep.subr.bf16.mxu1 %v1636_v36 }
  0x76   : > { %1124 = vmatpush1.bf16.msra.mxu0 %v1631_v37 }
  0x77   : > { %1165 = vmatpush1.bf16.msra.mxu1 %v1634_v38  ;;  %1125 = vmatprep.subr.bf16.mxu0 %v1639_v39 }
  0x78   : > { %1166 = vmatprep.subr.bf16.mxu1 %v1642_v40 }
  0x7a   : > { %1126 = vmatpush1.bf16.msra.mxu0 %v1637_v41 }
  0x7b   : > { %1167 = vmatpush1.bf16.msra.mxu1 %v1640_v42  ;;  %1127 = vmatprep.subr.bf16.mxu0 %v1645_v43 }
  0x7c   : > { %1168 = vmatprep.subr.bf16.mxu1 %v1648_v44 }
  0x7e   : > { %1128 = vmatpush1.bf16.msra.mxu0 %v1643_v45 }
  0x7f   : > { %1169 = vmatpush1.bf16.msra.mxu1 %v1646_v46  ;;  %1129 = vmatprep.subr.bf16.mxu0 %v1651_v47 }
  0x80   : > { %1170 = vmatprep.subr.bf16.mxu1 %v1654_v48 }
  0x82   : > { %1130 = vmatpush1.bf16.msra.mxu0 %v1649_v49 }
  0x83   : > { %1171 = vmatpush1.bf16.msra.mxu1 %v1652_v50  ;;  %1131 = vmatprep.subr.bf16.mxu0 %v1657_v51 }
  0x84   : > { %1172 = vmatprep.subr.bf16.mxu1 %v1660_v52 }
  0x86   : > { %1132 = vmatpush1.bf16.msra.mxu0 %v1655_v53 }
  0x87   : > { %1173 = vmatpush1.bf16.msra.mxu1 %v1658_v54  ;;  %1133 = vmatprep.subr.bf16.mxu0 %v1663_v55 }
  0x88   : > { %1174 = vmatprep.subr.bf16.mxu1 %v1666_v56 }
  0x8a   : > { %1134 = vmatpush1.bf16.msra.mxu0 %v1661_v57 }
  0x8b   : > { %1175 = vmatpush1.bf16.msra.mxu1 %v1664_v58  ;;  %1135 = vmatprep.subr.bf16.mxu0 %v1669_v59 }
  0x8c   : > { %1176 = vmatprep.subr.bf16.mxu1 %v1672_v60 }
  0x8e   : > { %1136 = vmatpush1.bf16.msra.mxu0 %v1667_v61 }
  0x8f   : > { %1177 = vmatpush1.bf16.msra.mxu1 %v1670_v62  ;;  %1137 = vmatprep.subr.bf16.mxu0 %v1675_v63 }
  0x90   : > { %1178 = vmatprep.subr.bf16.mxu1 %v1678_v0 }
  0x92   : > { %1138 = vmatpush1.bf16.msra.mxu0 %v1673_v1 }
  0x93   : > { %1179 = vmatpush1.bf16.msra.mxu1 %v1676_v2  ;;  %1139 = vmatprep.subr.bf16.mxu0 %v1681_v3 }
  0x94   : > { %1180 = vmatprep.subr.bf16.mxu1 %v1684_v4 }
  0x96   : > { %1140 = vmatpush1.bf16.msra.mxu0 %v1679_v5 }
  0x97   : > { %1181 = vmatpush1.bf16.msra.mxu1 %v1682_v6 }
  0x99   : > { %1142 = vmatmul.mubr.bf16.vlgmr.msra.gmra.mrb[4].mxu0 %v1829_v7  ;;  %v241_v7 = vld [vmem:[#allocation2 + $0x10] sm:$0xff] }
  0x9a   : > { %1183 = vmatmul.mubr.bf16.vlgmr.msra.gmra.mrb[4].mxu1 %v1831_v8 }
 0x12c   : > { %v1061_v9 = vpop.f32.mrb[0].mxu0 }
 0x12d   : > { %v1102_v11 = vpop.f32.mrb[0].mxu1  ;;  %v1063_v13 = vpop.f32.mrb[1].mxu0 }
 0x12e   : > { %v1103_v12 = vadd.f32 %v1102_v11, %v1061_v9  ;;  %v1104_v15 = vpop.f32.mrb[1].mxu1  ;;  %v1065_v17 = vpop.f32.mrb[2].mxu0 }
 0x12f   : > { %v1105_v16 = vadd.f32 %v1104_v15, %v1063_v13  ;;  %v1106_v18 = vpop.f32.mrb[2].mxu1  ;;  %v1066_v20 = vpop.f32.mrb[3].mxu0 }
 0x130   : > { %v1191_v19 = vadd.f32 %v1103_v12, %v239_v10  ;;  %v1107_v21 = vpop.f32.mrb[3].mxu1 }
 0x131   : > { %v1192_v22 = vadd.f32 %v1105_v16, %v240_v14 }
 0x132   : > { %1195 = vst [vmem:[#allocation2] sm:$0xff] %v1191_v19 }
 0x133   : > { %1196 = vst [vmem:[#allocation2 + $0x8] sm:$0xff] %v1192_v22 }
 0x139   : > { %v1203_v35 = vld [vmem:[#allocation2] sm:$0xff] (!%p1458_p7) }
 0x13a   : > { %v1204_v36 = vld [vmem:[#allocation2 + $0x8] sm:$0xff] (!%p1458_p7)  ;;  %1207 = vst [vmem:[%s1924_s2] sm:$0xff] (!%p1458_p7), %v1203_v35 }
 0x13b   : > { %1208 = vst [vmem:[%s1924_s2 + $0x8] sm:$0xff] (!%p1458_p7), %v1204_v36 }
 0x16c   : > { %v1143_v23 = vpop.f32.mrb[4].mxu0 }
 0x16d   : > { %v1184_v24 = vpop.f32.mrb[4].mxu1  ;;  %v1145_v25 = vpop.f32.mrb[5].mxu0  ;;  %1202 = sbr.rel (%p1458_p7) target bundleno = 380 (0x17c), region = 36 }
 0x16e   : > { %v1185_v8 = vadd.f32 %v1184_v24, %v1143_v23  ;;  %v1186_v27 = vpop.f32.mrb[5].mxu1  ;;  %v1147_v29 = vpop.f32.mrb[6].mxu0 }
 0x16f   : > { %v1187_v28 = vadd.f32 %v1186_v27, %v1145_v25  ;;  %v1188_v30 = vpop.f32.mrb[6].mxu1  ;;  %v1148_v32 = vpop.f32.mrb[7].mxu0 }
 0x170   : > { %v1193_v31 = vadd.f32 %v1185_v8, %v241_v7  ;;  %v1189_v33 = vpop.f32.mrb[7].mxu1 }
 0x171   : > { %v1194_v34 = vadd.f32 %v1187_v28, %v242_v26 }
 0x172   : > { %1197 = vst [vmem:[#allocation2 + $0x10] sm:$0xff] %v1193_v31 }
 0x173   : > { %1198 = vst [vmem:[#allocation2 + $0x18] sm:$0xff] %v1194_v34 }
 0x179   : > { %v1205_v37 = vld [vmem:[#allocation2 + $0x10] sm:$0xff] }
 0x17a   : > { %1209 = vst [vmem:[%s1924_s2 + $0x10] sm:$0xff] %v1205_v37  ;;  %v1206_v38 = vld [vmem:[#allocation2 + $0x18] sm:$0xff] }
 0x17b   : > { %1210 = vst [vmem:[%s1924_s2 + $0x18] sm:$0xff] %v1206_v38 }
 0x17c PF: > { %s12_s11 = sadd.s32 1, %s1707_s11   ;;  %s1925_s9 = smov %s1703_s10 }
 0x17d   : > { %p9_p8 = scmp.ge.s32.totalorder %s12_s11, 11   ;;  %s1926_s10 = smov %s1928_s12 }
 0x17f   :  { %11 = sbr.rel (!%p9_p8) target bundleno = 2 (0x2), region = 69 }

// kernel: _lambda_.68
= control target key start
LH: loop header
LB: loop body
LE: loop exit
PB: predicated region body
PF: predicated region fallthrough
CT: control target
= control target key end

     0   :  { %s906_s1 = inlined_call_operand.vmem [shape: bf16[256,512], index: 1, kind: input, shape index: {}]   ;;  %s907_s0 = inlined_call_operand.vmem [shape: bf16[8,256], index: 0, kind: input, shape index: {}]   ;;  %s908_s2 = inlined_call_operand.vmem [shape: f32[8,512], index: 2, kind: output, shape index: {}]  }
   0x1   :  { %v586_v0 = vld [vmem:[%s906_s1 + $0x4] ss:$16 sps:$4 sm:$0xff]   ;;  %v588_v1 = vld [vmem:[%s906_s1 + $0xc] ss:$16 sps:$4 sm:$0xff]   ;;  %v590_v2 = vld [vmem:[%s906_s1] ss:$16 sps:$4 sm:$0xff]  }
   0x2   :  { %415 = vmatprep.subr.bf16.mxu0 %v586_v0  ;;  %v591_v3 = vld [vmem:[%s906_s1 + $0x8] ss:$16 sps:$4 sm:$0xff]   ;;  %456 = vmatprep.subr.bf16.mxu1 %v588_v1  ;;  %v592_v4 = vld [vmem:[%s906_s1 + $0x24] ss:$16 sps:$4 sm:$0xff]   ;;  %v594_v5 = vld [vmem:[%s906_s1 + $0x2c] ss:$16 sps:$4 sm:$0xff]  }
   0x3   :  { %416 = vmatpush1.bf16.msra.mxu0 %v590_v2  ;;  %457 = vmatpush1.bf16.msra.mxu1 %v591_v3  ;;  %v596_v6 = vld [vmem:[%s906_s1 + $0x20] ss:$16 sps:$4 sm:$0xff]   ;;  %v597_v7 = vld [vmem:[%s906_s1 + $0x28] ss:$16 sps:$4 sm:$0xff]   ;;  %v598_v8 = vld [vmem:[%s906_s1 + $0x44] ss:$16 sps:$4 sm:$0xff]  }
   0x4   :  { %417 = vmatprep.subr.bf16.mxu0 %v592_v4  ;;  %458 = vmatprep.subr.bf16.mxu1 %v594_v5  ;;  %v600_v9 = vld [vmem:[%s906_s1 + $0x4c] ss:$16 sps:$4 sm:$0xff]   ;;  %v602_v10 = vld [vmem:[%s906_s1 + $0x40] ss:$16 sps:$4 sm:$0xff]   ;;  %v603_v11 = vld [vmem:[%s906_s1 + $0x48] ss:$16 sps:$4 sm:$0xff]  }
   0x5   :  { %v604_v12 = vld [vmem:[%s906_s1 + $0x64] ss:$16 sps:$4 sm:$0xff]   ;;  %v606_v13 = vld [vmem:[%s906_s1 + $0x6c] ss:$16 sps:$4 sm:$0xff]   ;;  %v608_v14 = vld [vmem:[%s906_s1 + $0x60] ss:$16 sps:$4 sm:$0xff]  }
   0x6   :  { %v609_v15 = vld [vmem:[%s906_s1 + $0x68] ss:$16 sps:$4 sm:$0xff]   ;;  %v610_v16 = vld [vmem:[%s906_s1 + $0x84] ss:$16 sps:$4 sm:$0xff]   ;;  %v612_v17 = vld [vmem:[%s906_s1 + $0x8c] ss:$16 sps:$4 sm:$0xff]  }
   0x7   :  { %418 = vmatpush1.bf16.msra.mxu0 %v596_v6  ;;  %459 = vmatpush1.bf16.msra.mxu1 %v597_v7  ;;  %v614_v18 = vld [vmem:[%s906_s1 + $0x80] ss:$16 sps:$4 sm:$0xff]   ;;  %v615_v19 = vld [vmem:[%s906_s1 + $0x88] ss:$16 sps:$4 sm:$0xff]   ;;  %v616_v20 = vld [vmem:[%s906_s1 + $0xa4] ss:$16 sps:$4 sm:$0xff]  }
   0x8   :  { %419 = vmatprep.subr.bf16.mxu0 %v598_v8  ;;  %460 = vmatprep.subr.bf16.mxu1 %v600_v9  ;;  %v618_v21 = vld [vmem:[%s906_s1 + $0xac] ss:$16 sps:$4 sm:$0xff]   ;;  %v620_v22 = vld [vmem:[%s906_s1 + $0xa0] ss:$16 sps:$4 sm:$0xff]   ;;  %v621_v23 = vld [vmem:[%s906_s1 + $0xa8] ss:$16 sps:$4 sm:$0xff]  }
   0x9   :  { %v622_v24 = vld [vmem:[%s906_s1 + $0xc4] ss:$16 sps:$4 sm:$0xff]   ;;  %v624_v25 = vld [vmem:[%s906_s1 + $0xcc] ss:$16 sps:$4 sm:$0xff]   ;;  %v626_v26 = vld [vmem:[%s906_s1 + $0xc0] ss:$16 sps:$4 sm:$0xff]  }
   0xa   :  { %v627_v27 = vld [vmem:[%s906_s1 + $0xc8] ss:$16 sps:$4 sm:$0xff]   ;;  %v628_v28 = vld [vmem:[%s906_s1 + $0xe4] ss:$16 sps:$4 sm:$0xff]   ;;  %v630_v29 = vld [vmem:[%s906_s1 + $0xec] ss:$16 sps:$4 sm:$0xff]  }
   0xb   :  { %420 = vmatpush1.bf16.msra.mxu0 %v602_v10  ;;  %461 = vmatpush1.bf16.msra.mxu1 %v603_v11  ;;  %v632_v30 = vld [vmem:[%s906_s1 + $0xe0] ss:$16 sps:$4 sm:$0xff]   ;;  %v633_v31 = vld [vmem:[%s906_s1 + $0xe8] ss:$16 sps:$4 sm:$0xff]   ;;  %v634_v32 = vld [vmem:[%s906_s1 + $0x104] ss:$16 sps:$4 sm:$0xff]  }
   0xc   :  { %421 = vmatprep.subr.bf16.mxu0 %v604_v12  ;;  %462 = vmatprep.subr.bf16.mxu1 %v606_v13  ;;  %v636_v33 = vld [vmem:[%s906_s1 + $0x10c] ss:$16 sps:$4 sm:$0xff]   ;;  %v638_v34 = vld [vmem:[%s906_s1 + $0x100] ss:$16 sps:$4 sm:$0xff]   ;;  %v639_v35 = vld [vmem:[%s906_s1 + $0x108] ss:$16 sps:$4 sm:$0xff]  }
   0xd   :  { %v640_v36 = vld [vmem:[%s906_s1 + $0x124] ss:$16 sps:$4 sm:$0xff]   ;;  %v642_v37 = vld [vmem:[%s906_s1 + $0x12c] ss:$16 sps:$4 sm:$0xff]   ;;  %v644_v38 = vld [vmem:[%s906_s1 + $0x120] ss:$16 sps:$4 sm:$0xff]  }
   0xe   :  { %v645_v39 = vld [vmem:[%s906_s1 + $0x128] ss:$16 sps:$4 sm:$0xff]   ;;  %v646_v40 = vld [vmem:[%s906_s1 + $0x144] ss:$16 sps:$4 sm:$0xff]   ;;  %v648_v41 = vld [vmem:[%s906_s1 + $0x14c] ss:$16 sps:$4 sm:$0xff]  }
   0xf   :  { %422 = vmatpush1.bf16.msra.mxu0 %v608_v14  ;;  %463 = vmatpush1.bf16.msra.mxu1 %v609_v15  ;;  %v650_v42 = vld [vmem:[%s906_s1 + $0x140] ss:$16 sps:$4 sm:$0xff]   ;;  %v651_v43 = vld [vmem:[%s906_s1 + $0x148] ss:$16 sps:$4 sm:$0xff]   ;;  %v652_v44 = vld [vmem:[%s906_s1 + $0x164] ss:$16 sps:$4 sm:$0xff]  }
  0x10   :  { %423 = vmatprep.subr.bf16.mxu0 %v610_v16  ;;  %464 = vmatprep.subr.bf16.mxu1 %v612_v17  ;;  %v654_v45 = vld [vmem:[%s906_s1 + $0x16c] ss:$16 sps:$4 sm:$0xff]   ;;  %v23_v46 = vld [vmem:[%s907_s0] sm:$0xff]  ;;  %v657_v49 = vld [vmem:[%s906_s1 + $0x168] ss:$16 sps:$4 sm:$0xff]  }
  0x11   :  { %v521_v47 = vcombine.high %v23_v46, %v23_v46  ;;  %v656_v48 = vld [vmem:[%s906_s1 + $0x160] ss:$16 sps:$4 sm:$0xff]   ;;  %v658_v50 = vld [vmem:[%s906_s1 + $0x184] ss:$16 sps:$4 sm:$0xff]   ;;  %v660_v51 = vld [vmem:[%s906_s1 + $0x18c] ss:$16 sps:$4 sm:$0xff]   ;;  %v520_v2 = vcombine.low %v23_v46, %v23_v46 }
  0x12   :  { %v662_v52 = vld [vmem:[%s906_s1 + $0x180] ss:$16 sps:$4 sm:$0xff]   ;;  %v663_v53 = vld [vmem:[%s906_s1 + $0x188] ss:$16 sps:$4 sm:$0xff]   ;;  %v664_v54 = vld [vmem:[%s906_s1 + $0x1a4] ss:$16 sps:$4 sm:$0xff]  }
  0x13   :  { %424 = vmatpush1.bf16.msra.mxu0 %v614_v18  ;;  %465 = vmatpush1.bf16.msra.mxu1 %v615_v19  ;;  %v666_v55 = vld [vmem:[%s906_s1 + $0x1ac] ss:$16 sps:$4 sm:$0xff]   ;;  %v668_v56 = vld [vmem:[%s906_s1 + $0x1a0] ss:$16 sps:$4 sm:$0xff]   ;;  %v669_v57 = vld [vmem:[%s906_s1 + $0x1a8] ss:$16 sps:$4 sm:$0xff]  }
  0x14   :  { %425 = vmatprep.subr.bf16.mxu0 %v616_v20  ;;  %466 = vmatprep.subr.bf16.mxu1 %v618_v21  ;;  %v670_v58 = vld [vmem:[%s906_s1 + $0x1c4] ss:$16 sps:$4 sm:$0xff]   ;;  %v672_v59 = vld [vmem:[%s906_s1 + $0x1cc] ss:$16 sps:$4 sm:$0xff]   ;;  %v674_v60 = vld [vmem:[%s906_s1 + $0x1c0] ss:$16 sps:$4 sm:$0xff]  }
  0x15   :  { %447 = vmatprep.mubr.bf16.mxu0 %v521_v47  ;;  %488 = vmatprep.mubr.bf16.mxu1 %v521_v47  ;;  %v675_v61 = vld [vmem:[%s906_s1 + $0x1c8] ss:$16 sps:$4 sm:$0xff]   ;;  %v676_v62 = vld [vmem:[%s906_s1 + $0x1e4] ss:$16 sps:$4 sm:$0xff]   ;;  %v678_v63 = vld [vmem:[%s906_s1 + $0x1ec] ss:$16 sps:$4 sm:$0xff]  }
  0x16   :  { %v680_v0 = vld [vmem:[%s906_s1 + $0x1e0] ss:$16 sps:$4 sm:$0xff]   ;;  %v681_v1 = vld [vmem:[%s906_s1 + $0x1e8] ss:$16 sps:$4 sm:$0xff]  }
  0x17   :  { %426 = vmatpush1.bf16.msra.mxu0 %v620_v22  ;;  %467 = vmatpush1.bf16.msra.mxu1 %v621_v23 }
  0x18   :  { %427 = vmatprep.subr.bf16.mxu0 %v622_v24  ;;  %468 = vmatprep.subr.bf16.mxu1 %v624_v25 }
  0x1b   :  { %428 = vmatpush1.bf16.msra.mxu0 %v626_v26  ;;  %469 = vmatpush1.bf16.msra.mxu1 %v627_v27 }
  0x1c   :  { %429 = vmatprep.subr.bf16.mxu0 %v628_v28  ;;  %470 = vmatprep.subr.bf16.mxu1 %v630_v29 }
  0x1f   :  { %430 = vmatpush1.bf16.msra.mxu0 %v632_v30  ;;  %471 = vmatpush1.bf16.msra.mxu1 %v633_v31 }
  0x20   :  { %431 = vmatprep.subr.bf16.mxu0 %v634_v32  ;;  %472 = vmatprep.subr.bf16.mxu1 %v636_v33 }
  0x23   :  { %432 = vmatpush1.bf16.msra.mxu0 %v638_v34  ;;  %473 = vmatpush1.bf16.msra.mxu1 %v639_v35 }
  0x24   :  { %433 = vmatprep.subr.bf16.mxu0 %v640_v36  ;;  %474 = vmatprep.subr.bf16.mxu1 %v642_v37 }
  0x27   :  { %434 = vmatpush1.bf16.msra.mxu0 %v644_v38  ;;  %475 = vmatpush1.bf16.msra.mxu1 %v645_v39 }
  0x28   :  { %435 = vmatprep.subr.bf16.mxu0 %v646_v40  ;;  %476 = vmatprep.subr.bf16.mxu1 %v648_v41 }
  0x2b   :  { %436 = vmatpush1.bf16.msra.mxu0 %v650_v42  ;;  %477 = vmatpush1.bf16.msra.mxu1 %v651_v43 }
  0x2c   :  { %437 = vmatprep.subr.bf16.mxu0 %v652_v44  ;;  %478 = vmatprep.subr.bf16.mxu1 %v654_v45 }
  0x2f   :  { %438 = vmatpush1.bf16.msra.mxu0 %v656_v48  ;;  %479 = vmatpush1.bf16.msra.mxu1 %v657_v49 }
  0x30   :  { %439 = vmatprep.subr.bf16.mxu0 %v658_v50  ;;  %480 = vmatprep.subr.bf16.mxu1 %v660_v51 }
  0x33   :  { %440 = vmatpush1.bf16.msra.mxu0 %v662_v52  ;;  %481 = vmatpush1.bf16.msra.mxu1 %v663_v53 }
  0x34   :  { %441 = vmatprep.subr.bf16.mxu0 %v664_v54  ;;  %482 = vmatprep.subr.bf16.mxu1 %v666_v55 }
  0x37   :  { %442 = vmatpush1.bf16.msra.mxu0 %v668_v56  ;;  %483 = vmatpush1.bf16.msra.mxu1 %v669_v57 }
  0x38   :  { %443 = vmatprep.subr.bf16.mxu0 %v670_v58  ;;  %484 = vmatprep.subr.bf16.mxu1 %v672_v59 }
  0x3b   :  { %444 = vmatpush1.bf16.msra.mxu0 %v674_v60  ;;  %485 = vmatpush1.bf16.msra.mxu1 %v675_v61 }
  0x3c   :  { %445 = vmatprep.subr.bf16.mxu0 %v676_v62  ;;  %486 = vmatprep.subr.bf16.mxu1 %v678_v63 }
  0x3f   :  { %446 = vmatpush1.bf16.msra.mxu0 %v680_v0  ;;  %487 = vmatpush1.bf16.msra.mxu1 %v681_v1 }
  0x42   :  { %448 = vmatmul.mubr.bf16.vlgmr.msra.gmra.mrb[0].mxu0 %v520_v2  ;;  %489 = vmatmul.mubr.bf16.vlgmr.msra.gmra.mrb[0].mxu1 %v520_v2 }
 0x115   :  { %v449_v3 = vpop.f32.mrb[0].mxu0  ;;  %v490_v4 = vpop.f32.mrb[0].mxu1 }
 0x116   :  { %512 = vst [vmem:[%s908_s2] sm:$0xff] %v449_v3  ;;  %514 = vst [vmem:[%s908_s2 + $0x10] sm:$0xff] %v490_v4  ;;  %v451_v5 = vpop.f32.mrb[1].mxu0  ;;  %v492_v6 = vpop.f32.mrb[1].mxu1 }
 0x117   :  { %513 = vst [vmem:[%s908_s2 + $0x8] sm:$0xff] %v451_v5  ;;  %515 = vst [vmem:[%s908_s2 + $0x18] sm:$0xff] %v492_v6  ;;  %v453_v7 = vpop.f32.mrb[2].mxu0  ;;  %v494_v8 = vpop.f32.mrb[2].mxu1 }
 0x118   :  { %v454_v9 = vpop.f32.mrb[3].mxu0  ;;  %v495_v10 = vpop.f32.mrb[3].mxu1 }

// kernel: _lambda_.69
= control target key start
LH: loop header
LB: loop body
LE: loop exit
PB: predicated region body
PF: predicated region fallthrough
CT: control target
= control target key end

     0   :  { %v23_v0 = vlaneseq  ;;  %s160_s1 = inlined_call_operand.vmem [shape: f32[1,512], index: 1, kind: input, shape index: {}]   ;;  %s161_s2 = inlined_call_operand.vmem [shape: f32[1,512], index: 2, kind: input, shape index: {}]   ;;  %s162_s0 = inlined_call_operand.vmem [shape: f32[8,512], index: 0, kind: input, shape index: {}]   ;;  %s163_s3 = inlined_call_operand.vmem [shape: f32[8,512], index: 3, kind: input, shape index: {}]   ;;  %s164_s4 = inlined_call_operand.vmem [shape: f32[8,512], index: 4, kind: output, shape index: {}]  }
   0x1   :  { %v21_v2 = vld [vmem:[%s160_s1] sm:$0xf]  ;;  %v18_v9 = vld [vmem:[%s162_s0 + $0x8] sm:$0xff]  ;;  %v19_v14 = vld [vmem:[%s162_s0 + $0x10] sm:$0xff] }
   0x2   :  { %v24_v1 = vshrl.u32 %v23_v0, 7  ;;  %v47_v3 = vld [vmem:[%s161_s2] sm:$0xf]  ;;  %v20_v15 = vld [vmem:[%s162_s0 + $0x18] sm:$0xff]  ;;  %v74_v23 = vld [vmem:[%s163_s3 + $0x8] sm:$0xff] }
   0x3   :  { %v17_v8 = vld [vmem:[%s162_s0] sm:$0xff]  ;;  %v75_v28 = vld [vmem:[%s163_s3 + $0x10] sm:$0xff]  ;;  %v76_v29 = vld [vmem:[%s163_s3 + $0x18] sm:$0xff] }
   0x4   :  { %v25_v4 = vsub.s32 0, %v24_v1  ;;  %v29_v5 = vsub.s32 1, %v24_v1  ;;  %v33_v6 = vsub.s32 2, %v24_v1  ;;  %v37_v7 = vsub.s32 3, %v24_v1  ;;  %v73_v22 = vld [vmem:[%s163_s3] sm:$0xff] }
   0x6   :  { %v26_v10 = vrot.slane %v21_v2, %v25_v4  ;;  %v52_v11 = vrot.slane %v47_v3, %v25_v4  ;;  %v30_v12 = vrot.slane %v21_v2, %v29_v5  ;;  %v56_v13 = vrot.slane %v47_v3, %v29_v5 }
   0x7   :  { %v34_v16 = vrot.slane %v21_v2, %v33_v6  ;;  %v60_v17 = vrot.slane %v47_v3, %v33_v6  ;;  %v38_v18 = vrot.slane %v21_v2, %v37_v7  ;;  %v64_v19 = vrot.slane %v47_v3, %v37_v7 }
   0x8   :  { %v43_v20 = vmul.f32 %v26_v10, %v17_v8  ;;  %v44_v21 = vmul.f32 %v30_v12, %v18_v9 }
   0x9   :  { %v45_v24 = vmul.f32 %v34_v16, %v19_v14  ;;  %v46_v25 = vmul.f32 %v38_v18, %v20_v15 }
   0xa   :  { %v69_v26 = vadd.f32 %v52_v11, %v43_v20  ;;  %v70_v27 = vadd.f32 %v56_v13, %v44_v21 }
   0xb   :  { %v71_v30 = vadd.f32 %v60_v17, %v45_v24  ;;  %v72_v31 = vadd.f32 %v64_v19, %v46_v25 }
   0xc   :  { %v77_v32 = vadd.f32 %v73_v22, %v69_v26  ;;  %v78_v33 = vadd.f32 %v74_v23, %v70_v27 }
   0xd   :  { %v79_v34 = vadd.f32 %v75_v28, %v71_v30  ;;  %v80_v35 = vadd.f32 %v76_v29, %v72_v31 }
   0xe   :  { %v81_v36 = vmax.f32 %v77_v32, 0.0  ;;  %v82_v37 = vmax.f32 %v78_v33, 0.0 }
   0xf   :  { %v83_v38 = vmax.f32 %v79_v34, 0.0  ;;  %v84_v39 = vmax.f32 %v80_v35, 0.0 }
  0x10   :  { %85 = vst [vmem:[%s164_s4] sm:$0xff] %v81_v36  ;;  %86 = vst [vmem:[%s164_s4 + $0x8] sm:$0xff] %v82_v37 }
  0x11   :  { %87 = vst [vmem:[%s164_s4 + $0x10] sm:$0xff] %v83_v38  ;;  %88 = vst [vmem:[%s164_s4 + $0x18] sm:$0xff] %v84_v39 }

</bundles_post_ra>
